<compile_context>
chip_gen: v6e
topology: v6e:2x2x1
jax: 0.10.0
libtpu: 0.0.40
codegen_flags: <defaults>
</compile_context>

<pallas_src>
import jax
import jax.numpy as jnp
from jax.experimental import pallas as pl
from jax.experimental.pallas import tpu as pltpu

B_TILE = 8          # images per grid step (one f32 sublane tile)
_NEG_SLOPE = 0.01   # nn.LeakyReLU default negative slope


def _leaky(v):
    return jnp.where(v >= 0.0, v, _NEG_SLOPE * v)


# ---------------- fused Pallas kernel (8 images per grid step) ----------------

def _fused_cnn_kernel(l1_ref, t1_ref, b1_ref, t2_ref, b2_ref,
                      wf1_ref, fb1_ref, wf2_ref, fb2_ref,
                      out_ref, feat_ref, p1_scr):
    f32 = jnp.float32
    bf16 = jnp.bfloat16

    # ---- conv1 (1->16, k=5, valid): one K-concatenated Toeplitz matmul.
    # rows  : p*96 + yh*8 + b   (conv1 output row y = 2*yh + p)
    # lanes : q*256 + xh*16 + co (conv1 output col x = 2*xh + q)
    pre1 = jnp.dot(l1_ref[...], t1_ref[...],
                   preferred_element_type=f32) + b1_ref[...]        # (192, 512)

    # ---- maxpool1 (2x2): row pairs sit in the two 96-row halves, column
    # pairs in the two 256-lane halves -> tile-aligned slices + VPU max.
    rpool1 = jnp.maximum(pre1[0:96, :], pre1[96:192, :])            # (96, 512)
    a1 = _leaky(rpool1)                                             # max/LReLU commute
    cp1 = jnp.maximum(a1[:, 0:256], a1[:, 256:512])                 # (96, 256)
    # cp1[yh*8 + b, xh*16 + ci] = pooled1[b, ci, yh, xh]

    # ---- zero-padded (rows) pooled map for conv2 (pad=1), in VMEM scratch.
    zero_slab = jnp.zeros((8, 256), f32)
    p1_scr[0:8] = zero_slab
    p1_scr[104:112] = zero_slab
    p1_scr[8:104] = cp1
    # p1_scr[r*8 + b, xh*16 + ci]: r = padded row 0..13 (r=0,13 are zero pads)

    # ---- conv2 (16->32, k=5, pad=1): 5 banded matmuls, aligned row windows,
    # single f32 value-chain accumulation (MRB-friendly on v7x).
    h2 = b2_ref[...]                                                 # (1, 512)
    for kh in range(5):
        lhs = p1_scr[kh * 8: kh * 8 + 80].astype(bf16)               # (80, 256)
        h2 = h2 + jnp.dot(lhs, t2_ref[kh], preferred_element_type=f32)
    # h2: (80, 512); rows = y2*8 + b, lanes = q2*256 + x3*32 + co2 (x2 = 2*x3+q2)

    # ---- maxpool2 (2x2) + fc1 (+LeakyReLU), one pooled row h at a time.
    feat = fb1_ref[...]                                              # (1, 128)
    for h in range(5):
        rp = jnp.maximum(h2[16 * h: 16 * h + 8, :],
                         h2[16 * h + 8: 16 * h + 16, :])             # (8, 512)
        ap = _leaky(rp)
        p2h = jnp.maximum(ap[:, 0:256], ap[:, 256:512])              # (8, 256)
        # p2h[b, x3*32 + co2] = pooled2[b, co2, h, x3]  (NCHW flatten in wf1)
        feat = feat + jnp.dot(p2h.astype(bf16), wf1_ref[h],
                              preferred_element_type=f32)
    feat = _leaky(feat)                                              # (8, 128)
    feat_ref[...] = feat.astype(feat_ref.dtype)

    # ---- fc2: lane-dense 128-wide logits (real logits in lanes 0..9).
    out = jnp.dot(feat.astype(bf16), wf2_ref[...],
                  preferred_element_type=f32) + fb2_ref[...]
    out_ref[...] = out.astype(out_ref.dtype)


# ---------------- one-time weight packing (hoisted out of the forward) --------

def prepare_params(params):
    f32 = jnp.float32
    bf16 = jnp.bfloat16
    w1 = params["conv1_w"].astype(f32)   # (16, 1, 5, 5)
    b1 = params["conv1_b"].astype(f32)   # (16,)
    w2 = params["conv2_w"].astype(f32)   # (32, 16, 5, 5)
    b2 = params["conv2_b"].astype(f32)   # (32,)
    fw1 = params["fc1_w"].astype(f32)    # (128, 800)
    fb1 = params["fc1_b"].astype(f32)    # (128,)
    fw2 = params["fc2_w"].astype(f32)    # (10, 128)
    fb2 = params["fc2_b"].astype(f32)    # (10,)

    # conv1 Toeplitz slab, K-concatenated over kh, output columns split by
    # parity into two 256-lane halves:
    #   t1[kh*28 + j, q*256 + xh*16 + co] = w1[co, 0, kh, j - (2*xh + q)]
    kh_i = jnp.arange(5).reshape(5, 1, 1, 1, 1)
    j_i = jnp.arange(28).reshape(1, 28, 1, 1, 1)
    q_i = jnp.arange(2).reshape(1, 1, 2, 1, 1)
    xh_i = jnp.arange(16).reshape(1, 1, 1, 16, 1)
    co_i = jnp.arange(16).reshape(1, 1, 1, 1, 16)
    kw = j_i - (2 * xh_i + q_i)
    valid = (kw >= 0) & (kw <= 4) & (xh_i <= 11)
    vals = w1[:, 0][co_i, kh_i, jnp.clip(kw, 0, 4)]
    t1 = jnp.where(valid, vals, 0.0).reshape(140, 512).astype(bf16)

    b1half = (jnp.arange(16) <= 11).astype(f32)[:, None] * b1[None, :]   # (16, 16)
    b1row = jnp.tile(b1half.reshape(1, 256), (1, 2))                     # (1, 512)

    # conv2 Toeplitz slabs (pad=1 folded in; even-column subsample folded in):
    #   t2[kh, xh*16+ci, q2*256 + x3*32 + co2] = w2[co2, ci, kh, (xh+1)-(2*x3+q2)]
    kh_i = jnp.arange(5).reshape(5, 1, 1, 1, 1, 1)
    xh_i = jnp.arange(16).reshape(1, 16, 1, 1, 1, 1)
    ci_i = jnp.arange(16).reshape(1, 1, 16, 1, 1, 1)
    q2_i = jnp.arange(2).reshape(1, 1, 1, 2, 1, 1)
    x3_i = jnp.arange(8).reshape(1, 1, 1, 1, 8, 1)
    co2_i = jnp.arange(32).reshape(1, 1, 1, 1, 1, 32)
    kw2 = (xh_i + 1) - (2 * x3_i + q2_i)
    valid2 = (kw2 >= 0) & (kw2 <= 4) & (xh_i <= 11) & (x3_i <= 4)
    vals2 = w2[co2_i, ci_i, kh_i, jnp.clip(kw2, 0, 4)]
    t2 = jnp.where(valid2, vals2, 0.0).reshape(5, 256, 512).astype(bf16)

    b2half = (jnp.arange(8) <= 4).astype(f32)[:, None] * b2[None, :]     # (8, 32)
    b2row = jnp.tile(b2half.reshape(1, 256), (1, 2))                     # (1, 512)

    # fc1 slabs: wf1[h, x3*32 + c, k] = fc1_w[k, c*25 + h*5 + x3] (NCHW flatten)
    wf1 = jnp.transpose(fw1.reshape(128, 32, 5, 5), (2, 3, 1, 0))        # (5, 5, 32, 128)
    wf1 = jnp.pad(wf1, ((0, 0), (0, 3), (0, 0), (0, 0)))                 # (5, 8, 32, 128)
    wf1 = wf1.reshape(5, 256, 128).astype(bf16)
    fb1row = fb1.reshape(1, 128)

    # fc2, zero-padded to a lane-dense 128-wide logits slab.
    wf2 = jnp.zeros((128, 128), f32).at[:, :10].set(fw2.T).astype(bf16)
    fb2row = jnp.zeros((1, 128), f32).at[0, :10].set(fb2)

    return (t1, b1row, t2, b2row, wf1, fb1row, wf2, fb2row)


# ---------------- pallas_call wrapper ----------------

def _build_conv1_lhs(x_pad):
    # x_pad: (N, 28, 28) f32 with N % B_TILE == 0.  Builds the K-concatenated
    # conv1 LHS with rows ordered (chunk, row-parity p, yh, b) and lanes kh*28+j.
    n = x_pad.shape[0]
    g = n // B_TILE
    xg = x_pad.reshape(g, B_TILE, 28, 28)
    win = jnp.concatenate([xg[:, :, kh:kh + 24, :] for kh in range(5)], axis=-1)
    win = win.reshape(g, B_TILE, 12, 2, 140)        # y -> (yh, p)
    win = jnp.transpose(win, (0, 3, 2, 1, 4))       # (g, 2, 12, B_TILE, 140)
    return win.reshape(g * 2 * 12 * B_TILE, 140).astype(jnp.bfloat16)


@jax.jit
def _fused_forward(prepped, x_pad):
    (t1, b1row, t2, b2row, wf1, fb1row, wf2, fb2row) = prepped
    n = x_pad.shape[0]
    g = n // B_TILE
    l1 = _build_conv1_lhs(x_pad)

    const2 = lambda i: (0, 0)
    const3 = lambda i: (0, 0, 0)
    out, feat = pl.pallas_call(
        _fused_cnn_kernel,
        out_shape=(jax.ShapeDtypeStruct((n, 128), jnp.float32),
                   jax.ShapeDtypeStruct((n, 128), jnp.float32)),
        grid=(g,),
        in_specs=[
            pl.BlockSpec((24 * B_TILE, 140), lambda i: (i, 0)),   # conv1 LHS chunk
            pl.BlockSpec(t1.shape, const2),                       # VMEM-resident weights
            pl.BlockSpec(b1row.shape, const2),
            pl.BlockSpec(t2.shape, const3),
            pl.BlockSpec(b2row.shape, const2),
            pl.BlockSpec(wf1.shape, const3),
            pl.BlockSpec(fb1row.shape, const2),
            pl.BlockSpec(wf2.shape, const2),
            pl.BlockSpec(fb2row.shape, const2),
        ],
        out_specs=(pl.BlockSpec((B_TILE, 128), lambda i: (i, 0)),
                   pl.BlockSpec((B_TILE, 128), lambda i: (i, 0))),
        scratch_shapes=[pltpu.VMEM((14 * B_TILE, 256), jnp.float32)],
        compiler_params=pltpu.CompilerParams(
            dimension_semantics=("parallel",)),
    )(l1, t1, b1row, t2, b2row, wf1, fb1row, wf2, fb2row)
    return out, feat


def fashion_mnist_cnn(params, x, return_features=False, prepped=None):
    """Forward pass matching FashionMNISTCNN.  x: (B, 1, 28, 28) NCHW."""
    if prepped is None:
        prepped = prepare_params(params)
    n = x.shape[0]
    x_sq = x.reshape(n, 28, 28).astype(jnp.float32)
    pad = (-n) % B_TILE
    if pad:
        x_sq = jnp.concatenate(
            [x_sq, jnp.zeros((pad, 28, 28), jnp.float32)], axis=0)
    out_p, feat_p = _fused_forward(prepped, x_sq)
    out = out_p[:n, :10]
    if return_features:
        return out, feat_p[:n, :]
    return out


# ---------------- synthetic params (PyTorch-shaped) ----------------

def init_params(key):
    ks = jax.random.split(key, 8)

    def u(k, shape, fan_in):
        bound = 1.0 / (fan_in ** 0.5)
        return jax.random.uniform(k, shape, jnp.float32, -bound, bound)

    return {
        "conv1_w": u(ks[0], (16, 1, 5, 5), 1 * 5 * 5),
        "conv1_b": u(ks[1], (16,), 1 * 5 * 5),
        "conv2_w": u(ks[2], (32, 16, 5, 5), 16 * 5 * 5),
        "conv2_b": u(ks[3], (32,), 16 * 5 * 5),
        "fc1_w":   u(ks[4], (128, 32 * 5 * 5), 32 * 5 * 5),
        "fc1_b":   u(ks[5], (128,), 32 * 5 * 5),
        "fc2_w":   u(ks[6], (10, 128), 128),
        "fc2_b":   u(ks[7], (10,), 128),
    }


if __name__ == "__main__":
    key = jax.random.PRNGKey(0)
    pkey, xkey = jax.random.split(key)
    params = init_params(pkey)
    # 28x28 inputs are required by Linear(32*5*5, 128); batch 16 -> grid of
    # 2 parallel steps of 8 images each (keeps both v7x TensorCores busy).
    x = jax.random.normal(xkey, (16, 1, 28, 28), dtype=jnp.float32)
    prepped = prepare_params(params)  # one-time weight packing
    out, feat = fashion_mnist_cnn(params, x, return_features=True, prepped=prepped)
    out = jax.block_until_ready(out)
    feat = jax.block_until_ready(feat)
    assert out.shape == (16, 10) and feat.shape == (16, 128)
    assert bool(jnp.all(jnp.isfinite(out))) and bool(jnp.all(jnp.isfinite(feat)))
    print("KERNEL_OK")
</pallas_src>

<mosaic_0001>
module attributes {stable_mosaic.version = 11 : i64} {
  func.func @_fused_cnn_kernel(%arg0: i32, %arg1: memref<192x140xbf16, #tpu.memory_space<vmem>>, %arg2: memref<140x512xbf16, #tpu.memory_space<vmem>>, %arg3: memref<1x512xf32, #tpu.memory_space<vmem>>, %arg4: memref<5x256x512xbf16, #tpu.memory_space<vmem>>, %arg5: memref<1x512xf32, #tpu.memory_space<vmem>>, %arg6: memref<5x256x128xbf16, #tpu.memory_space<vmem>>, %arg7: memref<1x128xf32, #tpu.memory_space<vmem>>, %arg8: memref<128x128xbf16, #tpu.memory_space<vmem>>, %arg9: memref<1x128xf32, #tpu.memory_space<vmem>>, %arg10: memref<8x128xf32, #tpu.memory_space<vmem>>, %arg11: memref<8x128xf32, #tpu.memory_space<vmem>>, %arg12: memref<112x256xf32, #tpu.memory_space<vmem>>) attributes {dimension_semantics = [#tpu.dimension_semantics<parallel>], iteration_bounds = array<i64: 2>, scalar_prefetch = 0 : i64, scratch_operands = 1 : i64, tpu.core_type = #tpu.core_type<tc>, window_params = [{transform_indices = @transform_0, window_bounds = array<i64: 192, 140>}, {pipeline_mode = #tpu.pipeline_mode<synchronous>, transform_indices = @transform_1, window_bounds = array<i64: 140, 512>}, {pipeline_mode = #tpu.pipeline_mode<synchronous>, transform_indices = @transform_2, window_bounds = array<i64: 1, 512>}, {pipeline_mode = #tpu.pipeline_mode<synchronous>, transform_indices = @transform_3, window_bounds = array<i64: 5, 256, 512>}, {pipeline_mode = #tpu.pipeline_mode<synchronous>, transform_indices = @transform_4, window_bounds = array<i64: 1, 512>}, {pipeline_mode = #tpu.pipeline_mode<synchronous>, transform_indices = @transform_5, window_bounds = array<i64: 5, 256, 128>}, {pipeline_mode = #tpu.pipeline_mode<synchronous>, transform_indices = @transform_6, window_bounds = array<i64: 1, 128>}, {pipeline_mode = #tpu.pipeline_mode<synchronous>, transform_indices = @transform_7, window_bounds = array<i64: 128, 128>}, {pipeline_mode = #tpu.pipeline_mode<synchronous>, transform_indices = @transform_8, window_bounds = array<i64: 1, 128>}, {transform_indices = @transform_9, window_bounds = array<i64: 8, 128>}, {transform_indices = @transform_10, window_bounds = array<i64: 8, 128>}]} {
    %c0 = arith.constant 0 : index
    %c0_0 = arith.constant 0 : index
    %0 = vector.load %arg1[%c0, %c0_0] : memref<192x140xbf16, #tpu.memory_space<vmem>>, vector<192x140xbf16>
    %c0_1 = arith.constant 0 : index
    %c0_2 = arith.constant 0 : index
    %1 = vector.load %arg2[%c0_1, %c0_2] : memref<140x512xbf16, #tpu.memory_space<vmem>>, vector<140x512xbf16>
    %cst = arith.constant dense<0.000000e+00> : vector<192x512xf32>
    %2 = tpu.matmul %0, %1, %cst {dimension_numbers = #tpu.dot_dimension_numbers<[1], [0], [0], [1], [0, 0, 1, 1], [], []>} : vector<192x140xbf16>, vector<140x512xbf16>, vector<192x512xf32> -> vector<192x512xf32>
    %c0_3 = arith.constant 0 : index
    %c0_4 = arith.constant 0 : index
    %3 = vector.load %arg3[%c0_3, %c0_4] : memref<1x512xf32, #tpu.memory_space<vmem>>, vector<1x512xf32>
    %4 = vector.broadcast %3 : vector<1x512xf32> to vector<192x512xf32>
    %5 = arith.addf %2, %4 : vector<192x512xf32>
    %6 = vector.extract_strided_slice %5 {offsets = [0, 0], sizes = [96, 512], strides = [1, 1]} : vector<192x512xf32> to vector<96x512xf32>
    %7 = vector.extract_strided_slice %5 {offsets = [96, 0], sizes = [96, 512], strides = [1, 1]} : vector<192x512xf32> to vector<96x512xf32>
    %8 = arith.maximumf %6, %7 : vector<96x512xf32>
    %cst_5 = arith.constant 0.000000e+00 : f32
    %9 = vector.broadcast %cst_5 : f32 to vector<96x512xf32>
    %10 = arith.cmpf oge, %8, %9 : vector<96x512xf32>
    %cst_6 = arith.constant 0.00999999977 : f32
    %11 = vector.broadcast %cst_6 : f32 to vector<96x512xf32>
    %12 = arith.mulf %11, %8 : vector<96x512xf32>
    %13 = arith.select %10, %8, %12 : vector<96x512xi1>, vector<96x512xf32>
    %14 = vector.extract_strided_slice %13 {offsets = [0, 0], sizes = [96, 256], strides = [1, 1]} : vector<96x512xf32> to vector<96x256xf32>
    %15 = vector.extract_strided_slice %13 {offsets = [0, 256], sizes = [96, 256], strides = [1, 1]} : vector<96x512xf32> to vector<96x256xf32>
    %16 = arith.maximumf %14, %15 : vector<96x256xf32>
    %cst_7 = arith.constant 0.000000e+00 : f32
    %17 = vector.broadcast %cst_7 : f32 to vector<8x256xf32>
    %c0_8 = arith.constant 0 : index
    %c0_9 = arith.constant 0 : index
    %18 = vector.load %arg12[%c0_8, %c0_9] : memref<112x256xf32, #tpu.memory_space<vmem>>, vector<8x256xf32>
    tpu.vector_store %arg12[%c0_8, %c0_9], %17 {strides = array<i32>} : memref<112x256xf32, #tpu.memory_space<vmem>>, vector<8x256xf32>,
    %c104 = arith.constant 104 : index
    %c0_10 = arith.constant 0 : index
    %19 = vector.load %arg12[%c104, %c0_10] : memref<112x256xf32, #tpu.memory_space<vmem>>, vector<8x256xf32>
    tpu.vector_store %arg12[%c104, %c0_10], %17 {strides = array<i32>} : memref<112x256xf32, #tpu.memory_space<vmem>>, vector<8x256xf32>,
    %c8 = arith.constant 8 : index
    %c0_11 = arith.constant 0 : index
    %20 = vector.load %arg12[%c8, %c0_11] : memref<112x256xf32, #tpu.memory_space<vmem>>, vector<96x256xf32>
    tpu.vector_store %arg12[%c8, %c0_11], %16 {strides = array<i32>} : memref<112x256xf32, #tpu.memory_space<vmem>>, vector<96x256xf32>,
    %c0_12 = arith.constant 0 : index
    %c0_13 = arith.constant 0 : index
    %21 = vector.load %arg5[%c0_12, %c0_13] : memref<1x512xf32, #tpu.memory_space<vmem>>, vector<1x512xf32>
    %c0_14 = arith.constant 0 : index
    %c0_15 = arith.constant 0 : index
    %22 = vector.load %arg12[%c0_14, %c0_15] : memref<112x256xf32, #tpu.memory_space<vmem>>, vector<80x256xf32>
    %23 = arith.truncf %22 : vector<80x256xf32> to vector<80x256xbf16>
    %c0_16 = arith.constant 0 : index
    %c0_17 = arith.constant 0 : index
    %c0_18 = arith.constant 0 : index
    %24 = vector.load %arg4[%c0_16, %c0_17, %c0_18] : memref<5x256x512xbf16, #tpu.memory_space<vmem>>, vector<1x256x512xbf16>
    %25 = vector.shape_cast %24 : vector<1x256x512xbf16> to vector<256x512xbf16>
    %cst_19 = arith.constant dense<0.000000e+00> : vector<80x512xf32>
    %26 = tpu.matmul %23, %25, %cst_19 {dimension_numbers = #tpu.dot_dimension_numbers<[1], [0], [0], [1], [0, 0, 1, 1], [], []>} : vector<80x256xbf16>, vector<256x512xbf16>, vector<80x512xf32> -> vector<80x512xf32>
    %27 = vector.broadcast %21 : vector<1x512xf32> to vector<80x512xf32>
    %28 = arith.addf %27, %26 : vector<80x512xf32>
    %c8_20 = arith.constant 8 : index
    %c0_21 = arith.constant 0 : index
    %29 = vector.load %arg12[%c8_20, %c0_21] : memref<112x256xf32, #tpu.memory_space<vmem>>, vector<80x256xf32>
    %30 = arith.truncf %29 : vector<80x256xf32> to vector<80x256xbf16>
    %c1 = arith.constant 1 : index
    %c0_22 = arith.constant 0 : index
    %c0_23 = arith.constant 0 : index
    %31 = vector.load %arg4[%c1, %c0_22, %c0_23] : memref<5x256x512xbf16, #tpu.memory_space<vmem>>, vector<1x256x512xbf16>
    %32 = vector.shape_cast %31 : vector<1x256x512xbf16> to vector<256x512xbf16>
    %cst_24 = arith.constant dense<0.000000e+00> : vector<80x512xf32>
    %33 = tpu.matmul %30, %32, %cst_24 {dimension_numbers = #tpu.dot_dimension_numbers<[1], [0], [0], [1], [0, 0, 1, 1], [], []>} : vector<80x256xbf16>, vector<256x512xbf16>, vector<80x512xf32> -> vector<80x512xf32>
    %34 = arith.addf %28, %33 : vector<80x512xf32>
    %c16 = arith.constant 16 : index
    %c0_25 = arith.constant 0 : index
    %35 = vector.load %arg12[%c16, %c0_25] : memref<112x256xf32, #tpu.memory_space<vmem>>, vector<80x256xf32>
    %36 = arith.truncf %35 : vector<80x256xf32> to vector<80x256xbf16>
    %c2 = arith.constant 2 : index
    %c0_26 = arith.constant 0 : index
    %c0_27 = arith.constant 0 : index
    %37 = vector.load %arg4[%c2, %c0_26, %c0_27] : memref<5x256x512xbf16, #tpu.memory_space<vmem>>, vector<1x256x512xbf16>
    %38 = vector.shape_cast %37 : vector<1x256x512xbf16> to vector<256x512xbf16>
    %cst_28 = arith.constant dense<0.000000e+00> : vector<80x512xf32>
    %39 = tpu.matmul %36, %38, %cst_28 {dimension_numbers = #tpu.dot_dimension_numbers<[1], [0], [0], [1], [0, 0, 1, 1], [], []>} : vector<80x256xbf16>, vector<256x512xbf16>, vector<80x512xf32> -> vector<80x512xf32>
    %40 = arith.addf %34, %39 : vector<80x512xf32>
    %c24 = arith.constant 24 : index
    %c0_29 = arith.constant 0 : index
    %41 = vector.load %arg12[%c24, %c0_29] : memref<112x256xf32, #tpu.memory_space<vmem>>, vector<80x256xf32>
    %42 = arith.truncf %41 : vector<80x256xf32> to vector<80x256xbf16>
    %c3 = arith.constant 3 : index
    %c0_30 = arith.constant 0 : index
    %c0_31 = arith.constant 0 : index
    %43 = vector.load %arg4[%c3, %c0_30, %c0_31] : memref<5x256x512xbf16, #tpu.memory_space<vmem>>, vector<1x256x512xbf16>
    %44 = vector.shape_cast %43 : vector<1x256x512xbf16> to vector<256x512xbf16>
    %cst_32 = arith.constant dense<0.000000e+00> : vector<80x512xf32>
    %45 = tpu.matmul %42, %44, %cst_32 {dimension_numbers = #tpu.dot_dimension_numbers<[1], [0], [0], [1], [0, 0, 1, 1], [], []>} : vector<80x256xbf16>, vector<256x512xbf16>, vector<80x512xf32> -> vector<80x512xf32>
    %46 = arith.addf %40, %45 : vector<80x512xf32>
    %c32 = arith.constant 32 : index
    %c0_33 = arith.constant 0 : index
    %47 = vector.load %arg12[%c32, %c0_33] : memref<112x256xf32, #tpu.memory_space<vmem>>, vector<80x256xf32>
    %48 = arith.truncf %47 : vector<80x256xf32> to vector<80x256xbf16>
    %c4 = arith.constant 4 : index
    %c0_34 = arith.constant 0 : index
    %c0_35 = arith.constant 0 : index
    %49 = vector.load %arg4[%c4, %c0_34, %c0_35] : memref<5x256x512xbf16, #tpu.memory_space<vmem>>, vector<1x256x512xbf16>
    %50 = vector.shape_cast %49 : vector<1x256x512xbf16> to vector<256x512xbf16>
    %cst_36 = arith.constant dense<0.000000e+00> : vector<80x512xf32>
    %51 = tpu.matmul %48, %50, %cst_36 {dimension_numbers = #tpu.dot_dimension_numbers<[1], [0], [0], [1], [0, 0, 1, 1], [], []>} : vector<80x256xbf16>, vector<256x512xbf16>, vector<80x512xf32> -> vector<80x512xf32>
    %52 = arith.addf %46, %51 : vector<80x512xf32>
    %c0_37 = arith.constant 0 : index
    %c0_38 = arith.constant 0 : index
    %53 = vector.load %arg7[%c0_37, %c0_38] : memref<1x128xf32, #tpu.memory_space<vmem>>, vector<1x128xf32>
    %54 = vector.extract_strided_slice %52 {offsets = [0, 0], sizes = [8, 512], strides = [1, 1]} : vector<80x512xf32> to vector<8x512xf32>
    %55 = vector.extract_strided_slice %52 {offsets = [8, 0], sizes = [8, 512], strides = [1, 1]} : vector<80x512xf32> to vector<8x512xf32>
    %56 = arith.maximumf %54, %55 : vector<8x512xf32>
    %cst_39 = arith.constant 0.000000e+00 : f32
    %57 = vector.broadcast %cst_39 : f32 to vector<8x512xf32>
    %58 = arith.cmpf oge, %56, %57 : vector<8x512xf32>
    %cst_40 = arith.constant 0.00999999977 : f32
    %59 = vector.broadcast %cst_40 : f32 to vector<8x512xf32>
    %60 = arith.mulf %59, %56 : vector<8x512xf32>
    %61 = arith.select %58, %56, %60 : vector<8x512xi1>, vector<8x512xf32>
    %62 = vector.extract_strided_slice %61 {offsets = [0, 0], sizes = [8, 256], strides = [1, 1]} : vector<8x512xf32> to vector<8x256xf32>
    %63 = vector.extract_strided_slice %61 {offsets = [0, 256], sizes = [8, 256], strides = [1, 1]} : vector<8x512xf32> to vector<8x256xf32>
    %64 = arith.maximumf %62, %63 : vector<8x256xf32>
    %65 = arith.truncf %64 : vector<8x256xf32> to vector<8x256xbf16>
    %c0_41 = arith.constant 0 : index
    %c0_42 = arith.constant 0 : index
    %c0_43 = arith.constant 0 : index
    %66 = vector.load %arg6[%c0_41, %c0_42, %c0_43] : memref<5x256x128xbf16, #tpu.memory_space<vmem>>, vector<1x256x128xbf16>
    %67 = vector.shape_cast %66 : vector<1x256x128xbf16> to vector<256x128xbf16>
    %cst_44 = arith.constant dense<0.000000e+00> : vector<8x128xf32>
    %68 = tpu.matmul %65, %67, %cst_44 {dimension_numbers = #tpu.dot_dimension_numbers<[1], [0], [0], [1], [0, 0, 1, 1], [], []>} : vector<8x256xbf16>, vector<256x128xbf16>, vector<8x128xf32> -> vector<8x128xf32>
    %69 = vector.broadcast %53 : vector<1x128xf32> to vector<8x128xf32>
    %70 = arith.addf %69, %68 : vector<8x128xf32>
    %71 = vector.extract_strided_slice %52 {offsets = [16, 0], sizes = [8, 512], strides = [1, 1]} : vector<80x512xf32> to vector<8x512xf32>
    %72 = vector.extract_strided_slice %52 {offsets = [24, 0], sizes = [8, 512], strides = [1, 1]} : vector<80x512xf32> to vector<8x512xf32>
    %73 = arith.maximumf %71, %72 : vector<8x512xf32>
    %cst_45 = arith.constant 0.000000e+00 : f32
    %74 = vector.broadcast %cst_45 : f32 to vector<8x512xf32>
    %75 = arith.cmpf oge, %73, %74 : vector<8x512xf32>
    %cst_46 = arith.constant 0.00999999977 : f32
    %76 = vector.broadcast %cst_46 : f32 to vector<8x512xf32>
    %77 = arith.mulf %76, %73 : vector<8x512xf32>
    %78 = arith.select %75, %73, %77 : vector<8x512xi1>, vector<8x512xf32>
    %79 = vector.extract_strided_slice %78 {offsets = [0, 0], sizes = [8, 256], strides = [1, 1]} : vector<8x512xf32> to vector<8x256xf32>
    %80 = vector.extract_strided_slice %78 {offsets = [0, 256], sizes = [8, 256], strides = [1, 1]} : vector<8x512xf32> to vector<8x256xf32>
    %81 = arith.maximumf %79, %80 : vector<8x256xf32>
    %82 = arith.truncf %81 : vector<8x256xf32> to vector<8x256xbf16>
    %c1_47 = arith.constant 1 : index
    %c0_48 = arith.constant 0 : index
    %c0_49 = arith.constant 0 : index
    %83 = vector.load %arg6[%c1_47, %c0_48, %c0_49] : memref<5x256x128xbf16, #tpu.memory_space<vmem>>, vector<1x256x128xbf16>
    %84 = vector.shape_cast %83 : vector<1x256x128xbf16> to vector<256x128xbf16>
    %cst_50 = arith.constant dense<0.000000e+00> : vector<8x128xf32>
    %85 = tpu.matmul %82, %84, %cst_50 {dimension_numbers = #tpu.dot_dimension_numbers<[1], [0], [0], [1], [0, 0, 1, 1], [], []>} : vector<8x256xbf16>, vector<256x128xbf16>, vector<8x128xf32> -> vector<8x128xf32>
    %86 = arith.addf %70, %85 : vector<8x128xf32>
    %87 = vector.extract_strided_slice %52 {offsets = [32, 0], sizes = [8, 512], strides = [1, 1]} : vector<80x512xf32> to vector<8x512xf32>
    %88 = vector.extract_strided_slice %52 {offsets = [40, 0], sizes = [8, 512], strides = [1, 1]} : vector<80x512xf32> to vector<8x512xf32>
    %89 = arith.maximumf %87, %88 : vector<8x512xf32>
    %cst_51 = arith.constant 0.000000e+00 : f32
    %90 = vector.broadcast %cst_51 : f32 to vector<8x512xf32>
    %91 = arith.cmpf oge, %89, %90 : vector<8x512xf32>
    %cst_52 = arith.constant 0.00999999977 : f32
    %92 = vector.broadcast %cst_52 : f32 to vector<8x512xf32>
    %93 = arith.mulf %92, %89 : vector<8x512xf32>
    %94 = arith.select %91, %89, %93 : vector<8x512xi1>, vector<8x512xf32>
    %95 = vector.extract_strided_slice %94 {offsets = [0, 0], sizes = [8, 256], strides = [1, 1]} : vector<8x512xf32> to vector<8x256xf32>
    %96 = vector.extract_strided_slice %94 {offsets = [0, 256], sizes = [8, 256], strides = [1, 1]} : vector<8x512xf32> to vector<8x256xf32>
    %97 = arith.maximumf %95, %96 : vector<8x256xf32>
    %98 = arith.truncf %97 : vector<8x256xf32> to vector<8x256xbf16>
    %c2_53 = arith.constant 2 : index
    %c0_54 = arith.constant 0 : index
    %c0_55 = arith.constant 0 : index
    %99 = vector.load %arg6[%c2_53, %c0_54, %c0_55] : memref<5x256x128xbf16, #tpu.memory_space<vmem>>, vector<1x256x128xbf16>
    %100 = vector.shape_cast %99 : vector<1x256x128xbf16> to vector<256x128xbf16>
    %cst_56 = arith.constant dense<0.000000e+00> : vector<8x128xf32>
    %101 = tpu.matmul %98, %100, %cst_56 {dimension_numbers = #tpu.dot_dimension_numbers<[1], [0], [0], [1], [0, 0, 1, 1], [], []>} : vector<8x256xbf16>, vector<256x128xbf16>, vector<8x128xf32> -> vector<8x128xf32>
    %102 = arith.addf %86, %101 : vector<8x128xf32>
    %103 = vector.extract_strided_slice %52 {offsets = [48, 0], sizes = [8, 512], strides = [1, 1]} : vector<80x512xf32> to vector<8x512xf32>
    %104 = vector.extract_strided_slice %52 {offsets = [56, 0], sizes = [8, 512], strides = [1, 1]} : vector<80x512xf32> to vector<8x512xf32>
    %105 = arith.maximumf %103, %104 : vector<8x512xf32>
    %cst_57 = arith.constant 0.000000e+00 : f32
    %106 = vector.broadcast %cst_57 : f32 to vector<8x512xf32>
    %107 = arith.cmpf oge, %105, %106 : vector<8x512xf32>
    %cst_58 = arith.constant 0.00999999977 : f32
    %108 = vector.broadcast %cst_58 : f32 to vector<8x512xf32>
    %109 = arith.mulf %108, %105 : vector<8x512xf32>
    %110 = arith.select %107, %105, %109 : vector<8x512xi1>, vector<8x512xf32>
    %111 = vector.extract_strided_slice %110 {offsets = [0, 0], sizes = [8, 256], strides = [1, 1]} : vector<8x512xf32> to vector<8x256xf32>
    %112 = vector.extract_strided_slice %110 {offsets = [0, 256], sizes = [8, 256], strides = [1, 1]} : vector<8x512xf32> to vector<8x256xf32>
    %113 = arith.maximumf %111, %112 : vector<8x256xf32>
    %114 = arith.truncf %113 : vector<8x256xf32> to vector<8x256xbf16>
    %c3_59 = arith.constant 3 : index
    %c0_60 = arith.constant 0 : index
    %c0_61 = arith.constant 0 : index
    %115 = vector.load %arg6[%c3_59, %c0_60, %c0_61] : memref<5x256x128xbf16, #tpu.memory_space<vmem>>, vector<1x256x128xbf16>
    %116 = vector.shape_cast %115 : vector<1x256x128xbf16> to vector<256x128xbf16>
    %cst_62 = arith.constant dense<0.000000e+00> : vector<8x128xf32>
    %117 = tpu.matmul %114, %116, %cst_62 {dimension_numbers = #tpu.dot_dimension_numbers<[1], [0], [0], [1], [0, 0, 1, 1], [], []>} : vector<8x256xbf16>, vector<256x128xbf16>, vector<8x128xf32> -> vector<8x128xf32>
    %118 = arith.addf %102, %117 : vector<8x128xf32>
    %119 = vector.extract_strided_slice %52 {offsets = [64, 0], sizes = [8, 512], strides = [1, 1]} : vector<80x512xf32> to vector<8x512xf32>
    %120 = vector.extract_strided_slice %52 {offsets = [72, 0], sizes = [8, 512], strides = [1, 1]} : vector<80x512xf32> to vector<8x512xf32>
    %121 = arith.maximumf %119, %120 : vector<8x512xf32>
    %cst_63 = arith.constant 0.000000e+00 : f32
    %122 = vector.broadcast %cst_63 : f32 to vector<8x512xf32>
    %123 = arith.cmpf oge, %121, %122 : vector<8x512xf32>
    %cst_64 = arith.constant 0.00999999977 : f32
    %124 = vector.broadcast %cst_64 : f32 to vector<8x512xf32>
    %125 = arith.mulf %124, %121 : vector<8x512xf32>
    %126 = arith.select %123, %121, %125 : vector<8x512xi1>, vector<8x512xf32>
    %127 = vector.extract_strided_slice %126 {offsets = [0, 0], sizes = [8, 256], strides = [1, 1]} : vector<8x512xf32> to vector<8x256xf32>
    %128 = vector.extract_strided_slice %126 {offsets = [0, 256], sizes = [8, 256], strides = [1, 1]} : vector<8x512xf32> to vector<8x256xf32>
    %129 = arith.maximumf %127, %128 : vector<8x256xf32>
    %130 = arith.truncf %129 : vector<8x256xf32> to vector<8x256xbf16>
    %c4_65 = arith.constant 4 : index
    %c0_66 = arith.constant 0 : index
    %c0_67 = arith.constant 0 : index
    %131 = vector.load %arg6[%c4_65, %c0_66, %c0_67] : memref<5x256x128xbf16, #tpu.memory_space<vmem>>, vector<1x256x128xbf16>
    %132 = vector.shape_cast %131 : vector<1x256x128xbf16> to vector<256x128xbf16>
    %cst_68 = arith.constant dense<0.000000e+00> : vector<8x128xf32>
    %133 = tpu.matmul %130, %132, %cst_68 {dimension_numbers = #tpu.dot_dimension_numbers<[1], [0], [0], [1], [0, 0, 1, 1], [], []>} : vector<8x256xbf16>, vector<256x128xbf16>, vector<8x128xf32> -> vector<8x128xf32>
    %134 = arith.addf %118, %133 : vector<8x128xf32>
    %cst_69 = arith.constant 0.000000e+00 : f32
    %135 = vector.broadcast %cst_69 : f32 to vector<8x128xf32>
    %136 = arith.cmpf oge, %134, %135 : vector<8x128xf32>
    %cst_70 = arith.constant 0.00999999977 : f32
    %137 = vector.broadcast %cst_70 : f32 to vector<8x128xf32>
    %138 = arith.mulf %137, %134 : vector<8x128xf32>
    %139 = arith.select %136, %134, %138 : vector<8x128xi1>, vector<8x128xf32>
    %c0_71 = arith.constant 0 : index
    %c0_72 = arith.constant 0 : index
    %140 = vector.load %arg11[%c0_71, %c0_72] : memref<8x128xf32, #tpu.memory_space<vmem>>, vector<8x128xf32>
    tpu.vector_store %arg11[%c0_71, %c0_72], %139 {strides = array<i32>} : memref<8x128xf32, #tpu.memory_space<vmem>>, vector<8x128xf32>,
    %141 = arith.truncf %139 : vector<8x128xf32> to vector<8x128xbf16>
    %c0_73 = arith.constant 0 : index
    %c0_74 = arith.constant 0 : index
    %142 = vector.load %arg8[%c0_73, %c0_74] : memref<128x128xbf16, #tpu.memory_space<vmem>>, vector<128x128xbf16>
    %cst_75 = arith.constant dense<0.000000e+00> : vector<8x128xf32>
    %143 = tpu.matmul %141, %142, %cst_75 {dimension_numbers = #tpu.dot_dimension_numbers<[1], [0], [0], [1], [0, 0, 1, 1], [], []>} : vector<8x128xbf16>, vector<128x128xbf16>, vector<8x128xf32> -> vector<8x128xf32>
    %c0_76 = arith.constant 0 : index
    %c0_77 = arith.constant 0 : index
    %144 = vector.load %arg9[%c0_76, %c0_77] : memref<1x128xf32, #tpu.memory_space<vmem>>, vector<1x128xf32>
    %145 = vector.broadcast %144 : vector<1x128xf32> to vector<8x128xf32>
    %146 = arith.addf %143, %145 : vector<8x128xf32>
    %c0_78 = arith.constant 0 : index
    %c0_79 = arith.constant 0 : index
    %147 = vector.load %arg10[%c0_78, %c0_79] : memref<8x128xf32, #tpu.memory_space<vmem>>, vector<8x128xf32>
    tpu.vector_store %arg10[%c0_78, %c0_79], %146 {strides = array<i32>} : memref<8x128xf32, #tpu.memory_space<vmem>>, vector<8x128xf32>,
    return
  }
  func.func @transform_0(%arg0: i32) -> (i32, i32) {
    %c0_i32 = arith.constant 0 : i32
    %c0_i32_0 = arith.constant 0 : i32
    return %arg0, %c0_i32 : i32, i32
  }
  func.func @transform_1(%arg0: i32) -> (i32, i32) {
    %c0_i32 = arith.constant 0 : i32
    %c0_i32_0 = arith.constant 0 : i32
    %c0_i32_1 = arith.constant 0 : i32
    return %c0_i32, %c0_i32_0 : i32, i32
  }
  func.func @transform_2(%arg0: i32) -> (i32, i32) {
    %c0_i32 = arith.constant 0 : i32
    %c0_i32_0 = arith.constant 0 : i32
    %c0_i32_1 = arith.constant 0 : i32
    return %c0_i32, %c0_i32_0 : i32, i32
  }
  func.func @transform_3(%arg0: i32) -> (i32, i32, i32) {
    %c0_i32 = arith.constant 0 : i32
    %c0_i32_0 = arith.constant 0 : i32
    %c0_i32_1 = arith.constant 0 : i32
    %c0_i32_2 = arith.constant 0 : i32
    return %c0_i32, %c0_i32_0, %c0_i32_1 : i32, i32, i32
  }
  func.func @transform_4(%arg0: i32) -> (i32, i32) {
    %c0_i32 = arith.constant 0 : i32
    %c0_i32_0 = arith.constant 0 : i32
    %c0_i32_1 = arith.constant 0 : i32
    return %c0_i32, %c0_i32_0 : i32, i32
  }
  func.func @transform_5(%arg0: i32) -> (i32, i32, i32) {
    %c0_i32 = arith.constant 0 : i32
    %c0_i32_0 = arith.constant 0 : i32
    %c0_i32_1 = arith.constant 0 : i32
    %c0_i32_2 = arith.constant 0 : i32
    return %c0_i32, %c0_i32_0, %c0_i32_1 : i32, i32, i32
  }
  func.func @transform_6(%arg0: i32) -> (i32, i32) {
    %c0_i32 = arith.constant 0 : i32
    %c0_i32_0 = arith.constant 0 : i32
    %c0_i32_1 = arith.constant 0 : i32
    return %c0_i32, %c0_i32_0 : i32, i32
  }
  func.func @transform_7(%arg0: i32) -> (i32, i32) {
    %c0_i32 = arith.constant 0 : i32
    %c0_i32_0 = arith.constant 0 : i32
    %c0_i32_1 = arith.constant 0 : i32
    return %c0_i32, %c0_i32_0 : i32, i32
  }
  func.func @transform_8(%arg0: i32) -> (i32, i32) {
    %c0_i32 = arith.constant 0 : i32
    %c0_i32_0 = arith.constant 0 : i32
    %c0_i32_1 = arith.constant 0 : i32
    return %c0_i32, %c0_i32_0 : i32, i32
  }
  func.func @transform_9(%arg0: i32) -> (i32, i32) {
    %c0_i32 = arith.constant 0 : i32
    %c0_i32_0 = arith.constant 0 : i32
    return %arg0, %c0_i32 : i32, i32
  }
  func.func @transform_10(%arg0: i32) -> (i32, i32) {
    %c0_i32 = arith.constant 0 : i32
    %c0_i32_0 = arith.constant 0 : i32
    return %arg0, %c0_i32 : i32, i32
  }
}

</mosaic_0001>

<bundles_post_ra>
// kernel: _fused_forward.1
= control target key start
LH: loop header
LB: loop body
LE: loop exit
PB: predicated region body
PF: predicated region fallthrough
CT: control target
= control target key end

     0   :  { %s10159_s0 = inlined_call_operand.vmem [shape: bf16[384,140], index: 0, kind: input, shape index: {}]   ;;  %s10160_s1 = inlined_call_operand.vmem [shape: bf16[140,512], index: 1, kind: input, shape index: {}]   ;;  %s10161_s2 = inlined_call_operand.vmem [shape: f32[1,512], index: 2, kind: input, shape index: {}]   ;;  %s10162_s3 = inlined_call_operand.vmem [shape: bf16[5,256,512], index: 3, kind: input, shape index: {}]   ;;  %s10163_s4 = inlined_call_operand.vmem [shape: f32[1,512], index: 4, kind: input, shape index: {}]   ;;  %s10164_s5 = inlined_call_operand.vmem [shape: bf16[5,256,128], index: 5, kind: input, shape index: {}]   ;;  %s10165_s6 = inlined_call_operand.vmem [shape: f32[1,128], index: 6, kind: input, shape index: {}]   ;;  %s10166_s7 = inlined_call_operand.vmem [shape: bf16[128,128], index: 7, kind: input, shape index: {}]   ;;  %s10167_s8 = inlined_call_operand.vmem [shape: f32[1,128], index: 8, kind: input, shape index: {}]   ;;  %s10168_s9 = inlined_call_operand.hbm [shape: f32[16,128], index: 9, kind: output, shape index: {0}]   ;;  %s10169_s10 = inlined_call_operand.hbm [shape: f32[16,128], index: 10, kind: output, shape index: {1}]  }
   0x1   :  { %10181 = sst [smem:[#allocation31_spill]] %s10159_s0 }
   0x2   :  { %10182 = sst [smem:[#allocation32_spill]] %s10160_s1 }
   0x3   :  { %16 = vsyncpa [#allocation4], 0 }
   0x4   :  { %18 = vsyncpa [#allocation4 + $0x1], 0 }
   0x5   :  { %19 = vsyncpa [#allocation6], 0 }
   0x6   :  { %21 = vsyncpa [#allocation6 + $0x1], 0  ;;  %s7552_s13 = smov 0   ;;  %s7554_s14 = smov 0  }
   0x7   :  { %s7556_s15 = smov 0   ;;  %s7558_s16 = smov 0  }
   0x8 LB: > { %s7573_s17 = sadd.s32 4294967295, %s7491_s16   ;;  %s5663_s18 = sadd.s32 4294967294, %s7491_s16   ;;  %s7491_s16 = sphi %s7558_s16, %s10266_s16   ;;  %s7487_s15 = sphi %s7556_s15, %s10265_s15   ;;  %s7483_s14 = sphi %s7554_s14, %s10264_s14   ;;  %s7479_s13 = sphi %s7552_s13, %s10263_s13  }
   0x9   : > { %s7577_s19 = sadd.s32 1, %s7491_s16   ;;  %s228_s20 = sadd.s32 1, %s7487_s15 }
   0xa   : > { %s225_s21 = ssub.s32 %s7491_s16, %s7577_s19  ;;  %p238_p0 = scmp.ne.s32.totalorder %s7487_s15, %s7483_s14 }
   0xb   : > { %p226_p1 = scmp.eq.s32.totalorder %s225_s21, 0  ;;  %p239_p2 = scmp.eq.s32.totalorder %s7573_s17, 1 }
   0xc   : > { %p244_p3 = scmp.ne.s32.totalorder %s7483_s14, %s7479_s13  ;;  %p245_p4 = scmp.eq.s32.totalorder %s5663_s18, 1 }
   0xd   : > { %s7588_s22 = scalar_select %p226_p1, %s7487_s15, %s228_s20  }
   0xe   : > { %p7590_p5 = por %p239_p2, %p238_p0  ;;  %p7594_p6 = por %p245_p4, %p244_p3 }
   0xf   : > { %10183 = sst [smem:[#allocation9_spill]] %s7588_s22  ;;  %p5666_p7 = scmp.ge.s32.totalorder %s7491_s16, 1 }
  0x10   : > { %p323_p8 = scmp.lt.s32.totalorder %s7491_s16, 3 }
  0x12   : > { %p324_p9 = pnand %p5666_p7, %p323_p8 }
  0x14   : > { %327 = sbr.rel (%p324_p9) target bundleno = 1290 (0x50a), region = 56 }
  0x19   : > { %s10186_s1 = sld [smem:[#allocation32_spill]]  ;;  %s367_s12 = smul.u32 24, %s7573_s17  ;;  %vm741_vm0 = vcmask 97280   ;;  %vm778_vm1 = vcmask 1045504   ;;  %v6833_v42 = vld [vmem:[%s10162_s3 + $0xe0] ss:$16 sps:$4 sm:$0xff]  }
  0x1a   : > { %s10187_s0 = sld [smem:[#allocation31_spill]]  ;;  %v6835_v43 = vld [vmem:[%s10162_s3 + $0xe4] ss:$16 sps:$4 sm:$0xff]   ;;  %v6836_v44 = vld [vmem:[%s10162_s3 + $0xe8] ss:$16 sps:$4 sm:$0xff]   ;;  %s10083_s27 = sand.u32 1, %s7483_s14  }
  0x1b   : > { %p368_p10 = scmp.lt.s32.totalorder %s367_s12, 47  ;;  %v6838_v45 = vld [vmem:[%s10162_s3 + $0xec] ss:$16 sps:$4 sm:$0xff]   ;;  %v6841_v47 = vld [vmem:[%s10162_s3 + $0xc4] ss:$16 sps:$4 sm:$0xff]   ;;  %s10179_s28 = sshll.u32 %s10083_s27, 3 }
  0x1c   : > { %v6839_v48 = vld [vmem:[%s10162_s3 + $0xc0] ss:$16 sps:$4 sm:$0xff]   ;;  %v6844_v49 = vld [vmem:[%s10162_s3 + $0xcc] ss:$16 sps:$4 sm:$0xff]   ;;  %v6842_v50 = vld [vmem:[%s10162_s3 + $0xc8] ss:$16 sps:$4 sm:$0xff]  }
  0x1d   : > { %s10268_s12 = smov (!%p368_p10, %s367_s12), 47  ;;  %v6847_v51 = vld [vmem:[%s10162_s3 + $0xa4] ss:$16 sps:$4 sm:$0xff]   ;;  %v6850_v52 = vld [vmem:[%s10162_s3 + $0xac] ss:$16 sps:$4 sm:$0xff]   ;;  %s10180_s29 = sshll.u32 %s7573_s17, 7 }
  0x1e   : > { %s6557_s30 = sshll.u32 %s10268_s12, 3  ;;  %v6845_v53 = vld [vmem:[%s10162_s3 + $0xa0] ss:$16 sps:$4 sm:$0xff]   ;;  %v6848_v54 = vld [vmem:[%s10162_s3 + $0xa8] ss:$16 sps:$4 sm:$0xff]   ;;  %s5570_s20 = scalar_lea.hbm %s10169_s10, %s10180_s29 }
  0x1f   : > { %v6743_v0 = vld [vmem:[%s10186_s1 + $0xe4] ss:$16 sps:$4 sm:$0xff]   ;;  %v6745_v1 = vld [vmem:[%s10186_s1 + $0xec] ss:$16 sps:$4 sm:$0xff]   ;;  %v6747_v2 = vld [vmem:[%s10186_s1 + $0xe0] ss:$16 sps:$4 sm:$0xff]  }
  0x20   : > { %791 = vmatprep.subr.bf16.mxu0 %v6743_v0  ;;  %v6748_v3 = vld [vmem:[%s10186_s1 + $0xe8] ss:$16 sps:$4 sm:$0xff]   ;;  %944 = vmatprep.subr.bf16.mxu1 %v6745_v1  ;;  %v6749_v4 = vld [vmem:[%s10186_s1 + $0xc4] ss:$16 sps:$4 sm:$0xff]   ;;  %v6751_v5 = vld [vmem:[%s10186_s1 + $0xcc] ss:$16 sps:$4 sm:$0xff]   ;;  %s7682_s12 = scalar_lea.vmem %s10187_s0, %s6557_s30 }
  0x21   : > { %792 = vmatpush1.bf16.msra.mxu0 %v6747_v2  ;;  %945 = vmatpush1.bf16.msra.mxu1 %v6748_v3  ;;  %v6753_v6 = vld [vmem:[%s10186_s1 + $0xc0] ss:$16 sps:$4 sm:$0xff]   ;;  %v6754_v7 = vld [vmem:[%s10186_s1 + $0xc8] ss:$16 sps:$4 sm:$0xff]   ;;  %v6755_v8 = vld [vmem:[%s10186_s1 + $0xa4] ss:$16 sps:$4 sm:$0xff]  }
  0x22   : > { %793 = vmatprep.subr.bf16.mxu0 %v6749_v4  ;;  %946 = vmatprep.subr.bf16.mxu1 %v6751_v5  ;;  %v6757_v9 = vld [vmem:[%s10186_s1 + $0xac] ss:$16 sps:$4 sm:$0xff]   ;;  %v6759_v10 = vld [vmem:[%s10186_s1 + $0xa0] ss:$16 sps:$4 sm:$0xff]   ;;  %v6760_v11 = vld [vmem:[%s10186_s1 + $0xa8] ss:$16 sps:$4 sm:$0xff]  }
  0x23   : > { %v6761_v12 = vld [vmem:[%s10186_s1 + $0x84] ss:$16 sps:$4 sm:$0xff]   ;;  %v6763_v13 = vld [vmem:[%s10186_s1 + $0x8c] ss:$16 sps:$4 sm:$0xff]   ;;  %v6765_v14 = vld [vmem:[%s10186_s1 + $0x80] ss:$16 sps:$4 sm:$0xff]  }
  0x24   : > { %v6766_v15 = vld [vmem:[%s10186_s1 + $0x88] ss:$16 sps:$4 sm:$0xff]   ;;  %v6767_v16 = vld [vmem:[%s10186_s1 + $0x64] ss:$16 sps:$4 sm:$0xff]   ;;  %v6769_v17 = vld [vmem:[%s10186_s1 + $0x6c] ss:$16 sps:$4 sm:$0xff]  }
  0x25   : > { %794 = vmatpush1.bf16.msra.mxu0 %v6753_v6  ;;  %947 = vmatpush1.bf16.msra.mxu1 %v6754_v7  ;;  %v6771_v18 = vld [vmem:[%s10186_s1 + $0x60] ss:$16 sps:$4 sm:$0xff]   ;;  %v6772_v19 = vld [vmem:[%s10186_s1 + $0x68] ss:$16 sps:$4 sm:$0xff]   ;;  %v6773_v20 = vld [vmem:[%s10186_s1 + $0x44] ss:$16 sps:$4 sm:$0xff]  }
  0x26   : > { %795 = vmatprep.subr.bf16.mxu0 %v6755_v8  ;;  %948 = vmatprep.subr.bf16.mxu1 %v6757_v9  ;;  %v6775_v21 = vld [vmem:[%s10186_s1 + $0x4c] ss:$16 sps:$4 sm:$0xff]   ;;  %v6777_v22 = vld [vmem:[%s10186_s1 + $0x40] ss:$16 sps:$4 sm:$0xff]   ;;  %v6778_v23 = vld [vmem:[%s10186_s1 + $0x48] ss:$16 sps:$4 sm:$0xff]  }
  0x27   : > { %v6779_v24 = vld [vmem:[%s10186_s1 + $0x24] ss:$16 sps:$4 sm:$0xff]   ;;  %v6781_v25 = vld [vmem:[%s10186_s1 + $0x2c] ss:$16 sps:$4 sm:$0xff]   ;;  %v6783_v26 = vld [vmem:[%s10186_s1 + $0x20] ss:$16 sps:$4 sm:$0xff]  }
  0x28   : > { %v6784_v27 = vld [vmem:[%s10186_s1 + $0x28] ss:$16 sps:$4 sm:$0xff]   ;;  %v6785_v28 = vld [vmem:[%s10186_s1 + $0x4] ss:$16 sps:$4 sm:$0xff]   ;;  %v6787_v29 = vld [vmem:[%s10186_s1 + $0xc] ss:$16 sps:$4 sm:$0xff]  }
  0x29   : > { %796 = vmatpush1.bf16.msra.mxu0 %v6759_v10  ;;  %949 = vmatpush1.bf16.msra.mxu1 %v6760_v11  ;;  %v6799_v30 = vld [vmem:[%s7682_s12 + $0x4] ss:$8 sps:$4 sm:$0xff]   ;;  %v6789_v31 = vld [vmem:[%s10186_s1] ss:$16 sps:$4 sm:$0xff]   ;;  %v6790_v32 = vld [vmem:[%s10186_s1 + $0x8] ss:$16 sps:$4 sm:$0xff]  }
  0x2a   : > { %797 = vmatprep.subr.bf16.mxu0 %v6761_v12  ;;  %950 = vmatprep.subr.bf16.mxu1 %v6763_v13  ;;  %v6791_v33 = vld [vmem:[%s10186_s1 + $0x104] ss:$16 sps:$4 sm:$0x3f]   ;;  %v6793_v34 = vld [vmem:[%s10186_s1 + $0x10c] ss:$16 sps:$4 sm:$0x3f]  }
  0x2b   : > { %5732 = vmatprep.mubr.msk.bf16.mxu0 %vm741_vm0, %v6799_v30  ;;  %5745 = vmatprep.mubr.msk.bf16.mxu1 %vm741_vm0, %v6799_v30  ;;  %v6795_v35 = vld [vmem:[%s10186_s1 + $0x100] ss:$16 sps:$4 sm:$0x3f]   ;;  %v6796_v36 = vld [vmem:[%s10186_s1 + $0x108] ss:$16 sps:$4 sm:$0x3f]  }
  0x2c   : > { %v780_v37 = vsel %vm778_vm1, %v6795_v35, 0  ;;  %v786_v38 = vsel %vm778_vm1, %v6796_v36, 0  ;;  %v6797_v39 = vld [vmem:[%s7682_s12] ss:$8 sps:$4 sm:$0xff]   ;;  %v6800_v40 = vld [vmem:[%s7682_s12 + $0x14] ss:$8 sps:$4 sm:$0xff]  }
  0x2d   : > { %798 = vmatpush1.bf16.msra.mxu0 %v6765_v14  ;;  %951 = vmatpush1.bf16.msra.mxu1 %v6766_v15  ;;  %v6802_v41 = vld [vmem:[%s7682_s12 + $0x10] ss:$8 sps:$4 sm:$0xff]   ;;  %v6803_v46 = vld [vmem:[%s7682_s12 + $0x24] ss:$8 sps:$4 sm:$0xff]   ;;  %v6805_v56 = vld [vmem:[%s7682_s12 + $0x20] ss:$8 sps:$4 sm:$0xff]  }
  0x2e   : > { %799 = vmatprep.subr.bf16.mxu0 %v6767_v16  ;;  %952 = vmatprep.subr.bf16.mxu1 %v6769_v17  ;;  %v6853_v55 = vld [vmem:[%s10162_s3 + $0x84] ss:$16 sps:$4 sm:$0xff]   ;;  %v6851_v58 = vld [vmem:[%s10162_s3 + $0x80] ss:$16 sps:$4 sm:$0xff]   ;;  %v6856_v59 = vld [vmem:[%s10162_s3 + $0x8c] ss:$16 sps:$4 sm:$0xff]  }
  0x2f   : > { %v6806_v57 = vld [vmem:[%s7682_s12 + $0x34] ss:$8 sps:$4 sm:$0xff]   ;;  %v6854_v60 = vld [vmem:[%s10162_s3 + $0x88] ss:$16 sps:$4 sm:$0xff]   ;;  %v6857_v62 = vld [vmem:[%s10162_s3 + $0x60] ss:$16 sps:$4 sm:$0xff]  }
  0x30   : > { %v6859_v61 = vld [vmem:[%s10162_s3 + $0x64] ss:$16 sps:$4 sm:$0xff]   ;;  %v6862_v63 = vld [vmem:[%s10162_s3 + $0x6c] ss:$16 sps:$4 sm:$0xff]   ;;  %v6860_v0 = vld [vmem:[%s10162_s3 + $0x68] ss:$16 sps:$4 sm:$0xff]  }
  0x31   : > { %800 = vmatpush1.bf16.msra.mxu0 %v6771_v18  ;;  %953 = vmatpush1.bf16.msra.mxu1 %v6772_v19  ;;  %v6865_v1 = vld [vmem:[%s10162_s3 + $0x44] ss:$16 sps:$4 sm:$0xff]   ;;  %v6808_v2 = vld [vmem:[%s7682_s12 + $0x30] ss:$8 sps:$4 sm:$0xff]   ;;  %v6868_v5 = vld [vmem:[%s10162_s3 + $0x4c] ss:$16 sps:$4 sm:$0xff]  }
  0x32   : > { %801 = vmatprep.subr.bf16.mxu0 %v6773_v20  ;;  %954 = vmatprep.subr.bf16.mxu1 %v6775_v21  ;;  %v6809_v3 = vld [vmem:[%s7682_s12 + $0x44] ss:$8 sps:$4 sm:$0xff]   ;;  %v6863_v4 = vld [vmem:[%s10162_s3 + $0x40] ss:$16 sps:$4 sm:$0xff]   ;;  %v6866_v6 = vld [vmem:[%s10162_s3 + $0x48] ss:$16 sps:$4 sm:$0xff]  }
  0x33   : > { %v6811_v7 = vld [vmem:[%s7682_s12 + $0x40] ss:$8 sps:$4 sm:$0xff]   ;;  %v6812_v8 = vld [vmem:[%s7682_s12 + $0x54] ss:$8 sps:$4 sm:$0xff]   ;;  %v6814_v9 = vld [vmem:[%s7682_s12 + $0x50] ss:$8 sps:$4 sm:$0xff]  }
  0x34   : > { %v6815_v10 = vld [vmem:[%s7682_s12 + $0x64] ss:$8 sps:$4 sm:$0xff]   ;;  %v6817_v11 = vld [vmem:[%s7682_s12 + $0x60] ss:$8 sps:$4 sm:$0xff]   ;;  %v6818_v12 = vld [vmem:[%s7682_s12 + $0x74] ss:$8 sps:$4 sm:$0xff]  }
  0x35   : > { %802 = vmatpush1.bf16.msra.mxu0 %v6777_v22  ;;  %955 = vmatpush1.bf16.msra.mxu1 %v6778_v23  ;;  %v6820_v13 = vld [vmem:[%s7682_s12 + $0x70] ss:$8 sps:$4 sm:$0xff]   ;;  %v6821_v14 = vld [vmem:[%s7682_s12 + $0x84] ss:$8 sps:$4 sm:$0xff]   ;;  %v6823_v15 = vld [vmem:[%s7682_s12 + $0x80] ss:$8 sps:$4 sm:$0xff]  }
  0x36   : > { %803 = vmatprep.subr.bf16.mxu0 %v6779_v24  ;;  %956 = vmatprep.subr.bf16.mxu1 %v6781_v25  ;;  %v6824_v16 = vld [vmem:[%s7682_s12 + $0x94] ss:$8 sps:$4 sm:$0xff]   ;;  %v6826_v17 = vld [vmem:[%s7682_s12 + $0x90] ss:$8 sps:$4 sm:$0xff]   ;;  %v6827_v18 = vld [vmem:[%s7682_s12 + $0xa4] ss:$8 sps:$4 sm:$0xff]  }
  0x37   : > { %v6869_v19 = vld [vmem:[%s10162_s3 + $0x20] ss:$16 sps:$4 sm:$0xff]   ;;  %v6871_v20 = vld [vmem:[%s10162_s3 + $0x24] ss:$16 sps:$4 sm:$0xff]   ;;  %v6872_v21 = vld [vmem:[%s10162_s3 + $0x28] ss:$16 sps:$4 sm:$0xff]  }
  0x38   : > { %v6874_v22 = vld [vmem:[%s10162_s3 + $0x2c] ss:$16 sps:$4 sm:$0xff]   ;;  %v6875_v23 = vld [vmem:[%s10162_s3] ss:$16 sps:$4 sm:$0xff]   ;;  %v6877_v24 = vld [vmem:[%s10162_s3 + $0x4] ss:$16 sps:$4 sm:$0xff]  }
  0x39   : > { %804 = vmatpush1.bf16.msra.mxu0 %v6783_v26  ;;  %957 = vmatpush1.bf16.msra.mxu1 %v6784_v27  ;;  %v6878_v25 = vld [vmem:[%s10162_s3 + $0x8] ss:$16 sps:$4 sm:$0xff]   ;;  %v6880_v27 = vld [vmem:[%s10162_s3 + $0xc] ss:$16 sps:$4 sm:$0xff]   ;;  %v6883_v30 = vld [vmem:[%s10162_s3 + $0x1e4] ss:$16 sps:$4 sm:$0xff]  }
  0x3a   : > { %805 = vmatprep.subr.bf16.mxu0 %v6785_v28  ;;  %958 = vmatprep.subr.bf16.mxu1 %v6787_v29  ;;  %v6829_v26 = vld [vmem:[%s7682_s12 + $0xa0] ss:$8 sps:$4 sm:$0xff]   ;;  %v6830_v28 = vld [vmem:[%s7682_s12 + $0xb4] ss:$8 sps:$4 sm:$0xff]   ;;  %s5546_s30 = scalar_lea.sflag [#allocation6], %s10083_s27  ;;  %s7495_s22 = smov [#allocation5]  }
  0x3b   : > { %v6881_v29 = vld [vmem:[%s10162_s3 + $0x1e0] ss:$16 sps:$4 sm:$0xff]   ;;  %v6889_v35 = vld [vmem:[%s10162_s3 + $0x1c4] ss:$16 sps:$4 sm:$0xff]   ;;  %v6890_v36 = vld [vmem:[%s10162_s3 + $0x1c8] ss:$16 sps:$4 sm:$0xff]  }
  0x3c   : > { %s7405_s26 = sshll.u32 %s7495_s22, 4  ;;  %s7406_s26 = int_to_ptr.vmem [resolvable:$false] %s7405_s26 }
  0x3d   : > { %806 = vmatpush1.bf16.msra.mxu0 %v6789_v31  ;;  %959 = vmatpush1.bf16.msra.mxu1 %v6790_v32  ;;  %v6884_v31 = vld [vmem:[%s10162_s3 + $0x1e8] ss:$16 sps:$4 sm:$0xff]   ;;  %v6886_v32 = vld [vmem:[%s10162_s3 + $0x1ec] ss:$16 sps:$4 sm:$0xff]  }
  0x3e   : > { %5731 = vmatprep.subr.msk.bf16.mxu0 %vm778_vm1, %v6791_v33  ;;  %5744 = vmatprep.subr.msk.bf16.mxu1 %vm778_vm1, %v6793_v34  ;;  %v6832_v33 = vld [vmem:[%s7682_s12 + $0xb0] ss:$8 sps:$4 sm:$0xff]   ;;  %s366_s12 = scalar_lea.vmem [#allocation5], %s10179_s28  ;;  %s7407_s28 = scalar_lea.vmem %s7406_s26, 256 }
  0x3f   : > { %v6887_v34 = vld [vmem:[%s10162_s3 + $0x1c0] ss:$16 sps:$4 sm:$0xff]   ;;  %s5572_s21 = sshll.u32 %s366_s12, 4  ;;  %s5573_s21 = int_to_ptr.vmem [resolvable:$true] %s5572_s21 }
  0x40   : > { %s7401_s25 = scalar_lea.vmem %s5573_s21, 128  ;;  %p7408_p0 = scmp.lt.s32.totalorder %s5573_s21, %s7406_s26 }
  0x41   : > { %822 = vmatpush2.bf16.msra.mxu0 %v780_v37  ;;  %975 = vmatpush2.bf16.msra.mxu1 %v786_v38  ;;  %v6892_v37 = vld [vmem:[%s10162_s3 + $0x1cc] ss:$16 sps:$4 sm:$0xff]   ;;  %v6893_v38 = vld [vmem:[%s10162_s3 + $0x1a0] ss:$16 sps:$4 sm:$0xff]   ;;  %p7402_p11 = scmp.ne.s32.totalorder %s5573_s21, %s7401_s25  ;;  %p7409_p1 = scmp.lt.s32.totalorder %s7407_s28, %s7401_s25 }
  0x42   : > { %1756 = vmatprep.subr.bf16.mxu0 %v6835_v43  ;;  %1839 = vmatprep.subr.bf16.mxu1 %v6838_v45  ;;  %v6901_v43 = vld [vmem:[%s10162_s3 + $0x184] ss:$16 sps:$4 sm:$0xff]   ;;  %v6904_v45 = vld [vmem:[%s10162_s3 + $0x18c] ss:$16 sps:$4 sm:$0xff]  }
  0x43   : > { %p7403_p12 = pnand %p7402_p11, %p7590_p5  ;;  %p7410_p2 = por %p7409_p1, %p7408_p0 }
  0x44   : > { %824 = vmatmul.mubr.bf16.vlgmr.msra.gmra.mxu0 %v6797_v39  ;;  %977 = vmatmul.mubr.bf16.vlgmr.msra.gmra.mxu1 %v6797_v39  ;;  %v6895_v39 = vld [vmem:[%s10162_s3 + $0x1a4] ss:$16 sps:$4 sm:$0xff]  }
  0x45   : > { %5733 = vmatprep.mubr.msk.bf16.mxu0 %vm741_vm0, %v6800_v40  ;;  %5746 = vmatprep.mubr.msk.bf16.mxu1 %vm741_vm0, %v6800_v40  ;;  %v6896_v40 = vld [vmem:[%s10162_s3 + $0x1a8] ss:$16 sps:$4 sm:$0xff]   ;;  %p7404_p13 = pneg %p7403_p12 }
  0x46   : > { %1757 = vmatpush1.bf16.msra.mxu0 %v6833_v42  ;;  %1840 = vmatpush1.bf16.msra.mxu1 %v6836_v44  ;;  %v6899_v42 = vld [vmem:[%s10162_s3 + $0x180] ss:$16 sps:$4 sm:$0xff]   ;;  %v6902_v44 = vld [vmem:[%s10162_s3 + $0x188] ss:$16 sps:$4 sm:$0xff]  }
  0x47   : > { %1758 = vmatprep.subr.bf16.mxu0 %v6841_v47  ;;  %1841 = vmatprep.subr.bf16.mxu1 %v6844_v49  ;;  %v6907_v47 = vld [vmem:[%s10162_s3 + $0x164] ss:$16 sps:$4 sm:$0xff]   ;;  %v6910_v49 = vld [vmem:[%s10162_s3 + $0x16c] ss:$16 sps:$4 sm:$0xff]   ;;  %p7411_p3 = pnand %p7410_p2, %p7404_p13 }
  0x4a   : > { %1759 = vmatpush1.bf16.msra.mxu0 %v6839_v48  ;;  %1842 = vmatpush1.bf16.msra.mxu1 %v6842_v50  ;;  %v6908_v48 = vld [vmem:[%s10162_s3 + $0x168] ss:$16 sps:$4 sm:$0xff]   ;;  %v6911_v50 = vld [vmem:[%s10162_s3 + $0x140] ss:$16 sps:$4 sm:$0xff]  }
  0x4b   : > { %1760 = vmatprep.subr.bf16.mxu0 %v6847_v51  ;;  %1843 = vmatprep.subr.bf16.mxu1 %v6850_v52  ;;  %v6913_v51 = vld [vmem:[%s10162_s3 + $0x144] ss:$16 sps:$4 sm:$0xff]   ;;  %v6914_v52 = vld [vmem:[%s10162_s3 + $0x148] ss:$16 sps:$4 sm:$0xff]  }
  0x4c   : > { %834 = vmatmul.mubr.bf16.gmra.mxu0 %v6802_v41  ;;  %987 = vmatmul.mubr.bf16.gmra.mxu1 %v6802_v41  ;;  %v6898_v41 = vld [vmem:[%s10162_s3 + $0x1ac] ss:$16 sps:$4 sm:$0xff]  }
  0x4d   : > { %5734 = vmatprep.mubr.msk.bf16.mxu0 %vm741_vm0, %v6803_v46  ;;  %5747 = vmatprep.mubr.msk.bf16.mxu1 %vm741_vm0, %v6803_v46  ;;  %v6905_v46 = vld [vmem:[%s10162_s3 + $0x160] ss:$16 sps:$4 sm:$0xff]  }
  0x4e   : > { %1761 = vmatpush1.bf16.msra.mxu0 %v6845_v53  ;;  %1844 = vmatpush1.bf16.msra.mxu1 %v6848_v54  ;;  %v6916_v53 = vld [vmem:[%s10162_s3 + $0x14c] ss:$16 sps:$4 sm:$0xff]   ;;  %v6919_v54 = vld [vmem:[%s10162_s3 + $0x124] ss:$16 sps:$4 sm:$0xff]  }
  0x4f   : > { %1762 = vmatprep.subr.bf16.mxu0 %v6853_v55  ;;  %1845 = vmatprep.subr.bf16.mxu1 %v6856_v59  ;;  %v6922_v55 = vld [vmem:[%s10162_s3 + $0x12c] ss:$16 sps:$4 sm:$0xff]  }
  0x50   : > { %v6928_v59 = vld [vmem:[%s10162_s3 + $0x10c] ss:$16 sps:$4 sm:$0xff]  }
  0x52   : > { %1763 = vmatpush1.bf16.msra.mxu0 %v6851_v58  ;;  %1846 = vmatpush1.bf16.msra.mxu1 %v6854_v60  ;;  %v6925_v58 = vld [vmem:[%s10162_s3 + $0x104] ss:$16 sps:$4 sm:$0xff]   ;;  %v6923_v60 = vld [vmem:[%s10162_s3 + $0x100] ss:$16 sps:$4 sm:$0xff]  }
  0x53   : > { %1764 = vmatprep.subr.bf16.mxu0 %v6859_v61  ;;  %1847 = vmatprep.subr.bf16.mxu1 %v6862_v63  ;;  %v6926_v61 = vld [vmem:[%s10162_s3 + $0x108] ss:$16 sps:$4 sm:$0xff]   ;;  %v6934_v63 = vld [vmem:[%s10162_s3 + $0x2ec] ss:$16 sps:$4 sm:$0xff]  }
  0x54   : > { %844 = vmatmul.mubr.bf16.gmra.mxu0 %v6805_v56  ;;  %997 = vmatmul.mubr.bf16.gmra.mxu1 %v6805_v56  ;;  %v6917_v56 = vld [vmem:[%s10162_s3 + $0x120] ss:$16 sps:$4 sm:$0xff]  }
  0x55   : > { %5735 = vmatprep.mubr.msk.bf16.mxu0 %vm741_vm0, %v6806_v57  ;;  %5748 = vmatprep.mubr.msk.bf16.mxu1 %vm741_vm0, %v6806_v57  ;;  %v6920_v57 = vld [vmem:[%s10162_s3 + $0x128] ss:$16 sps:$4 sm:$0xff]  }
  0x56   : > { %1765 = vmatpush1.bf16.msra.mxu0 %v6857_v62  ;;  %1848 = vmatpush1.bf16.msra.mxu1 %v6860_v0  ;;  %v6931_v62 = vld [vmem:[%s10162_s3 + $0x2e4] ss:$16 sps:$4 sm:$0xff]  }
  0x57   : > { %1766 = vmatprep.subr.bf16.mxu0 %v6865_v1  ;;  %1849 = vmatprep.subr.bf16.mxu1 %v6868_v5 }
  0x5a   : > { %1767 = vmatpush1.bf16.msra.mxu0 %v6863_v4  ;;  %1850 = vmatpush1.bf16.msra.mxu1 %v6866_v6 }
  0x5b   : > { %1768 = vmatprep.subr.bf16.mxu0 %v6871_v20  ;;  %1851 = vmatprep.subr.bf16.mxu1 %v6874_v22 }
  0x5c   : > { %854 = vmatmul.mubr.bf16.gmra.mxu0 %v6808_v2  ;;  %1007 = vmatmul.mubr.bf16.gmra.mxu1 %v6808_v2 }
  0x5d   : > { %5736 = vmatprep.mubr.msk.bf16.mxu0 %vm741_vm0, %v6809_v3  ;;  %5749 = vmatprep.mubr.msk.bf16.mxu1 %vm741_vm0, %v6809_v3 }
  0x5e   : > { %1769 = vmatpush1.bf16.msra.mxu0 %v6869_v19  ;;  %1852 = vmatpush1.bf16.msra.mxu1 %v6872_v21 }
  0x5f   : > { %1770 = vmatprep.subr.bf16.mxu0 %v6877_v24  ;;  %1853 = vmatprep.subr.bf16.mxu1 %v6880_v27 }
  0x62   : > { %1771 = vmatpush1.bf16.msra.mxu0 %v6875_v23  ;;  %1854 = vmatpush1.bf16.msra.mxu1 %v6878_v25 }
  0x63   : > { %1772 = vmatprep.subr.bf16.mxu0 %v6883_v30  ;;  %1855 = vmatprep.subr.bf16.mxu1 %v6886_v32 }
  0x64   : > { %864 = vmatmul.mubr.bf16.gmra.mxu0 %v6811_v7  ;;  %1017 = vmatmul.mubr.bf16.gmra.mxu1 %v6811_v7 }
  0x65   : > { %5737 = vmatprep.mubr.msk.bf16.mxu0 %vm741_vm0, %v6812_v8  ;;  %5750 = vmatprep.mubr.msk.bf16.mxu1 %vm741_vm0, %v6812_v8 }
  0x66   : > { %1773 = vmatpush2.bf16.msra.mxu0 %v6881_v29  ;;  %1856 = vmatpush2.bf16.msra.mxu1 %v6884_v31 }
  0x67   : > { %1774 = vmatprep.subr.bf16.mxu0 %v6889_v35  ;;  %1857 = vmatprep.subr.bf16.mxu1 %v6892_v37 }
  0x6a   : > { %1775 = vmatpush2.bf16.msra.mxu0 %v6887_v34  ;;  %1858 = vmatpush2.bf16.msra.mxu1 %v6890_v36 }
  0x6b   : > { %1776 = vmatprep.subr.bf16.mxu0 %v6895_v39  ;;  %1859 = vmatprep.subr.bf16.mxu1 %v6898_v41  ;;  %v435_v39 = vld [vmem:[%s10161_s2] sm:$0xf] }
  0x6c   : > { %874 = vmatmul.mubr.bf16.gmra.mxu0 %v6814_v9  ;;  %1027 = vmatmul.mubr.bf16.gmra.mxu1 %v6814_v9 }
  0x6d   : > { %5738 = vmatprep.mubr.msk.bf16.mxu0 %vm741_vm0, %v6815_v10  ;;  %5751 = vmatprep.mubr.msk.bf16.mxu1 %vm741_vm0, %v6815_v10 }
  0x6e   : > { %1777 = vmatpush2.bf16.msra.mxu0 %v6893_v38  ;;  %1860 = vmatpush2.bf16.msra.mxu1 %v6896_v40 }
  0x6f   : > { %1778 = vmatprep.subr.bf16.mxu0 %v6901_v43  ;;  %1861 = vmatprep.subr.bf16.mxu1 %v6904_v45 }
  0x72   : > { %1779 = vmatpush2.bf16.msra.mxu0 %v6899_v42  ;;  %1862 = vmatpush2.bf16.msra.mxu1 %v6902_v44 }
  0x73   : > { %1780 = vmatprep.subr.bf16.mxu0 %v6907_v47  ;;  %1863 = vmatprep.subr.bf16.mxu1 %v6910_v49 }
  0x74   : > { %884 = vmatmul.mubr.bf16.gmra.mxu0 %v6817_v11  ;;  %1037 = vmatmul.mubr.bf16.gmra.mxu1 %v6817_v11 }
  0x75   : > { %5739 = vmatprep.mubr.msk.bf16.mxu0 %vm741_vm0, %v6818_v12  ;;  %5752 = vmatprep.mubr.msk.bf16.mxu1 %vm741_vm0, %v6818_v12 }
  0x76   : > { %1781 = vmatpush2.bf16.msra.mxu0 %v6905_v46  ;;  %1864 = vmatpush2.bf16.msra.mxu1 %v6908_v48 }
  0x77   : > { %1782 = vmatprep.subr.bf16.mxu0 %v6913_v51  ;;  %1865 = vmatprep.subr.bf16.mxu1 %v6916_v53 }
  0x7a   : > { %1783 = vmatpush2.bf16.msra.mxu0 %v6911_v50  ;;  %1866 = vmatpush2.bf16.msra.mxu1 %v6914_v52 }
  0x7b   : > { %1784 = vmatprep.subr.bf16.mxu0 %v6919_v54  ;;  %1867 = vmatprep.subr.bf16.mxu1 %v6922_v55 }
  0x7c   : > { %894 = vmatmul.mubr.bf16.gmra.mxu0 %v6820_v13  ;;  %1047 = vmatmul.mubr.bf16.gmra.mxu1 %v6820_v13 }
  0x7d   : > { %5740 = vmatprep.mubr.msk.bf16.mxu0 %vm741_vm0, %v6821_v14  ;;  %5753 = vmatprep.mubr.msk.bf16.mxu1 %vm741_vm0, %v6821_v14 }
  0x7e   : > { %1785 = vmatpush2.bf16.msra.mxu0 %v6917_v56  ;;  %1868 = vmatpush2.bf16.msra.mxu1 %v6920_v57 }
  0x7f   : > { %1786 = vmatprep.subr.bf16.mxu0 %v6925_v58  ;;  %1869 = vmatprep.subr.bf16.mxu1 %v6928_v59 }
  0x82   : > { %1787 = vmatpush2.bf16.msra.mxu0 %v6923_v60  ;;  %1870 = vmatpush2.bf16.msra.mxu1 %v6926_v61 }
  0x83   : > { %2398 = vmatprep.subr.bf16.mxu0 %v6931_v62  ;;  %2481 = vmatprep.subr.bf16.mxu1 %v6934_v63 }
  0x84   : > { %904 = vmatmul.mubr.bf16.gmra.mxu0 %v6823_v15  ;;  %1057 = vmatmul.mubr.bf16.gmra.mxu1 %v6823_v15 }
  0x85   : > { %5741 = vmatprep.mubr.msk.bf16.mxu0 %vm741_vm0, %v6824_v16  ;;  %5754 = vmatprep.mubr.msk.bf16.mxu1 %vm741_vm0, %v6824_v16 }
  0x8c   : > { %914 = vmatmul.mubr.bf16.gmra.mxu0 %v6826_v17  ;;  %1067 = vmatmul.mubr.bf16.gmra.mxu1 %v6826_v17 }
  0x8d   : > { %5742 = vmatprep.mubr.msk.bf16.mxu0 %vm741_vm0, %v6827_v18  ;;  %5755 = vmatprep.mubr.msk.bf16.mxu1 %vm741_vm0, %v6827_v18 }
  0x94   : > { %924 = vmatmul.mubr.bf16.gmra.mxu0 %v6829_v26  ;;  %1077 = vmatmul.mubr.bf16.gmra.mxu1 %v6829_v26  ;;  %v437_v26 = vlaneseq }
  0x95   : > { %5743 = vmatprep.mubr.msk.bf16.mxu0 %vm741_vm0, %v6830_v28  ;;  %5756 = vmatprep.mubr.msk.bf16.mxu1 %vm741_vm0, %v6830_v28 }
  0x96   : > { %v7960_v31 = vshrl.u32 %v437_v26, 7 }
  0x98   : > { %10188 = vst [vmem:[#allocation10_spill] sm:$0xff] %v7960_v31  ;;  %v10173_v36 = vsub.s32 0, %v7960_v31  ;;  %v10172_v37 = vsub.s32 2, %v7960_v31  ;;  %v10171_v38 = vsub.s32 1, %v7960_v31  ;;  %v10170_v40 = vsub.s32 3, %v7960_v31 }
  0x9a   : > { %v7971_v45 = vrot.slane %v435_v39, %v10173_v36  ;;  %v7975_v46 = vrot.slane %v435_v39, %v10172_v37  ;;  %v7979_v47 = vrot.slane %v435_v39, %v10171_v38  ;;  %v7983_v48 = vrot.slane %v435_v39, %v10170_v40 }
  0x9c   : > { %934 = vmatmul.mubr.bf16.gmra.mxu0 %v6832_v33  ;;  %1087 = vmatmul.mubr.bf16.gmra.mxu1 %v6832_v33 }
 0x104   : > { %v825_v0 = vpop.f32.mrf.mxu0  ;;  %v978_v1 = vpop.f32.mrf.mxu1 }
 0x105   : > { %v826_v53 = vadd.f32 %v825_v0, %v7971_v45  ;;  %v979_v54 = vadd.f32 %v978_v1, %v7975_v46 }
 0x106   : > { %v827_v2 = vpop.f32.mrf.mxu0  ;;  %v980_v3 = vpop.f32.mrf.mxu1 }
 0x107   : > { %v828_v55 = vadd.f32 %v827_v2, %v7979_v47  ;;  %v7991_v56 = vadd.f32 %v980_v3, %v7983_v48 }
 0x108   : > { %v829_v4 = vpop.f32.mrf.mxu0  ;;  %v982_v5 = vpop.f32.mrf.mxu1 }
 0x109   : > { %v7994_v57 = vadd.f32 %v829_v4, %v7971_v45  ;;  %v7997_v58 = vadd.f32 %v982_v5, %v7975_v46 }
 0x10a   : > { %v831_v6 = vpop.f32.mrf.mxu0  ;;  %v984_v7 = vpop.f32.mrf.mxu1 }
 0x10b   : > { %v8000_v59 = vadd.f32 %v831_v6, %v7979_v47  ;;  %v8007_v62 = vadd.f32 %v984_v7, %v7983_v48 }
 0x10c   : > { %v835_v8 = vpop.f32.mrf.mxu0  ;;  %v988_v9 = vpop.f32.mrf.mxu1 }
 0x10d   : > { %v8010_v63 = vadd.f32 %v835_v8, %v7971_v45  ;;  %v8013_v0 = vadd.f32 %v988_v9, %v7975_v46 }
 0x10e   : > { %v837_v10 = vpop.f32.mrf.mxu0  ;;  %v990_v11 = vpop.f32.mrf.mxu1 }
 0x10f   : > { %v8016_v1 = vadd.f32 %v837_v10, %v7979_v47  ;;  %v8019_v2 = vadd.f32 %v990_v11, %v7983_v48 }
 0x110   : > { %v839_v12 = vpop.f32.mrf.mxu0  ;;  %v992_v13 = vpop.f32.mrf.mxu1 }
 0x111   : > { %v8022_v3 = vadd.f32 %v839_v12, %v7971_v45  ;;  %v8025_v4 = vadd.f32 %v992_v13, %v7975_v46 }
 0x112   : > { %v841_v14 = vpop.f32.mrf.mxu0  ;;  %v994_v15 = vpop.f32.mrf.mxu1 }
 0x113   : > { %v8028_v5 = vadd.f32 %v841_v14, %v7979_v47  ;;  %v8033_v8 = vadd.f32 %v994_v15, %v7983_v48 }
 0x114   : > { %v845_v16 = vpop.f32.mrf.mxu0  ;;  %v998_v17 = vpop.f32.mrf.mxu1 }
 0x115   : > { %v8036_v9 = vadd.f32 %v845_v16, %v7971_v45  ;;  %v8039_v10 = vadd.f32 %v998_v17, %v7975_v46 }
 0x116   : > { %v847_v18 = vpop.f32.mrf.mxu0  ;;  %v1000_v19 = vpop.f32.mrf.mxu1 }
 0x117   : > { %v8042_v11 = vadd.f32 %v847_v18, %v7979_v47  ;;  %v8045_v12 = vadd.f32 %v1000_v19, %v7983_v48 }
 0x118   : > { %v849_v20 = vpop.f32.mrf.mxu0  ;;  %v1002_v21 = vpop.f32.mrf.mxu1 }
 0x119   : > { %v8048_v13 = vadd.f32 %v849_v20, %v7971_v45  ;;  %v8051_v14 = vadd.f32 %v1002_v21, %v7975_v46 }
 0x11a   : > { %v851_v22 = vpop.f32.mrf.mxu0  ;;  %v1004_v23 = vpop.f32.mrf.mxu1 }
 0x11b   : > { %v8054_v15 = vadd.f32 %v851_v22, %v7979_v47  ;;  %v8061_v17 = vadd.f32 %v1004_v23, %v7983_v48 }
 0x11c   : > { %v855_v24 = vpop.f32.mrf.mxu0  ;;  %v1008_v25 = vpop.f32.mrf.mxu1 }
 0x11d   : > { %v8064_v18 = vadd.f32 %v855_v24, %v7971_v45  ;;  %v8067_v19 = vadd.f32 %v1008_v25, %v7975_v46 }
 0x11e   : > { %v857_v27 = vpop.f32.mrf.mxu0  ;;  %v1010_v28 = vpop.f32.mrf.mxu1 }
 0x11f   : > { %v8070_v20 = vadd.f32 %v857_v27, %v7979_v47  ;;  %v8073_v21 = vadd.f32 %v1010_v28, %v7983_v48 }
 0x120   : > { %v859_v29 = vpop.f32.mrf.mxu0  ;;  %v1012_v30 = vpop.f32.mrf.mxu1 }
 0x121   : > { %v8076_v22 = vadd.f32 %v859_v29, %v7971_v45  ;;  %v8079_v39 = vadd.f32 %v1012_v30, %v7975_v46 }
 0x122   : > { %v861_v32 = vpop.f32.mrf.mxu0  ;;  %v1014_v33 = vpop.f32.mrf.mxu1 }
 0x123   : > { %v8082_v23 = vadd.f32 %v861_v32, %v7979_v47  ;;  %v8085_v25 = vadd.f32 %v1014_v33, %v7983_v48 }
 0x124   : > { %v865_v34 = vpop.f32.mrf.mxu0  ;;  %v1018_v35 = vpop.f32.mrf.mxu1 }
 0x125   : > { %v8088_v27 = vadd.f32 %v865_v34, %v7971_v45  ;;  %v8093_v29 = vadd.f32 %v1018_v35, %v7975_v46 }
 0x126   : > { %v867_v41 = vpop.f32.mrf.mxu0  ;;  %v1020_v42 = vpop.f32.mrf.mxu1 }
 0x127   : > { %v8096_v30 = vadd.f32 %v867_v41, %v7979_v47  ;;  %v8099_v32 = vadd.f32 %v1020_v42, %v7983_v48 }
 0x128   : > { %v869_v43 = vpop.f32.mrf.mxu0  ;;  %v1022_v44 = vpop.f32.mrf.mxu1 }
 0x129   : > { %v8102_v37 = vadd.f32 %v869_v43, %v7971_v45  ;;  %v8105_v34 = vadd.f32 %v1022_v44, %v7975_v46 }
 0x12a   : > { %v871_v49 = vpop.f32.mrf.mxu0  ;;  %v1024_v50 = vpop.f32.mrf.mxu1 }
 0x12b   : > { %v8109_v35 = vadd.f32 %v871_v49, %v7979_v47  ;;  %v8112_v41 = vadd.f32 %v1024_v50, %v7983_v48 }
 0x12c   : > { %v875_v51 = vpop.f32.mrf.mxu0  ;;  %v7985_v52 = vpop.f32.mrf.mxu1 }
 0x12d   : > { %10192 = vst [vmem:[#allocation14_spill] sm:$0xff] %v8109_v35  ;;  %10193 = vst [vmem:[#allocation15_spill] sm:$0xff] %v8112_v41  ;;  %v8115_v42 = vadd.f32 %v875_v51, %v7971_v45 }
 0x12e   : > { %v8002_v60 = vpop.f32.mrf.mxu0  ;;  %v8004_v61 = vpop.f32.mrf.mxu1 }
 0x12f   : > { %10194 = vst [vmem:[#allocation16_spill] sm:$0xff] %v8115_v42  ;;  %v8130_v41 = vadd.f32 %v8002_v60, %v7979_v47 }
 0x130   : > { %v879_v6 = vpop.f32.mrf.mxu0  ;;  %v8030_v7 = vpop.f32.mrf.mxu1 }
 0x131   : > { %10189 = vst [vmem:[#allocation11_spill] sm:$0xff] %v8030_v7  ;;  %10196 = vst [vmem:[#allocation18_spill] sm:$0xff] %v8130_v41 }
 0x132   : > { %v8056_v16 = vpop.f32.mrf.mxu0  ;;  %v8058_v26 = vpop.f32.mrf.mxu1 }
 0x133   : > { %10190 = vst [vmem:[#allocation12_spill] sm:$0xff] %v8056_v16  ;;  %10191 = vst [vmem:[#allocation13_spill] sm:$0xff] %v8058_v26 }
 0x134   : > { %v885_v24 = vpop.f32.mrf.mxu0  ;;  %v1038_v40 = vpop.f32.mrf.mxu1 }
 0x135   : > { %v886_v28 = vadd.f32 %v885_v24, %v7971_v45  ;;  %v1039_v38 = vadd.f32 %v1038_v40, %v7975_v46 }
 0x136   : > { %v887_v33 = vpop.f32.mrf.mxu0  ;;  %v1040_v36 = vpop.f32.mrf.mxu1 }
 0x137   : > { %v1097_v24 = vmax.f32 %v826_v53, %v886_v28  ;;  %v1099_v31 = vmax.f32 %v979_v54, %v1039_v38  ;;  %v888_v40 = vadd.f32 %v887_v33, %v7979_v47  ;;  %v1041_v43 = vadd.f32 %v1040_v36, %v7983_v48 }
 0x138   : > { %v889_v26 = vpop.f32.mrf.mxu0  ;;  %v1042_v16 = vpop.f32.mrf.mxu1  ;;  %v8120_v38 = vadd.f32 %v7985_v52, %v7975_v46  ;;  %v8134_v52 = vadd.f32 %v8004_v61, %v7983_v48 }
 0x139   : > { %vm1145_vm2 = vcmp.ge.f32.partialorder %v1097_v24, 0.0  ;;  %v1193_v44 = vmul.f32 0.01, %v1097_v24  ;;  %vm1147_vm3 = vcmp.ge.f32.partialorder %v1099_v31, 0.0  ;;  %v1195_v53 = vmul.f32 0.01, %v1099_v31 }
 0x13a   : > { %10195 = vst [vmem:[#allocation17_spill] sm:$0xff] %v8120_v38  ;;  %v8122_v49 = vmax.f32 %v828_v55, %v888_v40  ;;  %v890_v50 = vadd.f32 %v889_v26, %v7971_v45  ;;  %v1043_v54 = vadd.f32 %v1042_v16, %v7975_v46  ;;  %v891_v51 = vpop.f32.mrf.mxu0  ;;  %v1044_v28 = vpop.f32.mrf.mxu1  ;;  %10197 = vst [vmem:[#allocation19_spill] sm:$0xff] %v8134_v52  ;;  %v10176_v38 = vmov 0.0  }
 0x13b   : > { %v1241_v33 = vsel %vm1145_vm2, %v1097_v24, %v1193_v44  ;;  %v1243_v36 = vsel %vm1147_vm3, %v1099_v31, %v1195_v53  ;;  %v892_v42 = vadd.f32 %v891_v51, %v7979_v47  ;;  %v1045_v7 = vadd.f32 %v1044_v28, %v7983_v48 }
 0x13c   : > { %v8137_v55 = vadd.f32 %v879_v6, %v7971_v45  ;;  %v8140_v16 = vmax.f32 %v7991_v56, %v1041_v43  ;;  %v895_v26 = vpop.f32.mrf.mxu0  ;;  %v1048_v31 = vpop.f32.mrf.mxu1  ;;  %v8142_v24 = vmax.f32 %v1241_v33, %v1243_v36  ;;  %v1101_v40 = vmax.f32 %v7994_v57, %v890_v50 }
 0x13d   : > { %v1103_v44 = vmax.f32 %v7997_v58, %v1043_v54  ;;  %v1102_v60 = vmax.f32 %v8000_v59, %v892_v42  ;;  %v8148_v53 = vmul.f32 0.01, %v8122_v49  ;;  %v1104_v61 = vmax.f32 %v8007_v62, %v1045_v7 }
 0x13e   : > { %10198 = vst [vmem:[#allocation20_spill] sm:$0xff] %v8137_v55  ;;  %v896_v6 = vadd.f32 %v895_v26, %v7971_v45  ;;  %v1049_v56 = vadd.f32 %v1048_v31, %v7975_v46  ;;  %v897_v43 = vpop.f32.mrf.mxu0  ;;  %v1050_v51 = vpop.f32.mrf.mxu1  ;;  %vm1149_vm4 = vcmp.ge.f32.partialorder %v1101_v40, 0.0  ;;  %v1197_v28 = vmul.f32 0.01, %v1101_v40 }
 0x13f   : > { %vm1151_vm5 = vcmp.ge.f32.partialorder %v1103_v44, 0.0  ;;  %v1199_v33 = vmul.f32 0.01, %v1103_v44  ;;  %vm1146_vm6 = vcmp.ge.f32.partialorder %v8122_v49, 0.0  ;;  %vm1150_vm7 = vcmp.ge.f32.partialorder %v1102_v60, 0.0 }
 0x140   : > { %v1198_v57 = vmul.f32 0.01, %v1102_v60  ;;  %vm1152_vm8 = vcmp.ge.f32.partialorder %v1104_v61, 0.0  ;;  %v1200_v58 = vmul.f32 0.01, %v1104_v61  ;;  %v899_v59 = vpop.f32.mrf.mxu0  ;;  %v1052_v42 = vpop.f32.mrf.mxu1  ;;  %v1245_v50 = vsel %vm1149_vm4, %v1101_v40, %v1197_v28 }
 0x141   : > { %v1247_v62 = vsel %vm1151_vm5, %v1103_v44, %v1199_v33  ;;  %v1105_v7 = vmax.f32 %v8010_v63, %v896_v6  ;;  %v1107_v54 = vmax.f32 %v8013_v0, %v1049_v56  ;;  %vm1148_vm9 = vcmp.ge.f32.partialorder %v8140_v16, 0.0 }
 0x142   : > { %v1196_v36 = vmul.f32 0.01, %v8140_v16  ;;  %v1246_v26 = vsel %vm1150_vm7, %v1102_v60, %v1198_v57  ;;  %v1248_v31 = vsel %vm1152_vm8, %v1104_v61, %v1200_v58  ;;  %v898_v55 = vadd.f32 %v897_v43, %v7979_v47  ;;  %v901_v52 = vpop.f32.mrf.mxu0  ;;  %v1054_v41 = vpop.f32.mrf.mxu1 }
 0x143   : > { %v8161_v35 = vpack.c.bf16 %v8142_v24, %v10176_v38  ;;  %v8163_v40 = vmax.f32 %v1245_v50, %v1247_v62  ;;  %vm1153_vm10 = vcmp.ge.f32.partialorder %v1105_v7, 0.0  ;;  %v1201_v63 = vmul.f32 0.01, %v1105_v7 }
 0x144   : > { %vm1155_vm11 = vcmp.ge.f32.partialorder %v1107_v54, 0.0  ;;  %v1203_v0 = vmul.f32 0.01, %v1107_v54  ;;  %v1106_v44 = vmax.f32 %v8016_v1, %v898_v55  ;;  %v1051_v60 = vadd.f32 %v1050_v51, %v7983_v48  ;;  %v905_v61 = vpop.f32.mrf.mxu0  ;;  %v1058_v6 = vpop.f32.mrf.mxu1 }
 0x145   : > { %v8167_v56 = vmax.f32 %v1246_v26, %v1248_v31  ;;  %v900_v43 = vadd.f32 %v899_v59, %v7971_v45  ;;  %v1053_v28 = vadd.f32 %v1052_v42, %v7975_v46  ;;  %v902_v33 = vadd.f32 %v901_v52, %v7979_v47 }
 0x146   : > { %v1249_v57 = vsel %vm1153_vm10, %v1105_v7, %v1201_v63  ;;  %vm1154_vm12 = vcmp.ge.f32.partialorder %v1106_v44, 0.0  ;;  %v1202_v58 = vmul.f32 0.01, %v1106_v44  ;;  %v1108_v50 = vmax.f32 %v8019_v2, %v1051_v60  ;;  %v907_v62 = vpop.f32.mrf.mxu0  ;;  %v1060_v38 = vpop.f32.mrf.mxu1 }
 0x147   : > { %v1251_v1 = vsel %vm1155_vm11, %v1107_v54, %v1203_v0  ;;  %v1109_v55 = vmax.f32 %v8022_v3, %v900_v43  ;;  %v1111_v51 = vmax.f32 %v8025_v4, %v1053_v28  ;;  %v1110_v26 = vmax.f32 %v8028_v5, %v902_v33 }
 0x148   : > { %v1250_v59 = vsel %vm1154_vm12, %v1106_v44, %v1202_v58  ;;  %vm1156_vm13 = vcmp.ge.f32.partialorder %v1108_v50, 0.0  ;;  %v1204_v42 = vmul.f32 0.01, %v1108_v50  ;;  %v1055_v52 = vadd.f32 %v1054_v41, %v7983_v48  ;;  %v909_v7 = vpop.f32.mrf.mxu0  ;;  %v1062_v31 = vpop.f32.mrf.mxu1 }
 0x149   : > { %vm1157_vm14 = vcmp.ge.f32.partialorder %v1109_v55, 0.0  ;;  %v1205_v63 = vmul.f32 0.01, %v1109_v55  ;;  %vm1159_vm15 = vcmp.ge.f32.partialorder %v1111_v51, 0.0  ;;  %v1207_v2 = vmul.f32 0.01, %v1111_v51 }
 0x14a   : > { %v8178_v60 = vmax.f32 %v1249_v57, %v1251_v1  ;;  %v1252_v54 = vsel %vm1156_vm13, %v1108_v50, %v1204_v42  ;;  %v1206_v0 = vmul.f32 0.01, %v1110_v26  ;;  %v1112_v3 = vmax.f32 %v8033_v8, %v1055_v52  ;;  %v8181_v4 = vpop.f32.mrf.mxu0  ;;  %v8183_v5 = vpop.f32.mrf.mxu1 }
 0x14b   : > { %v1253_v44 = vsel %vm1157_vm14, %v1109_v55, %v1205_v63  ;;  %v1255_v43 = vsel %vm1159_vm15, %v1111_v51, %v1207_v2  ;;  %vm1158_vm0 = vcmp.ge.f32.partialorder %v1110_v26, 0.0  ;;  %v1242_v41 = vsel %vm1146_vm6, %v8122_v49, %v8148_v53 }
 0x14c   : > { %v8189_v28 = vmax.f32 %v1250_v59, %v1252_v54  ;;  %v8191_v33 = vmax.f32 %v1253_v44, %v1255_v43  ;;  %vm1160_vm1 = vcmp.ge.f32.partialorder %v1112_v3, 0.0  ;;  %v1208_v57 = vmul.f32 0.01, %v1112_v3  ;;  %v8193_v58 = vpop.f32.mrf.mxu0  ;;  %v8195_v8 = vpop.f32.mrf.mxu1  ;;  %v6937_v54 = vld [vmem:[%s10162_s3 + $0x2c4] ss:$16 sps:$4 sm:$0xff]  }
 0x14d   : > { %v1244_v50 = vsel %vm1148_vm9, %v8140_v16, %v1196_v36  ;;  %v906_v1 = vadd.f32 %v905_v61, %v7971_v45  ;;  %v1059_v55 = vadd.f32 %v1058_v6, %v7975_v46  ;;  %v908_v49 = vadd.f32 %v907_v62, %v7979_v47  ;;  %v6929_v16 = vld [vmem:[%s10162_s3 + $0x2e0] ss:$16 sps:$4 sm:$0xff]  }
 0x14e   : > { %v1254_v53 = vsel %vm1158_vm0, %v1110_v26, %v1206_v0  ;;  %v8203_v51 = vmax.f32 %v1242_v41, %v1244_v50  ;;  %v1061_v59 = vadd.f32 %v1060_v38, %v7983_v48  ;;  %v910_v42 = vadd.f32 %v909_v7, %v7971_v45  ;;  %v8207_v52 = vpop.f32.mrf.mxu0  ;;  %v8215_v62 = vpop.f32.mrf.mxu1  ;;  %v6932_v7 = vld [vmem:[%s10162_s3 + $0x2e8] ss:$16 sps:$4 sm:$0xff]  }
 0x14f   : > { %v1256_v63 = vsel %vm1160_vm1, %v1112_v3, %v1208_v57  ;;  %v1113_v36 = vmax.f32 %v8036_v9, %v906_v1  ;;  %v1115_v61 = vmax.f32 %v8039_v10, %v1059_v55  ;;  %v1114_v6 = vmax.f32 %v8042_v11, %v908_v49  ;;  %v6940_v9 = vld [vmem:[%s10162_s3 + $0x2cc] ss:$16 sps:$4 sm:$0xff]   ;;  %v6935_v49 = vld [vmem:[%s10162_s3 + $0x2c0] ss:$16 sps:$4 sm:$0xff]  }
 0x150   : > { %v10199_v26 = vmov 0.0   ;;  %v1116_v2 = vmax.f32 %v8045_v12, %v1061_v59  ;;  %v1117_v10 = vmax.f32 %v8048_v13, %v910_v42  ;;  %v1063_v11 = vadd.f32 %v1062_v31, %v7975_v46  ;;  %v8231_v0 = vpop.f32.mrf.mxu0  ;;  %v8235_v57 = vpop.f32.mrf.mxu1 }
 0x151   : > { %v1363_v38 = vpack.c.bf16 %v8203_v51, %v10199_v26  ;;  %vm1161_vm2 = vcmp.ge.f32.partialorder %v1113_v36, 0.0  ;;  %v1209_v3 = vmul.f32 0.01, %v1113_v36  ;;  %vm1163_vm3 = vcmp.ge.f32.partialorder %v1115_v61, 0.0 }
 0x152   : > { %v1211_v44 = vmul.f32 0.01, %v1115_v61  ;;  %vm1162_vm4 = vcmp.ge.f32.partialorder %v1114_v6, 0.0  ;;  %v1210_v12 = vmul.f32 0.01, %v1114_v6  ;;  %vm1164_vm5 = vcmp.ge.f32.partialorder %v1116_v2, 0.0  ;;  %v8245_v59 = vpop.f32.mrf.mxu0 }
 0x153   : > { %1788 = vmatprep.mubr.bf16.mxu0 %v1363_v38  ;;  %1871 = vmatprep.mubr.bf16.mxu1 %v1363_v38  ;;  %v1212_v43 = vmul.f32 0.01, %v1116_v2  ;;  %v1257_v41 = vsel %vm1161_vm2, %v1113_v36, %v1209_v3  ;;  %vm1165_vm6 = vcmp.ge.f32.partialorder %v1117_v10, 0.0  ;;  %v1213_v31 = vmul.f32 0.01, %v1117_v10 }
 0x154   : > { %1789 = vmatmul.mubr.bf16.vlgmr.msra.gmra.mxu0 %v8161_v35  ;;  %1872 = vmatmul.mubr.bf16.vlgmr.msra.gmra.mxu1 %v8161_v35  ;;  %v1259_v13 = vsel %vm1163_vm3, %v1115_v61, %v1211_v44  ;;  %v1258_v1 = vsel %vm1162_vm4, %v1114_v6, %v1210_v12  ;;  %v6938_v35 = vld [vmem:[%s10162_s3 + $0x2c8] ss:$16 sps:$4 sm:$0xff]   ;;  %v8247_v42 = vmax.f32 %v1254_v53, %v1256_v63  ;;  %v6943_v53 = vld [vmem:[%s10162_s3 + $0x2a4] ss:$16 sps:$4 sm:$0xff]   ;;  %v8287_v44 = vpop.f32.mrf.mxu0 }
 0x155   : > { %2399 = vmatpush1.bf16.msra.mxu0 %v6929_v16  ;;  %2482 = vmatpush1.bf16.msra.mxu1 %v6932_v7  ;;  %v8237_v50 = vmax.f32 %v1257_v41, %v1259_v13  ;;  %v1260_v55 = vsel %vm1164_vm5, %v1116_v2, %v1212_v43  ;;  %v1119_v16 = vmax.f32 %v8051_v14, %v1063_v11  ;;  %v6946_v14 = vld [vmem:[%s10162_s3 + $0x2ac] ss:$16 sps:$4 sm:$0xff]   ;;  %v8275_v2 = vpop.f32.mrf.mxu1  ;;  %v6944_v11 = vld [vmem:[%s10162_s3 + $0x2a8] ss:$16 sps:$4 sm:$0xff]  }
 0x156   : > { %v8249_v36 = vmax.f32 %v1258_v1, %v1260_v55  ;;  %2400 = vmatprep.subr.bf16.mxu0 %v6937_v54  ;;  %2483 = vmatprep.subr.bf16.mxu1 %v6940_v9  ;;  %v1261_v61 = vsel %vm1165_vm6, %v1117_v10, %v1213_v31  ;;  %v912_v6 = vadd.f32 %v8181_v4, %v7979_v47  ;;  %v6941_v10 = vld [vmem:[%s10162_s3 + $0x2a0] ss:$16 sps:$4 sm:$0xff]   ;;  %v6952_v43 = vld [vmem:[%s10162_s3 + $0x28c] ss:$16 sps:$4 sm:$0xff]  }
 0x157   : > { %v1065_v38 = vadd.f32 %v8183_v5, %v7983_v48  ;;  %v8259_v7 = vpack.c.bf16 %v8189_v28, %v8167_v56  ;;  %v8269_v63 = vpack.c.bf16 %v8237_v50, %v8191_v33  ;;  %vm1167_vm7 = vcmp.ge.f32.partialorder %v1119_v16, 0.0  ;;  %v8311_v55 = vpop.f32.mrf.mxu1 }
 0x158   : > { %v8273_v4 = vpack.c.bf16 %v8249_v36, %v8247_v42  ;;  %v1215_v5 = vmul.f32 0.01, %v1119_v16  ;;  %v1118_v54 = vmax.f32 %v8054_v15, %v912_v6  ;;  %v916_v3 = vadd.f32 %v8193_v58, %v7971_v45  ;;  %v6949_v58 = vld [vmem:[%s10162_s3 + $0x284] ss:$16 sps:$4 sm:$0xff]   ;;  %v8326_v6 = vpop.f32.mrf.mxu0 }
 0x159   : > { %2401 = vmatpush1.bf16.msra.mxu0 %v6935_v49  ;;  %2484 = vmatpush1.bf16.msra.mxu1 %v6938_v35  ;;  %v1120_v9 = vmax.f32 %v8061_v17, %v1065_v38  ;;  %v8293_v15 = vpack.c.bf16 %v8178_v60, %v8163_v40  ;;  %v1069_v17 = vadd.f32 %v8195_v8, %v7975_v46 }
 0x15a   : > { %1798 = vmatprep.mubr.bf16.mxu0 %v8259_v7  ;;  %1881 = vmatprep.mubr.bf16.mxu1 %v8259_v7  ;;  %v918_v12 = vadd.f32 %v8207_v52, %v7979_v47  ;;  %v1263_v41 = vsel %vm1167_vm7, %v1119_v16, %v1215_v5  ;;  %vm1166_vm8 = vcmp.ge.f32.partialorder %v1118_v54, 0.0  ;;  %v1214_v13 = vmul.f32 0.01, %v1118_v54  ;;  %v6947_v16 = vld [vmem:[%s10162_s3 + $0x280] ss:$16 sps:$4 sm:$0xff]  }
 0x15b   : > { %vm1168_vm9 = vcmp.ge.f32.partialorder %v1120_v9, 0.0  ;;  %2402 = vmatprep.subr.bf16.mxu0 %v6943_v53  ;;  %2485 = vmatprep.subr.bf16.mxu1 %v6946_v14  ;;  %v1216_v31 = vmul.f32 0.01, %v1120_v9  ;;  %v1121_v8 = vmax.f32 %v8064_v18, %v916_v3  ;;  %v1123_v52 = vmax.f32 %v8067_v19, %v1069_v17  ;;  %v6950_v18 = vld [vmem:[%s10162_s3 + $0x288] ss:$16 sps:$4 sm:$0xff]   ;;  %v1080_v3 = vpop.f32.mrf.mxu1 }
 0x15c   : > { %1799 = vmatmul.mubr.bf16.gmra.mxu0 %v8293_v15  ;;  %1882 = vmatmul.mubr.bf16.gmra.mxu1 %v8293_v15  ;;  %v1122_v1 = vmax.f32 %v8070_v20, %v918_v12  ;;  %v1262_v49 = vsel %vm1166_vm8, %v1118_v54, %v1214_v13  ;;  %v1071_v35 = vadd.f32 %v8215_v62, %v7983_v48  ;;  %v6955_v20 = vld [vmem:[%s10162_s3 + $0x264] ss:$16 sps:$4 sm:$0xff]   ;;  %v6958_v53 = vld [vmem:[%s10162_s3 + $0x26c] ss:$16 sps:$4 sm:$0xff]  }
 0x15d   : > { %2403 = vmatpush1.bf16.msra.mxu0 %v6941_v10  ;;  %2486 = vmatpush1.bf16.msra.mxu1 %v6944_v11  ;;  %v920_v19 = vadd.f32 %v8231_v0, %v7971_v45  ;;  %v1264_v38 = vsel %vm1168_vm9, %v1120_v9, %v1216_v31  ;;  %vm1169_vm10 = vcmp.ge.f32.partialorder %v1121_v8, 0.0  ;;  %v1217_v62 = vmul.f32 0.01, %v1121_v8 }
 0x15e   : > { %vm1171_vm11 = vcmp.ge.f32.partialorder %v1123_v52, 0.0  ;;  %2404 = vmatprep.subr.bf16.mxu0 %v6949_v58  ;;  %2487 = vmatprep.subr.bf16.mxu1 %v6952_v43  ;;  %v8332_v14 = vmax.f32 %v1261_v61, %v1263_v41  ;;  %v1219_v0 = vmul.f32 0.01, %v1123_v52  ;;  %vm1170_vm12 = vcmp.ge.f32.partialorder %v1122_v1, 0.0  ;;  %v6953_v58 = vld [vmem:[%s10162_s3 + $0x260] ss:$16 sps:$4 sm:$0xff]  }
 0x15f   : > { %v1218_v5 = vmul.f32 0.01, %v1122_v1  ;;  %1808 = vmatprep.mubr.bf16.mxu0 %v8273_v4  ;;  %1891 = vmatprep.mubr.bf16.mxu1 %v8273_v4  ;;  %v8336_v54 = vmax.f32 %v1262_v49, %v1264_v38  ;;  %v1124_v9 = vmax.f32 %v8073_v21, %v1071_v35  ;;  %v1125_v10 = vmax.f32 %v8076_v22, %v920_v19  ;;  %v6956_v21 = vld [vmem:[%s10162_s3 + $0x268] ss:$16 sps:$4 sm:$0xff]   ;;  %v6961_v22 = vld [vmem:[%s10162_s3 + $0x244] ss:$16 sps:$4 sm:$0xff]  }
 0x160   : > { %v1073_v11 = vadd.f32 %v8235_v57, %v7975_v46  ;;  %v1265_v61 = vsel %vm1169_vm10, %v1121_v8, %v1217_v62  ;;  %v1267_v17 = vsel %vm1171_vm11, %v1123_v52, %v1219_v0  ;;  %v922_v12 = vadd.f32 %v8245_v59, %v7979_v47  ;;  %v929_v57 = vpop.f32.mrf.mxu0  ;;  %v6964_v59 = vld [vmem:[%s10162_s3 + $0x24c] ss:$16 sps:$4 sm:$0xff]   ;;  %v6962_v19 = vld [vmem:[%s10162_s3 + $0x248] ss:$16 sps:$4 sm:$0xff]  }
 0x161   : > { %2405 = vmatpush1.bf16.msra.mxu0 %v6947_v16  ;;  %2488 = vmatpush1.bf16.msra.mxu1 %v6950_v18  ;;  %v1266_v43 = vsel %vm1170_vm12, %v1122_v1, %v1218_v5  ;;  %vm1172_vm13 = vcmp.ge.f32.partialorder %v1124_v9, 0.0  ;;  %v1220_v41 = vmul.f32 0.01, %v1124_v9  ;;  %vm1173_vm14 = vcmp.ge.f32.partialorder %v1125_v10, 0.0  ;;  %v6959_v16 = vld [vmem:[%s10162_s3 + $0x240] ss:$16 sps:$4 sm:$0xff]  }
 0x162   : > { %2406 = vmatprep.subr.bf16.mxu0 %v6955_v20  ;;  %2489 = vmatprep.subr.bf16.mxu1 %v6958_v53  ;;  %v1221_v13 = vmul.f32 0.01, %v1125_v10  ;;  %v1127_v31 = vmax.f32 %v8079_v39, %v1073_v11  ;;  %v1126_v8 = vmax.f32 %v8082_v23, %v922_v12  ;;  %v1075_v52 = vadd.f32 %v8275_v2, %v7983_v48  ;;  %v1082_v39 = vpop.f32.mrf.mxu1  ;;  %v931_v20 = vpop.f32.mrf.mxu0 }
 0x163   : > { %v8363_v49 = vmax.f32 %v1265_v61, %v1267_v17  ;;  %v1268_v1 = vsel %vm1172_vm13, %v1124_v9, %v1220_v41  ;;  %v926_v35 = vadd.f32 %v8287_v44, %v7971_v45  ;;  %v1079_v5 = vadd.f32 %v8311_v55, %v7975_v46  ;;  %v6970_v55 = vld [vmem:[%s10162_s3 + $0x22c] ss:$16 sps:$4 sm:$0xff]  }
 0x164   : > { %1809 = vmatmul.mubr.bf16.gmra.mxu0 %v8269_v63  ;;  %1892 = vmatmul.mubr.bf16.gmra.mxu1 %v8269_v63  ;;  %v8372_v18 = vmax.f32 %v1266_v43, %v1268_v1  ;;  %v1269_v23 = vsel %vm1173_vm14, %v1125_v10, %v1221_v13  ;;  %vm1175_vm15 = vcmp.ge.f32.partialorder %v1127_v31, 0.0  ;;  %v1223_v2 = vmul.f32 0.01, %v1127_v31  ;;  %v6967_v10 = vld [vmem:[%s10162_s3 + $0x224] ss:$16 sps:$4 sm:$0xff]   ;;  %v1084_v61 = vpop.f32.mrf.mxu1 }
 0x165   : > { %2407 = vmatpush1.bf16.msra.mxu0 %v6953_v58  ;;  %2490 = vmatpush1.bf16.msra.mxu1 %v6956_v21  ;;  %vm1174_vm0 = vcmp.ge.f32.partialorder %v1126_v8, 0.0  ;;  %v1222_v44 = vmul.f32 0.01, %v1126_v8  ;;  %v1128_v38 = vmax.f32 %v8085_v25, %v1075_v52  ;;  %v1129_v62 = vmax.f32 %v8088_v27, %v926_v35  ;;  %v935_v58 = vpop.f32.mrf.mxu0 }
 0x166   : > { %2408 = vmatprep.subr.bf16.mxu0 %v6961_v22  ;;  %2491 = vmatprep.subr.bf16.mxu1 %v6964_v59  ;;  %v8382_v53 = vpack.c.bf16 %v8372_v18, %v8336_v54  ;;  %v1271_v0 = vsel %vm1175_vm15, %v1127_v31, %v1223_v2  ;;  %v928_v9 = vadd.f32 %v8326_v6, %v7979_v47  ;;  %v6965_v59 = vld [vmem:[%s10162_s3 + $0x220] ss:$16 sps:$4 sm:$0xff]   ;;  %v6976_v31 = vld [vmem:[%s10162_s3 + $0x20c] ss:$16 sps:$4 sm:$0xff]   ;;  %v1088_v35 = vpop.f32.mrf.mxu1 }
 0x167   : > { %v8393_v25 = vpack.c.bf16 %v8363_v49, %v8332_v14  ;;  %v8395_v27 = vmax.f32 %v1269_v23, %v1271_v0  ;;  %vm1176_vm1 = vcmp.ge.f32.partialorder %v1128_v38, 0.0  ;;  %v1224_v11 = vmul.f32 0.01, %v1128_v38 }
 0x168   : > { %vm1177_vm2 = vcmp.ge.f32.partialorder %v1129_v62, 0.0  ;;  %v1225_v17 = vmul.f32 0.01, %v1129_v62  ;;  %v1131_v6 = vmax.f32 %v8093_v29, %v1079_v5  ;;  %v1130_v12 = vmax.f32 %v8096_v30, %v928_v9  ;;  %1818 = vmatprep.mubr.bf16.mxu0 %v8382_v53  ;;  %v6968_v29 = vld [vmem:[%s10162_s3 + $0x228] ss:$16 sps:$4 sm:$0xff]   ;;  %1901 = vmatprep.mubr.bf16.mxu1 %v8382_v53 }
 0x169   : > { %2409 = vmatpush1.bf16.msra.mxu0 %v6959_v16  ;;  %2492 = vmatpush1.bf16.msra.mxu1 %v6962_v19  ;;  %v1270_v21 = vsel %vm1174_vm0, %v1126_v8, %v1222_v44  ;;  %v1081_v22 = vadd.f32 %v1080_v3, %v7983_v48  ;;  %v930_v43 = vadd.f32 %v929_v57, %v7971_v45  ;;  %v6973_v30 = vld [vmem:[%s10162_s3 + $0x204] ss:$16 sps:$4 sm:$0xff]   ;;  %v937_v19 = vpop.f32.mrf.mxu0 }
 0x16a   : > { %v1083_v41 = vadd.f32 %v1082_v39, %v7975_v46  ;;  %v1272_v3 = vsel %vm1176_vm1, %v1128_v38, %v1224_v11  ;;  %v1273_v57 = vsel %vm1177_vm2, %v1129_v62, %v1225_v17  ;;  %vm1179_vm3 = vcmp.ge.f32.partialorder %v1131_v6, 0.0  ;;  %2410 = vmatprep.subr.bf16.mxu0 %v6967_v10  ;;  %2493 = vmatprep.subr.bf16.mxu1 %v6970_v55  ;;  %v6979_v44 = vld [vmem:[%s10162_s3 + $0x3e4] ss:$16 sps:$4 sm:$0xff]   ;;  %v6982_v62 = vld [vmem:[%s10162_s3 + $0x3ec] ss:$16 sps:$4 sm:$0xff]  }
 0x16b   : > { %v1227_v13 = vmul.f32 0.01, %v1131_v6  ;;  %vm1178_vm4 = vcmp.ge.f32.partialorder %v1130_v12, 0.0  ;;  %v1226_v8 = vmul.f32 0.01, %v1130_v12  ;;  %v1132_v52 = vmax.f32 %v8099_v32, %v1081_v22  ;;  %v10200_v11 = vld [vmem:[#allocation14_spill] sm:$0xff] }
 0x16c   : > { %v1133_v1 = vmax.f32 %v8102_v37, %v930_v43  ;;  %1819 = vmatmul.mubr.bf16.gmra.mxu0 %v8393_v25  ;;  %v1135_v39 = vmax.f32 %v8105_v34, %v1083_v41  ;;  %v932_v23 = vadd.f32 %v931_v20, %v7979_v47  ;;  %v1085_v2 = vadd.f32 %v1084_v61, %v7983_v48  ;;  %v6971_v32 = vld [vmem:[%s10162_s3 + $0x200] ss:$16 sps:$4 sm:$0xff]   ;;  %v6974_v37 = vld [vmem:[%s10162_s3 + $0x208] ss:$16 sps:$4 sm:$0xff]  }
 0x16d   : > { %v1275_v16 = vsel %vm1179_vm3, %v1131_v6, %v1227_v13  ;;  %1902 = vmatmul.mubr.bf16.gmra.mxu1 %v8393_v25  ;;  %v1274_v20 = vsel %vm1178_vm4, %v1130_v12, %v1226_v8  ;;  %vm1180_vm5 = vcmp.ge.f32.partialorder %v1132_v52, 0.0  ;;  %v1228_v38 = vmul.f32 0.01, %v1132_v52  ;;  %2411 = vmatpush1.bf16.msra.mxu0 %v6965_v59  ;;  %v10201_v55 = vld [vmem:[#allocation15_spill] sm:$0xff]  ;;  %v1090_v6 = vpop.f32.mrf.mxu1  ;;  %v939_v59 = vpop.f32.mrf.mxu0 }
 0x16e   : > { %v8438_v34 = vmax.f32 %v1273_v57, %v1275_v16  ;;  %2494 = vmatpush1.bf16.msra.mxu1 %v6968_v29  ;;  %vm1181_vm6 = vcmp.ge.f32.partialorder %v1133_v1, 0.0  ;;  %v1229_v0 = vmul.f32 0.01, %v1133_v1  ;;  %vm1183_vm7 = vcmp.ge.f32.partialorder %v1135_v39, 0.0  ;;  %2412 = vmatprep.subr.bf16.mxu0 %v6973_v30  ;;  %v10202_v29 = vld [vmem:[#allocation11_spill] sm:$0xff] }
 0x16f   : > { %v1231_v5 = vmul.f32 0.01, %v1135_v39  ;;  %2495 = vmatprep.subr.bf16.mxu1 %v6976_v31  ;;  %v8444_v9 = vmax.f32 %v1270_v21, %v1272_v3  ;;  %v1276_v10 = vsel %vm1180_vm5, %v1132_v52, %v1228_v38  ;;  %v1134_v61 = vmax.f32 %v10200_v11, %v932_v23  ;;  %v10203_v31 = vld [vmem:[#allocation16_spill] sm:$0xff] }
 0x170   : > { %v1136_v17 = vmax.f32 %v10201_v55, %v1085_v2  ;;  %v8448_v12 = vmax.f32 %v1274_v20, %v1276_v10  ;;  %v1277_v22 = vsel %vm1181_vm6, %v1133_v1, %v1229_v0  ;;  %v936_v41 = vadd.f32 %v935_v58, %v7971_v45  ;;  %v6977_v52 = vld [vmem:[%s10162_s3 + $0x3e0] ss:$16 sps:$4 sm:$0xff]   ;;  %v6980_v1 = vld [vmem:[%s10162_s3 + $0x3e8] ss:$16 sps:$4 sm:$0xff]   ;;  %v1092_v2 = vpop.f32.mrf.mxu1 }
 0x171   : > { %v1279_v43 = vsel %vm1183_vm7, %v1135_v39, %v1231_v5  ;;  %v1033_v57 = vadd.f32 %v10202_v29, %v7975_v46  ;;  %v8455_v21 = vpack.c.bf16 %v8438_v34, %v8395_v27  ;;  %v1230_v3 = vmul.f32 0.01, %v1134_v61  ;;  %2413 = vmatpush1.bf16.msra.mxu0 %v6971_v32  ;;  %v6988_v32 = vld [vmem:[%s10162_s3 + $0x3cc] ss:$16 sps:$4 sm:$0xff]   ;;  %v10207_v10 = vld [vmem:[#allocation20_spill] sm:$0xff] }
 0x172   : > { %v8457_v30 = vmax.f32 %v1277_v22, %v1279_v43  ;;  %2496 = vmatpush1.bf16.msra.mxu1 %v6974_v37  ;;  %v8461_v13 = vpack.c.bf16 %v8448_v12, %v8444_v9  ;;  %vm1182_vm8 = vcmp.ge.f32.partialorder %v1134_v61, 0.0  ;;  %v1137_v58 = vmax.f32 %v10203_v31, %v936_v41  ;;  %2414 = vmatprep.subr.bf16.mxu0 %v6979_v44  ;;  %v10204_v20 = vld [vmem:[#allocation17_spill] sm:$0xff]  ;;  %v10206_v0 = vld [vmem:[#allocation19_spill] sm:$0xff]  ;;  %v6983_v55 = vld [vmem:[%s10162_s3 + $0x3c0] ss:$16 sps:$4 sm:$0xff]  }
 0x173   : > { %v1089_v8 = vadd.f32 %v1088_v35, %v7975_v46  ;;  %2497 = vmatprep.subr.bf16.mxu1 %v6982_v62  ;;  %vm1184_vm9 = vcmp.ge.f32.partialorder %v1136_v17, 0.0  ;;  %v938_v16 = vadd.f32 %v937_v19, %v7979_v47  ;;  %v1091_v39 = vadd.f32 %v1090_v6, %v7983_v48  ;;  %v6985_v35 = vld [vmem:[%s10162_s3 + $0x3c4] ss:$16 sps:$4 sm:$0xff]   ;;  %v6986_v6 = vld [vmem:[%s10162_s3 + $0x3c8] ss:$16 sps:$4 sm:$0xff]  }
 0x174   : > { %v940_v23 = vadd.f32 %v939_v59, %v7971_v45  ;;  %v1232_v37 = vmul.f32 0.01, %v1136_v17  ;;  %vm1185_vm10 = vcmp.ge.f32.partialorder %v1137_v58, 0.0  ;;  %v1233_v44 = vmul.f32 0.01, %v1137_v58  ;;  %1828 = vmatprep.mubr.bf16.mxu0 %v8461_v13  ;;  %1911 = vmatprep.mubr.bf16.mxu1 %v8461_v13  ;;  %v10205_v19 = vld [vmem:[#allocation18_spill] sm:$0xff] }
 0x175   : > { %v1139_v38 = vmax.f32 %v10204_v20, %v1089_v8  ;;  %v1278_v45 = vsel %vm1182_vm8, %v1134_v61, %v1230_v3  ;;  %v1138_v62 = vmax.f32 %v10205_v19, %v938_v16  ;;  %v1140_v5 = vmax.f32 %v10206_v0, %v1091_v39  ;;  %1829 = vmatmul.mubr.bf16.gmra.mxu0 %v8455_v21  ;;  %v6991_v41 = vld [vmem:[%s10162_s3 + $0x3a4] ss:$16 sps:$4 sm:$0xff]   ;;  %v7006_v0 = vld [vmem:[%s10162_s3 + $0x36c] ss:$16 sps:$4 sm:$0xff]  }
 0x176   : > { %v1141_v11 = vmax.f32 %v10207_v10, %v940_v23  ;;  %v1281_v22 = vsel %vm1185_vm10, %v1137_v58, %v1233_v44  ;;  %v1093_v61 = vadd.f32 %v1092_v2, %v7975_v46  ;;  %1912 = vmatmul.mubr.bf16.gmra.mxu1 %v8455_v21  ;;  %2415 = vmatpush2.bf16.msra.mxu0 %v6977_v52  ;;  %v6994_v46 = vld [vmem:[%s10162_s3 + $0x3ac] ss:$16 sps:$4 sm:$0xff]  }
 0x177   : > { %vm1187_vm11 = vcmp.ge.f32.partialorder %v1139_v38, 0.0  ;;  %v1235_v43 = vmul.f32 0.01, %v1139_v38  ;;  %vm1186_vm12 = vcmp.ge.f32.partialorder %v1138_v62, 0.0  ;;  %v1234_v59 = vmul.f32 0.01, %v1138_v62  ;;  %2498 = vmatpush2.bf16.msra.mxu1 %v6980_v1  ;;  %2416 = vmatprep.subr.bf16.mxu0 %v6985_v35 }
 0x178   : > { %vm1188_vm13 = vcmp.ge.f32.partialorder %v1140_v5, 0.0  ;;  %v1236_v29 = vmul.f32 0.01, %v1140_v5  ;;  %vm1189_vm14 = vcmp.ge.f32.partialorder %v1141_v11, 0.0  ;;  %v1237_v31 = vmul.f32 0.01, %v1141_v11  ;;  %2499 = vmatprep.subr.bf16.mxu1 %v6988_v32 }
 0x179   : > { %v1283_v3 = vsel %vm1187_vm11, %v1139_v38, %v1235_v43  ;;  %v1143_v58 = vmax.f32 %v1033_v57, %v1093_v61  ;;  %v1280_v8 = vsel %vm1184_vm9, %v1136_v17, %v1232_v37  ;;  %v1282_v16 = vsel %vm1186_vm12, %v1138_v62, %v1234_v59  ;;  %v6989_v57 = vld [vmem:[%s10162_s3 + $0x3a0] ss:$16 sps:$4 sm:$0xff]   ;;  %v6992_v17 = vld [vmem:[%s10162_s3 + $0x3a8] ss:$16 sps:$4 sm:$0xff]   ;;  %v6997_v32 = vld [vmem:[%s10162_s3 + $0x384] ss:$16 sps:$4 sm:$0xff]  }
 0x17a   : > { %v1309_v52 = vmax.f32 %v1281_v22, %v1283_v3  ;;  %v1284_v39 = vsel %vm1188_vm13, %v1140_v5, %v1236_v29  ;;  %v1285_v2 = vsel %vm1189_vm14, %v1141_v11, %v1237_v31  ;;  %2417 = vmatpush2.bf16.msra.mxu0 %v6983_v55  ;;  %v2004_v35 = vpack.c.bf16 %v8167_v56, %v8203_v51  ;;  %v7000_v44 = vld [vmem:[%s10162_s3 + $0x38c] ss:$16 sps:$4 sm:$0xff]   ;;  %v6995_v56 = vld [vmem:[%s10162_s3 + $0x380] ss:$16 sps:$4 sm:$0xff]   ;;  %v6998_v51 = vld [vmem:[%s10162_s3 + $0x388] ss:$16 sps:$4 sm:$0xff]  }
 0x17b   : > { %v8503_v23 = vmax.f32 %v1282_v16, %v1284_v39  ;;  %vm1191_vm15 = vcmp.ge.f32.partialorder %v1143_v58, 0.0  ;;  %v1239_v1 = vmul.f32 0.01, %v1143_v58  ;;  %2500 = vmatpush2.bf16.msra.mxu1 %v6986_v6  ;;  %2418 = vmatprep.subr.bf16.mxu0 %v6991_v41  ;;  %v8519_v20 = vmax.f32 %v1278_v45, %v1280_v8  ;;  %v7003_v45 = vld [vmem:[%s10162_s3 + $0x364] ss:$16 sps:$4 sm:$0xff]  }
 0x17c   : > { %2501 = vmatprep.subr.bf16.mxu1 %v6994_v46  ;;  %2430 = vmatprep.mubr.bf16.mxu0 %v2004_v35  ;;  %v8534_v19 = vpack.c.bf16 %v8457_v30, %v8438_v34  ;;  %v8544_v5 = vpack.c.bf16 %v1309_v52, %v8457_v30  ;;  %v7001_v34 = vld [vmem:[%s10162_s3 + $0x360] ss:$16 sps:$4 sm:$0xff]   ;;  %v7004_v11 = vld [vmem:[%s10162_s3 + $0x368] ss:$16 sps:$4 sm:$0xff]   ;;  %v7009_v55 = vld [vmem:[%s10162_s3 + $0x344] ss:$16 sps:$4 sm:$0xff]  }
 0x17d   : > { %v1287_v37 = vsel %vm1191_vm15, %v1143_v58, %v1239_v1  ;;  %2513 = vmatprep.mubr.bf16.mxu1 %v2004_v35  ;;  %v8538_v62 = vpack.c.bf16 %v8503_v23, %v8519_v20  ;;  %v7012_v30 = vld [vmem:[%s10162_s3 + $0x34c] ss:$16 sps:$4 sm:$0xff]   ;;  %v7007_v6 = vld [vmem:[%s10162_s3 + $0x340] ss:$16 sps:$4 sm:$0xff]   ;;  %v7010_v22 = vld [vmem:[%s10162_s3 + $0x348] ss:$16 sps:$4 sm:$0xff]   ;;  %v8631_v35 = vpack.c.bf16 %v8191_v33, %v8178_v60 }
 0x17e   : > { %v8521_v38 = vmax.f32 %v1285_v2, %v1287_v37  ;;  %2419 = vmatpush2.bf16.msra.mxu0 %v6989_v57  ;;  %v7015_v43 = vld [vmem:[%s10162_s3 + $0x324] ss:$16 sps:$4 sm:$0xff]   ;;  %v7018_v61 = vld [vmem:[%s10162_s3 + $0x32c] ss:$16 sps:$4 sm:$0xff]   ;;  %v7013_v41 = vld [vmem:[%s10162_s3 + $0x320] ss:$16 sps:$4 sm:$0xff]   ;;  %v8607_v2 = vpack.c.bf16 %v8247_v42, %v8189_v28  ;;  %v8641_v37 = vpack.c.bf16 %v8336_v54, %v8249_v36 }
 0x17f   : > { %2502 = vmatpush2.bf16.msra.mxu1 %v6992_v17  ;;  %2420 = vmatprep.subr.bf16.mxu0 %v6997_v32  ;;  %v7016_v59 = vld [vmem:[%s10162_s3 + $0x328] ss:$16 sps:$4 sm:$0xff]   ;;  %v7021_v29 = vld [vmem:[%s10162_s3 + $0x304] ss:$16 sps:$4 sm:$0xff]   ;;  %v7024_v3 = vld [vmem:[%s10162_s3 + $0x30c] ss:$16 sps:$4 sm:$0xff]  }
 0x180   : > { %2503 = vmatprep.subr.bf16.mxu1 %v7000_v44  ;;  %v8547_v10 = vpack.c.bf16 %v8521_v38, %v1309_v52  ;;  %v7019_v31 = vld [vmem:[%s10162_s3 + $0x300] ss:$16 sps:$4 sm:$0xff]   ;;  %v7022_v58 = vld [vmem:[%s10162_s3 + $0x308] ss:$16 sps:$4 sm:$0xff]   ;;  %v7027_v46 = vld [vmem:[%s10162_s3 + $0x4e4] ss:$16 sps:$4 sm:$0xff]   ;;  %v2003_v52 = vpack.c.bf16 %v8163_v40, %v8142_v24 }
 0x181   : > { %v7030_v8 = vld [vmem:[%s10162_s3 + $0x4ec] ss:$16 sps:$4 sm:$0xff]   ;;  %v7025_v16 = vld [vmem:[%s10162_s3 + $0x4e0] ss:$16 sps:$4 sm:$0xff]   ;;  %v7028_v39 = vld [vmem:[%s10162_s3 + $0x4e8] ss:$16 sps:$4 sm:$0xff]  }
 0x182   : > { %2421 = vmatpush2.bf16.msra.mxu0 %v6995_v56  ;;  %v7033_v1 = vld [vmem:[%s10162_s3 + $0x4c4] ss:$16 sps:$4 sm:$0xff]   ;;  %v7036_v24 = vld [vmem:[%s10162_s3 + $0x4cc] ss:$16 sps:$4 sm:$0xff]   ;;  %v7031_v40 = vld [vmem:[%s10162_s3 + $0x4c0] ss:$16 sps:$4 sm:$0xff]  }
 0x183   : > { %2504 = vmatpush2.bf16.msra.mxu1 %v6998_v51  ;;  %2422 = vmatprep.subr.bf16.mxu0 %v7003_v45  ;;  %v7034_v28 = vld [vmem:[%s10162_s3 + $0x4c8] ss:$16 sps:$4 sm:$0xff]   ;;  %v7039_v42 = vld [vmem:[%s10162_s3 + $0x4a4] ss:$16 sps:$4 sm:$0xff]   ;;  %v7042_v57 = vld [vmem:[%s10162_s3 + $0x4ac] ss:$16 sps:$4 sm:$0xff]   ;;  %v8667_v51 = vpack.c.bf16 %v8332_v14, %v8237_v50 }
 0x184   : > { %2505 = vmatprep.subr.bf16.mxu1 %v7006_v0  ;;  %v7037_v17 = vld [vmem:[%s10162_s3 + $0x4a0] ss:$16 sps:$4 sm:$0xff]   ;;  %v7040_v32 = vld [vmem:[%s10162_s3 + $0x4a8] ss:$16 sps:$4 sm:$0xff]   ;;  %v7045_v44 = vld [vmem:[%s10162_s3 + $0x484] ss:$16 sps:$4 sm:$0xff]  }
 0x185   : > { %v7048_v60 = vld [vmem:[%s10162_s3 + $0x48c] ss:$16 sps:$4 sm:$0xff]   ;;  %v7043_v33 = vld [vmem:[%s10162_s3 + $0x480] ss:$16 sps:$4 sm:$0xff]   ;;  %v7046_v36 = vld [vmem:[%s10162_s3 + $0x488] ss:$16 sps:$4 sm:$0xff]  }
 0x186   : > { %2423 = vmatpush2.bf16.msra.mxu0 %v7001_v34  ;;  %v7051_v54 = vld [vmem:[%s10162_s3 + $0x464] ss:$16 sps:$4 sm:$0xff]   ;;  %v7054_v56 = vld [vmem:[%s10162_s3 + $0x46c] ss:$16 sps:$4 sm:$0xff]   ;;  %v7049_v45 = vld [vmem:[%s10162_s3 + $0x460] ss:$16 sps:$4 sm:$0xff]   ;;  %v8677_v34 = vpack.c.bf16 %v8444_v9, %v8372_v18 }
 0x187   : > { %2506 = vmatpush2.bf16.msra.mxu1 %v7004_v11  ;;  %2424 = vmatprep.subr.bf16.mxu0 %v7009_v55  ;;  %v7052_v0 = vld [vmem:[%s10162_s3 + $0x468] ss:$16 sps:$4 sm:$0xff]   ;;  %v7057_v11 = vld [vmem:[%s10162_s3 + $0x444] ss:$16 sps:$4 sm:$0xff]   ;;  %v7060_v50 = vld [vmem:[%s10162_s3 + $0x44c] ss:$16 sps:$4 sm:$0xff]  }
 0x188   : > { %2507 = vmatprep.subr.bf16.mxu1 %v7012_v30  ;;  %v7055_v14 = vld [vmem:[%s10162_s3 + $0x440] ss:$16 sps:$4 sm:$0xff]   ;;  %v7058_v18 = vld [vmem:[%s10162_s3 + $0x448] ss:$16 sps:$4 sm:$0xff]   ;;  %v7063_v9 = vld [vmem:[%s10162_s3 + $0x424] ss:$16 sps:$4 sm:$0xff]   ;;  %v8703_v30 = vpack.c.bf16 %v8395_v27, %v8363_v49 }
 0x189   : > { %v7066_v55 = vld [vmem:[%s10162_s3 + $0x42c] ss:$16 sps:$4 sm:$0xff]   ;;  %v7067_v27 = vld [vmem:[%s10162_s3 + $0x400] ss:$16 sps:$4 sm:$0xff]  }
 0x18a   : > { %2425 = vmatpush2.bf16.msra.mxu0 %v7007_v6  ;;  %v7061_v6 = vld [vmem:[%s10162_s3 + $0x420] ss:$16 sps:$4 sm:$0xff]   ;;  %v7072_v49 = vld [vmem:[%s10162_s3 + $0x40c] ss:$16 sps:$4 sm:$0xff]  }
 0x18b   : > { %2508 = vmatpush2.bf16.msra.mxu1 %v7010_v22  ;;  %2426 = vmatprep.subr.bf16.mxu0 %v7015_v43  ;;  %v7064_v22 = vld [vmem:[%s10162_s3 + $0x428] ss:$16 sps:$4 sm:$0xff]   ;;  %v8713_v43 = vpack.c.bf16 %v8519_v20, %v8448_v12  ;;  %v7075_v20 = vld [vmem:[%s10162_s3 + $0x5e4] ss:$16 sps:$4 sm:$0xff]  }
 0x18c   : > { %2509 = vmatprep.subr.bf16.mxu1 %v7018_v61  ;;  %v7069_v61 = vld [vmem:[%s10162_s3 + $0x404] ss:$16 sps:$4 sm:$0xff]   ;;  %v7070_v12 = vld [vmem:[%s10162_s3 + $0x408] ss:$16 sps:$4 sm:$0xff]  }
 0x18e   : > { %2427 = vmatpush2.bf16.msra.mxu0 %v7013_v41  ;;  %v7078_v41 = vld [vmem:[%s10162_s3 + $0x5ec] ss:$16 sps:$4 sm:$0xff]  }
 0x18f   : > { %2510 = vmatpush2.bf16.msra.mxu1 %v7016_v59  ;;  %2428 = vmatprep.subr.bf16.mxu0 %v7021_v29  ;;  %v7073_v59 = vld [vmem:[%s10162_s3 + $0x5e0] ss:$16 sps:$4 sm:$0xff]   ;;  %v7076_v29 = vld [vmem:[%s10162_s3 + $0x5e8] ss:$16 sps:$4 sm:$0xff]  }
 0x190   : > { %2511 = vmatprep.subr.bf16.mxu1 %v7024_v3  ;;  %v7081_v3 = vld [vmem:[%s10162_s3 + $0x5c4] ss:$16 sps:$4 sm:$0xff]  }
 0x192   : > { %2429 = vmatpush2.bf16.msra.mxu0 %v7019_v31  ;;  %v7084_v31 = vld [vmem:[%s10162_s3 + $0x5cc] ss:$16 sps:$4 sm:$0xff]  }
 0x193   : > { %2512 = vmatpush2.bf16.msra.mxu1 %v7022_v58  ;;  %3019 = vmatprep.subr.bf16.mxu0 %v7027_v46  ;;  %v7079_v58 = vld [vmem:[%s10162_s3 + $0x5c0] ss:$16 sps:$4 sm:$0xff]   ;;  %v7082_v46 = vld [vmem:[%s10162_s3 + $0x5c8] ss:$16 sps:$4 sm:$0xff]  }
 0x194   : > { %3102 = vmatprep.subr.bf16.mxu1 %v7030_v8  ;;  %v7087_v8 = vld [vmem:[%s10162_s3 + $0x5a4] ss:$16 sps:$4 sm:$0xff]  }
 0x195   : > { %2431 = vmatmul.mubr.bf16.vlgmr.msra.gmra.mxu0 %v2003_v52 }
 0x196   : > { %2514 = vmatmul.mubr.bf16.vlgmr.msra.gmra.mxu1 %v2003_v52  ;;  %2440 = vmatprep.mubr.bf16.mxu0 %v8607_v2  ;;  %v7090_v52 = vld [vmem:[%s10162_s3 + $0x5ac] ss:$16 sps:$4 sm:$0xff]  }
 0x197   : > { %2523 = vmatprep.mubr.bf16.mxu1 %v8607_v2  ;;  %3020 = vmatpush1.bf16.msra.mxu0 %v7025_v16  ;;  %v7088_v16 = vld [vmem:[%s10162_s3 + $0x5a8] ss:$16 sps:$4 sm:$0xff]  }
 0x198   : > { %3103 = vmatpush1.bf16.msra.mxu1 %v7028_v39  ;;  %3021 = vmatprep.subr.bf16.mxu0 %v7033_v1  ;;  %v7093_v39 = vld [vmem:[%s10162_s3 + $0x584] ss:$16 sps:$4 sm:$0xff]   ;;  %v7096_v1 = vld [vmem:[%s10162_s3 + $0x58c] ss:$16 sps:$4 sm:$0xff]  }
 0x199   : > { %3104 = vmatprep.subr.bf16.mxu1 %v7036_v24  ;;  %v7091_v24 = vld [vmem:[%s10162_s3 + $0x580] ss:$16 sps:$4 sm:$0xff]  }
 0x19b   : > { %3022 = vmatpush1.bf16.msra.mxu0 %v7031_v40  ;;  %v7094_v40 = vld [vmem:[%s10162_s3 + $0x588] ss:$16 sps:$4 sm:$0xff]  }
 0x19c   : > { %3105 = vmatpush1.bf16.msra.mxu1 %v7034_v28  ;;  %3023 = vmatprep.subr.bf16.mxu0 %v7039_v42  ;;  %v7099_v28 = vld [vmem:[%s10162_s3 + $0x564] ss:$16 sps:$4 sm:$0xff]   ;;  %v7102_v42 = vld [vmem:[%s10162_s3 + $0x56c] ss:$16 sps:$4 sm:$0xff]  }
 0x19d   : > { %2441 = vmatmul.mubr.bf16.gmra.mxu0 %v8631_v35  ;;  %3106 = vmatprep.subr.bf16.mxu1 %v7042_v57  ;;  %v7097_v57 = vld [vmem:[%s10162_s3 + $0x560] ss:$16 sps:$4 sm:$0xff]  }
 0x19e   : > { %2524 = vmatmul.mubr.bf16.gmra.mxu1 %v8631_v35  ;;  %2450 = vmatprep.mubr.bf16.mxu0 %v8641_v37 }
 0x19f   : > { %2533 = vmatprep.mubr.bf16.mxu1 %v8641_v37  ;;  %3024 = vmatpush1.bf16.msra.mxu0 %v7037_v17  ;;  %v7100_v17 = vld [vmem:[%s10162_s3 + $0x568] ss:$16 sps:$4 sm:$0xff]  }
 0x1a0   : > { %3107 = vmatpush1.bf16.msra.mxu1 %v7040_v32  ;;  %3025 = vmatprep.subr.bf16.mxu0 %v7045_v44  ;;  %v7105_v32 = vld [vmem:[%s10162_s3 + $0x544] ss:$16 sps:$4 sm:$0xff]   ;;  %v7108_v44 = vld [vmem:[%s10162_s3 + $0x54c] ss:$16 sps:$4 sm:$0xff]  }
 0x1a1   : > { %3108 = vmatprep.subr.bf16.mxu1 %v7048_v60  ;;  %v7103_v60 = vld [vmem:[%s10162_s3 + $0x540] ss:$16 sps:$4 sm:$0xff]  }
 0x1a3   : > { %3026 = vmatpush1.bf16.msra.mxu0 %v7043_v33  ;;  %v7106_v33 = vld [vmem:[%s10162_s3 + $0x548] ss:$16 sps:$4 sm:$0xff]  }
 0x1a4   : > { %3109 = vmatpush1.bf16.msra.mxu1 %v7046_v36  ;;  %3027 = vmatprep.subr.bf16.mxu0 %v7051_v54  ;;  %v7111_v36 = vld [vmem:[%s10162_s3 + $0x524] ss:$16 sps:$4 sm:$0xff]   ;;  %v7114_v54 = vld [vmem:[%s10162_s3 + $0x52c] ss:$16 sps:$4 sm:$0xff]  }
 0x1a5   : > { %2451 = vmatmul.mubr.bf16.gmra.mxu0 %v8667_v51  ;;  %3110 = vmatprep.subr.bf16.mxu1 %v7054_v56  ;;  %v7109_v56 = vld [vmem:[%s10162_s3 + $0x520] ss:$16 sps:$4 sm:$0xff]  }
 0x1a6   : > { %2534 = vmatmul.mubr.bf16.gmra.mxu1 %v8667_v51  ;;  %2460 = vmatprep.mubr.bf16.mxu0 %v8677_v34 }
 0x1a7   : > { %2543 = vmatprep.mubr.bf16.mxu1 %v8677_v34  ;;  %3028 = vmatpush1.bf16.msra.mxu0 %v7049_v45  ;;  %v7112_v45 = vld [vmem:[%s10162_s3 + $0x528] ss:$16 sps:$4 sm:$0xff]  }
 0x1a8   : > { %3111 = vmatpush1.bf16.msra.mxu1 %v7052_v0  ;;  %3029 = vmatprep.subr.bf16.mxu0 %v7057_v11  ;;  %v7117_v0 = vld [vmem:[%s10162_s3 + $0x504] ss:$16 sps:$4 sm:$0xff]   ;;  %v7120_v11 = vld [vmem:[%s10162_s3 + $0x50c] ss:$16 sps:$4 sm:$0xff]  }
 0x1a9   : > { %3112 = vmatprep.subr.bf16.mxu1 %v7060_v50  ;;  %v7115_v50 = vld [vmem:[%s10162_s3 + $0x500] ss:$16 sps:$4 sm:$0xff]  }
 0x1ab   : > { %3030 = vmatpush1.bf16.msra.mxu0 %v7055_v14  ;;  %v7118_v14 = vld [vmem:[%s10162_s3 + $0x508] ss:$16 sps:$4 sm:$0xff]  }
 0x1ac   : > { %3113 = vmatpush1.bf16.msra.mxu1 %v7058_v18  ;;  %3031 = vmatprep.subr.bf16.mxu0 %v7063_v9  ;;  %v7123_v18 = vld [vmem:[%s10162_s3 + $0x6e4] ss:$16 sps:$4 sm:$0xff]   ;;  %v7126_v9 = vld [vmem:[%s10162_s3 + $0x6ec] ss:$16 sps:$4 sm:$0xff]  }
 0x1ad   : > { %2461 = vmatmul.mubr.bf16.gmra.mxu0 %v8703_v30  ;;  %3114 = vmatprep.subr.bf16.mxu1 %v7066_v55  ;;  %v7121_v55 = vld [vmem:[%s10162_s3 + $0x6e0] ss:$16 sps:$4 sm:$0xff]  }
 0x1ae   : > { %2544 = vmatmul.mubr.bf16.gmra.mxu1 %v8703_v30  ;;  %2470 = vmatprep.mubr.bf16.mxu0 %v8713_v43 }
 0x1af   : > { %2553 = vmatprep.mubr.bf16.mxu1 %v8713_v43  ;;  %3032 = vmatpush1.bf16.msra.mxu0 %v7061_v6  ;;  %v7124_v6 = vld [vmem:[%s10162_s3 + $0x6e8] ss:$16 sps:$4 sm:$0xff]  }
 0x1b0   : > { %3115 = vmatpush1.bf16.msra.mxu1 %v7064_v22  ;;  %3033 = vmatprep.subr.bf16.mxu0 %v7069_v61  ;;  %v7129_v22 = vld [vmem:[%s10162_s3 + $0x6c4] ss:$16 sps:$4 sm:$0xff]   ;;  %v7132_v61 = vld [vmem:[%s10162_s3 + $0x6cc] ss:$16 sps:$4 sm:$0xff]  }
 0x1b1   : > { %3116 = vmatprep.subr.bf16.mxu1 %v7072_v49  ;;  %v7127_v49 = vld [vmem:[%s10162_s3 + $0x6c0] ss:$16 sps:$4 sm:$0xff]  }
 0x1b3   : > { %3034 = vmatpush1.bf16.msra.mxu0 %v7067_v27  ;;  %v7130_v27 = vld [vmem:[%s10162_s3 + $0x6c8] ss:$16 sps:$4 sm:$0xff]  }
 0x1b4   : > { %3117 = vmatpush1.bf16.msra.mxu1 %v7070_v12  ;;  %3035 = vmatprep.subr.bf16.mxu0 %v7075_v20  ;;  %v7135_v12 = vld [vmem:[%s10162_s3 + $0x6a4] ss:$16 sps:$4 sm:$0xff]   ;;  %v7133_v20 = vld [vmem:[%s10162_s3 + $0x6a0] ss:$16 sps:$4 sm:$0xff]  }
 0x1b5   : > { %2471 = vmatmul.mubr.bf16.gmra.mxu0 %v8534_v19  ;;  %3118 = vmatprep.subr.bf16.mxu1 %v7078_v41  ;;  %v7136_v41 = vld [vmem:[%s10162_s3 + $0x6a8] ss:$16 sps:$4 sm:$0xff]  }
 0x1b6   : > { %2554 = vmatmul.mubr.bf16.gmra.mxu1 %v8534_v19  ;;  %3051 = vmatprep.mubr.bf16.mxu0 %v8259_v7 }
 0x1b7   : > { %3036 = vmatpush2.bf16.msra.mxu0 %v7073_v59  ;;  %3134 = vmatprep.mubr.bf16.mxu1 %v8259_v7  ;;  %v7085_v7 = vld [vmem:[%s10162_s3 + $0x5a0] ss:$16 sps:$4 sm:$0xff]   ;;  %v7141_v59 = vld [vmem:[%s10162_s3 + $0x684] ss:$16 sps:$4 sm:$0xff]  }
 0x1b8   : > { %3119 = vmatpush2.bf16.msra.mxu1 %v7076_v29  ;;  %3037 = vmatprep.subr.bf16.mxu0 %v7081_v3  ;;  %v7144_v29 = vld [vmem:[%s10162_s3 + $0x68c] ss:$16 sps:$4 sm:$0xff]   ;;  %v7139_v3 = vld [vmem:[%s10162_s3 + $0x680] ss:$16 sps:$4 sm:$0xff]  }
 0x1b9   : > { %3120 = vmatprep.subr.bf16.mxu1 %v7084_v31  ;;  %v7142_v31 = vld [vmem:[%s10162_s3 + $0x688] ss:$16 sps:$4 sm:$0xff]  }
 0x1bb   : > { %3038 = vmatpush2.bf16.msra.mxu0 %v7079_v58  ;;  %v7147_v58 = vld [vmem:[%s10162_s3 + $0x664] ss:$16 sps:$4 sm:$0xff]  }
 0x1bc   : > { %3121 = vmatpush2.bf16.msra.mxu1 %v7082_v46  ;;  %3039 = vmatprep.subr.bf16.mxu0 %v7087_v8  ;;  %v7150_v46 = vld [vmem:[%s10162_s3 + $0x66c] ss:$16 sps:$4 sm:$0xff]   ;;  %v7145_v8 = vld [vmem:[%s10162_s3 + $0x660] ss:$16 sps:$4 sm:$0xff]  }
 0x1bd   : > { %3122 = vmatprep.subr.bf16.mxu1 %v7090_v52  ;;  %v7148_v52 = vld [vmem:[%s10162_s3 + $0x668] ss:$16 sps:$4 sm:$0xff]  }
 0x1bf   : > { %3040 = vmatpush2.bf16.msra.mxu0 %v7085_v7  ;;  %v7153_v7 = vld [vmem:[%s10162_s3 + $0x644] ss:$16 sps:$4 sm:$0xff]  }
 0x1c0   : > { %3123 = vmatpush2.bf16.msra.mxu1 %v7088_v16  ;;  %3041 = vmatprep.subr.bf16.mxu0 %v7093_v39  ;;  %v7156_v16 = vld [vmem:[%s10162_s3 + $0x64c] ss:$16 sps:$4 sm:$0xff]   ;;  %v7151_v39 = vld [vmem:[%s10162_s3 + $0x640] ss:$16 sps:$4 sm:$0xff]  }
 0x1c1   : > { %3124 = vmatprep.subr.bf16.mxu1 %v7096_v1  ;;  %v7154_v1 = vld [vmem:[%s10162_s3 + $0x648] ss:$16 sps:$4 sm:$0xff]  }
 0x1c3   : > { %3042 = vmatpush2.bf16.msra.mxu0 %v7091_v24  ;;  %v7159_v24 = vld [vmem:[%s10162_s3 + $0x624] ss:$16 sps:$4 sm:$0xff]  }
 0x1c4   : > { %3125 = vmatpush2.bf16.msra.mxu1 %v7094_v40  ;;  %3043 = vmatprep.subr.bf16.mxu0 %v7099_v28  ;;  %v7162_v40 = vld [vmem:[%s10162_s3 + $0x62c] ss:$16 sps:$4 sm:$0xff]   ;;  %v7157_v28 = vld [vmem:[%s10162_s3 + $0x620] ss:$16 sps:$4 sm:$0xff]  }
 0x1c5   : > { %3126 = vmatprep.subr.bf16.mxu1 %v7102_v42  ;;  %v7160_v42 = vld [vmem:[%s10162_s3 + $0x628] ss:$16 sps:$4 sm:$0xff]  }
 0x1c7   : > { %3044 = vmatpush2.bf16.msra.mxu0 %v7097_v57  ;;  %v7165_v57 = vld [vmem:[%s10162_s3 + $0x604] ss:$16 sps:$4 sm:$0xff]  }
 0x1c8   : > { %3127 = vmatpush2.bf16.msra.mxu1 %v7100_v17  ;;  %3045 = vmatprep.subr.bf16.mxu0 %v7105_v32  ;;  %v7168_v17 = vld [vmem:[%s10162_s3 + $0x60c] ss:$16 sps:$4 sm:$0xff]   ;;  %v7163_v32 = vld [vmem:[%s10162_s3 + $0x600] ss:$16 sps:$4 sm:$0xff]  }
 0x1c9   : > { %3128 = vmatprep.subr.bf16.mxu1 %v7108_v44  ;;  %v7166_v44 = vld [vmem:[%s10162_s3 + $0x608] ss:$16 sps:$4 sm:$0xff]  }
 0x1cb   : > { %3046 = vmatpush2.bf16.msra.mxu0 %v7103_v60  ;;  %v7171_v60 = vld [vmem:[%s10162_s3 + $0x7e4] ss:$16 sps:$4 sm:$0xff]  }
 0x1cc   : > { %3129 = vmatpush2.bf16.msra.mxu1 %v7106_v33  ;;  %3047 = vmatprep.subr.bf16.mxu0 %v7111_v36  ;;  %v7174_v33 = vld [vmem:[%s10162_s3 + $0x7ec] ss:$16 sps:$4 sm:$0xff]   ;;  %v7169_v36 = vld [vmem:[%s10162_s3 + $0x7e0] ss:$16 sps:$4 sm:$0xff]  }
 0x1cd   : > { %3130 = vmatprep.subr.bf16.mxu1 %v7114_v54  ;;  %v7172_v54 = vld [vmem:[%s10162_s3 + $0x7e8] ss:$16 sps:$4 sm:$0xff]  }
 0x1cf   : > { %3048 = vmatpush2.bf16.msra.mxu0 %v7109_v56  ;;  %v7177_v56 = vld [vmem:[%s10162_s3 + $0x7c4] ss:$16 sps:$4 sm:$0xff]  }
 0x1d0   : > { %3131 = vmatpush2.bf16.msra.mxu1 %v7112_v45  ;;  %3049 = vmatprep.subr.bf16.mxu0 %v7117_v0  ;;  %v7180_v45 = vld [vmem:[%s10162_s3 + $0x7cc] ss:$16 sps:$4 sm:$0xff]   ;;  %v7175_v0 = vld [vmem:[%s10162_s3 + $0x7c0] ss:$16 sps:$4 sm:$0xff]  }
 0x1d1   : > { %3132 = vmatprep.subr.bf16.mxu1 %v7120_v11  ;;  %v7178_v11 = vld [vmem:[%s10162_s3 + $0x7c8] ss:$16 sps:$4 sm:$0xff]  }
 0x1d3   : > { %3050 = vmatpush2.bf16.msra.mxu0 %v7115_v50  ;;  %v7183_v50 = vld [vmem:[%s10162_s3 + $0x7a4] ss:$16 sps:$4 sm:$0xff]  }
 0x1d4   : > { %3133 = vmatpush2.bf16.msra.mxu1 %v7118_v14  ;;  %3640 = vmatprep.subr.bf16.mxu0 %v7123_v18  ;;  %v7186_v14 = vld [vmem:[%s10162_s3 + $0x7ac] ss:$16 sps:$4 sm:$0xff]   ;;  %v7184_v18 = vld [vmem:[%s10162_s3 + $0x7a8] ss:$16 sps:$4 sm:$0xff]  }
 0x1d5   : > { %3723 = vmatprep.subr.bf16.mxu1 %v7126_v9  ;;  %v7189_v9 = vld [vmem:[%s10162_s3 + $0x784] ss:$16 sps:$4 sm:$0xff]  }
 0x1d6   : > { %3052 = vmatmul.mubr.bf16.vlgmr.msra.gmra.mxu0 %v8293_v15 }
 0x1d7   : > { %3135 = vmatmul.mubr.bf16.vlgmr.msra.gmra.mxu1 %v8293_v15  ;;  %3061 = vmatprep.mubr.bf16.mxu0 %v8273_v4  ;;  %v7138_v15 = vld [vmem:[%s10162_s3 + $0x6ac] ss:$16 sps:$4 sm:$0xff]  }
 0x1d8   : > { %3144 = vmatprep.mubr.bf16.mxu1 %v8273_v4  ;;  %3641 = vmatpush1.bf16.msra.mxu0 %v7121_v55  ;;  %v7192_v55 = vld [vmem:[%s10162_s3 + $0x78c] ss:$16 sps:$4 sm:$0xff]  }
 0x1d9   : > { %3724 = vmatpush1.bf16.msra.mxu1 %v7124_v6  ;;  %3642 = vmatprep.subr.bf16.mxu0 %v7129_v22  ;;  %v7187_v6 = vld [vmem:[%s10162_s3 + $0x780] ss:$16 sps:$4 sm:$0xff]   ;;  %v7190_v22 = vld [vmem:[%s10162_s3 + $0x788] ss:$16 sps:$4 sm:$0xff]  }
 0x1da   : > { %3725 = vmatprep.subr.bf16.mxu1 %v7132_v61  ;;  %v7195_v61 = vld [vmem:[%s10162_s3 + $0x764] ss:$16 sps:$4 sm:$0xff]  }
 0x1dc   : > { %3643 = vmatpush1.bf16.msra.mxu0 %v7127_v49  ;;  %v7198_v49 = vld [vmem:[%s10162_s3 + $0x76c] ss:$16 sps:$4 sm:$0xff]  }
 0x1dd   : > { %3726 = vmatpush1.bf16.msra.mxu1 %v7130_v27  ;;  %3644 = vmatprep.subr.bf16.mxu0 %v7135_v12  ;;  %v7193_v27 = vld [vmem:[%s10162_s3 + $0x760] ss:$16 sps:$4 sm:$0xff]   ;;  %v7196_v12 = vld [vmem:[%s10162_s3 + $0x768] ss:$16 sps:$4 sm:$0xff]  }
 0x1de   : > { %3062 = vmatmul.mubr.bf16.gmra.mxu0 %v8269_v63  ;;  %3727 = vmatprep.subr.bf16.mxu1 %v7138_v15  ;;  %v7201_v15 = vld [vmem:[%s10162_s3 + $0x744] ss:$16 sps:$4 sm:$0xff]  }
 0x1df   : > { %3145 = vmatmul.mubr.bf16.gmra.mxu1 %v8269_v63  ;;  %3071 = vmatprep.mubr.bf16.mxu0 %v8382_v53 }
 0x1e0   : > { %3154 = vmatprep.mubr.bf16.mxu1 %v8382_v53  ;;  %3645 = vmatpush1.bf16.msra.mxu0 %v7133_v20  ;;  %v7204_v20 = vld [vmem:[%s10162_s3 + $0x74c] ss:$16 sps:$4 sm:$0xff]  }
 0x1e1   : > { %3728 = vmatpush1.bf16.msra.mxu1 %v7136_v41  ;;  %3646 = vmatprep.subr.bf16.mxu0 %v7141_v59  ;;  %v7199_v41 = vld [vmem:[%s10162_s3 + $0x740] ss:$16 sps:$4 sm:$0xff]   ;;  %v7202_v59 = vld [vmem:[%s10162_s3 + $0x748] ss:$16 sps:$4 sm:$0xff]  }
 0x1e2   : > { %3729 = vmatprep.subr.bf16.mxu1 %v7144_v29  ;;  %v7207_v29 = vld [vmem:[%s10162_s3 + $0x724] ss:$16 sps:$4 sm:$0xff]  }
 0x1e4   : > { %3647 = vmatpush1.bf16.msra.mxu0 %v7139_v3  ;;  %v7210_v3 = vld [vmem:[%s10162_s3 + $0x72c] ss:$16 sps:$4 sm:$0xff]  }
 0x1e5   : > { %3730 = vmatpush1.bf16.msra.mxu1 %v7142_v31  ;;  %3648 = vmatprep.subr.bf16.mxu0 %v7147_v58  ;;  %v7205_v31 = vld [vmem:[%s10162_s3 + $0x720] ss:$16 sps:$4 sm:$0xff]   ;;  %v7208_v58 = vld [vmem:[%s10162_s3 + $0x728] ss:$16 sps:$4 sm:$0xff]  }
 0x1e6   : > { %3072 = vmatmul.mubr.bf16.gmra.mxu0 %v8393_v25  ;;  %3731 = vmatprep.subr.bf16.mxu1 %v7150_v46  ;;  %v7213_v46 = vld [vmem:[%s10162_s3 + $0x704] ss:$16 sps:$4 sm:$0xff]  }
 0x1e7   : > { %3155 = vmatmul.mubr.bf16.gmra.mxu1 %v8393_v25  ;;  %3081 = vmatprep.mubr.bf16.mxu0 %v8461_v13 }
 0x1e8   : > { %3164 = vmatprep.mubr.bf16.mxu1 %v8461_v13  ;;  %3649 = vmatpush1.bf16.msra.mxu0 %v7145_v8  ;;  %v7216_v8 = vld [vmem:[%s10162_s3 + $0x70c] ss:$16 sps:$4 sm:$0xff]  }
 0x1e9   : > { %3732 = vmatpush1.bf16.msra.mxu1 %v7148_v52  ;;  %3650 = vmatprep.subr.bf16.mxu0 %v7153_v7  ;;  %v7211_v52 = vld [vmem:[%s10162_s3 + $0x700] ss:$16 sps:$4 sm:$0xff]   ;;  %v941_v7 = vpop.f32.mrf.mxu0 }
 0x1ea   : > { %3733 = vmatprep.subr.bf16.mxu1 %v7156_v16  ;;  %v1094_v16 = vpop.f32.mrf.mxu1 }
 0x1ec   : > { %3651 = vmatpush1.bf16.msra.mxu0 %v7151_v39  ;;  %v7214_v39 = vld [vmem:[%s10162_s3 + $0x708] ss:$16 sps:$4 sm:$0xff]  }
 0x1ed   : > { %3734 = vmatpush1.bf16.msra.mxu1 %v7154_v1  ;;  %3652 = vmatprep.subr.bf16.mxu0 %v7159_v24  ;;  %v7219_v1 = vld [vmem:[%s10162_s3 + $0x8e4] ss:$16 sps:$4 sm:$0xff]   ;;  %v7222_v24 = vld [vmem:[%s10162_s3 + $0x8ec] ss:$16 sps:$4 sm:$0xff]  }
 0x1ee   : > { %3082 = vmatmul.mubr.bf16.gmra.mxu0 %v8455_v21  ;;  %3735 = vmatprep.subr.bf16.mxu1 %v7162_v40 }
 0x1ef   : > { %3165 = vmatmul.mubr.bf16.gmra.mxu1 %v8455_v21  ;;  %3091 = vmatprep.mubr.bf16.mxu0 %v8538_v62 }
 0x1f0   : > { %3174 = vmatprep.mubr.bf16.mxu1 %v8538_v62  ;;  %3653 = vmatpush1.bf16.msra.mxu0 %v7157_v28 }
 0x1f1   : > { %3736 = vmatpush1.bf16.msra.mxu1 %v7160_v42  ;;  %3654 = vmatprep.subr.bf16.mxu0 %v7165_v57  ;;  %v7217_v42 = vld [vmem:[%s10162_s3 + $0x8e0] ss:$16 sps:$4 sm:$0xff]  }
 0x1f2   : > { %3737 = vmatprep.subr.bf16.mxu1 %v7168_v17 }
 0x1f4   : > { %3655 = vmatpush1.bf16.msra.mxu0 %v7163_v32  ;;  %v7220_v32 = vld [vmem:[%s10162_s3 + $0x8e8] ss:$16 sps:$4 sm:$0xff]  }
 0x1f5   : > { %3738 = vmatpush1.bf16.msra.mxu1 %v7166_v44  ;;  %3656 = vmatprep.subr.bf16.mxu0 %v7171_v60  ;;  %v7225_v44 = vld [vmem:[%s10162_s3 + $0x8c4] ss:$16 sps:$4 sm:$0xff]   ;;  %v7228_v60 = vld [vmem:[%s10162_s3 + $0x8cc] ss:$16 sps:$4 sm:$0xff]  }
 0x1f6   : > { %3092 = vmatmul.mubr.bf16.gmra.mxu0 %v8544_v5  ;;  %3739 = vmatprep.subr.bf16.mxu1 %v7174_v33 }
 0x1f7   : > { %3175 = vmatmul.mubr.bf16.gmra.mxu1 %v8544_v5  ;;  %3672 = vmatprep.mubr.bf16.mxu0 %v8607_v2 }
 0x1f8   : > { %3657 = vmatpush2.bf16.msra.mxu0 %v7169_v36  ;;  %3755 = vmatprep.mubr.bf16.mxu1 %v8607_v2  ;;  %v7181_v2 = vld [vmem:[%s10162_s3 + $0x7a0] ss:$16 sps:$4 sm:$0xff]  }
 0x1f9   : > { %3740 = vmatpush2.bf16.msra.mxu1 %v7172_v54  ;;  %3658 = vmatprep.subr.bf16.mxu0 %v7177_v56  ;;  %v7223_v54 = vld [vmem:[%s10162_s3 + $0x8c0] ss:$16 sps:$4 sm:$0xff]  }
 0x1fa   : > { %3741 = vmatprep.subr.bf16.mxu1 %v7180_v45 }
 0x1fc   : > { %3659 = vmatpush2.bf16.msra.mxu0 %v7175_v0  ;;  %v7226_v0 = vld [vmem:[%s10162_s3 + $0x8c8] ss:$16 sps:$4 sm:$0xff]  }
 0x1fd   : > { %3742 = vmatpush2.bf16.msra.mxu1 %v7178_v11  ;;  %3660 = vmatprep.subr.bf16.mxu0 %v7183_v50  ;;  %v1095_v11 = vadd.f32 %v1094_v16, %v7983_v48  ;;  %v7234_v50 = vld [vmem:[%s10162_s3 + $0x8ac] ss:$16 sps:$4 sm:$0xff]  }
 0x1fe   : > { %3743 = vmatprep.subr.bf16.mxu1 %v7186_v14 }
 0x200   : > { %3661 = vmatpush2.bf16.msra.mxu0 %v7181_v2 }
 0x201   : > { %3744 = vmatpush2.bf16.msra.mxu1 %v7184_v18  ;;  %3662 = vmatprep.subr.bf16.mxu0 %v7189_v9  ;;  %v10208_v18 = vld [vmem:[#allocation12_spill] sm:$0xff] }
 0x202   : > { %3745 = vmatprep.subr.bf16.mxu1 %v7192_v55  ;;  %v882_v9 = vadd.f32 %v10208_v18, %v7979_v47  ;;  %v10209_v55 = vld [vmem:[#allocation13_spill] sm:$0xff] }
 0x204   : > { %3663 = vmatpush2.bf16.msra.mxu0 %v7187_v6  ;;  %v1035_v6 = vadd.f32 %v10209_v55, %v7983_v48  ;;  %v7253_v55 = vld [vmem:[%s10162_s3 + $0x820] ss:$16 sps:$4 sm:$0xff]  }
 0x205   : > { %3746 = vmatpush2.bf16.msra.mxu1 %v7190_v22  ;;  %3664 = vmatprep.subr.bf16.mxu0 %v7195_v61  ;;  %v7229_v22 = vld [vmem:[%s10162_s3 + $0x8a0] ss:$16 sps:$4 sm:$0xff]  }
 0x206   : > { %3747 = vmatprep.subr.bf16.mxu1 %v7198_v49 }
 0x208   : > { %3665 = vmatpush2.bf16.msra.mxu0 %v7193_v27  ;;  %v7232_v27 = vld [vmem:[%s10162_s3 + $0x8a8] ss:$16 sps:$4 sm:$0xff]  }
 0x209   : > { %3748 = vmatpush2.bf16.msra.mxu1 %v7196_v12  ;;  %3666 = vmatprep.subr.bf16.mxu0 %v7201_v15  ;;  %v1144_v12 = vmax.f32 %v1035_v6, %v1095_v11  ;;  %v7240_v15 = vld [vmem:[%s10162_s3 + $0x88c] ss:$16 sps:$4 sm:$0xff]   ;;  %v7250_v11 = vld [vmem:[%s10162_s3 + $0x848] ss:$16 sps:$4 sm:$0xff]  }
 0x20a   : > { %3749 = vmatprep.subr.bf16.mxu1 %v7204_v20 }
 0x20b   : > { %vm1192_vm1 = vcmp.ge.f32.partialorder %v1144_v12, 0.0 }
 0x20c   : > { %3667 = vmatpush2.bf16.msra.mxu0 %v7199_v41 }
 0x20d   : > { %3750 = vmatpush2.bf16.msra.mxu1 %v7202_v59  ;;  %3668 = vmatprep.subr.bf16.mxu0 %v7207_v29  ;;  %v7235_v59 = vld [vmem:[%s10162_s3 + $0x880] ss:$16 sps:$4 sm:$0xff]  }
 0x20e   : > { %3751 = vmatprep.subr.bf16.mxu1 %v7210_v3 }
 0x210   : > { %3669 = vmatpush2.bf16.msra.mxu0 %v7205_v31  ;;  %v7238_v31 = vld [vmem:[%s10162_s3 + $0x888] ss:$16 sps:$4 sm:$0xff]  }
 0x211   : > { %3752 = vmatpush2.bf16.msra.mxu1 %v7208_v58  ;;  %3670 = vmatprep.subr.bf16.mxu0 %v7213_v46  ;;  %v1240_v58 = vmul.f32 0.01, %v1144_v12  ;;  %v7246_v46 = vld [vmem:[%s10162_s3 + $0x86c] ss:$16 sps:$4 sm:$0xff]  }
 0x212   : > { %3753 = vmatprep.subr.bf16.mxu1 %v7216_v8 }
 0x214   : > { %v9049_v40 = vpop.f32.mrf.mxu0  ;;  %v9051_v28 = vpop.f32.mrf.mxu1  ;;  %3671 = vmatpush2.bf16.msra.mxu0 %v7211_v52 }
 0x215   : > { %3754 = vmatpush2.bf16.msra.mxu1 %v7214_v39  ;;  %4261 = vmatprep.subr.bf16.mxu0 %v7219_v1  ;;  %v7244_v1 = vld [vmem:[%s10162_s3 + $0x868] ss:$16 sps:$4 sm:$0xff]  }
 0x216   : > { %v9056_v57 = vpop.f32.mrf.mxu0  ;;  %v9058_v17 = vpop.f32.mrf.mxu1  ;;  %4344 = vmatprep.subr.bf16.mxu1 %v7222_v24  ;;  %v7249_v24 = vld [vmem:[%s10162_s3 + $0x844] ss:$16 sps:$4 sm:$0xff]  }
 0x217   : > { %3673 = vmatmul.mubr.bf16.vlgmr.msra.gmra.mxu0 %v8631_v35 }
 0x218   : > { %v9070_v33 = vpop.f32.mrf.mxu0  ;;  %v9072_v36 = vpop.f32.mrf.mxu1  ;;  %3756 = vmatmul.mubr.bf16.vlgmr.msra.gmra.mxu1 %v8631_v35  ;;  %3682 = vmatprep.mubr.bf16.mxu0 %v8641_v37  ;;  %v7231_v35 = vld [vmem:[%s10162_s3 + $0x8a4] ss:$16 sps:$4 sm:$0xff]  }
 0x219   : > { %3765 = vmatprep.mubr.bf16.mxu1 %v8641_v37  ;;  %4262 = vmatpush1.bf16.msra.mxu0 %v7217_v42  ;;  %v942_v37 = vadd.f32 %v941_v7, %v7979_v47  ;;  %v7237_v47 = vld [vmem:[%s10162_s3 + $0x884] ss:$16 sps:$4 sm:$0xff]   ;;  %v7241_v7 = vld [vmem:[%s10162_s3 + $0x860] ss:$16 sps:$4 sm:$0xff]   ;;  %v7252_v42 = vld [vmem:[%s10162_s3 + $0x84c] ss:$16 sps:$4 sm:$0xff]  }
 0x21a   : > { %v9080_v56 = vpop.f32.mrf.mxu0  ;;  %v9082_v45 = vpop.f32.mrf.mxu1  ;;  %4345 = vmatpush1.bf16.msra.mxu1 %v7220_v32  ;;  %4263 = vmatprep.subr.bf16.mxu0 %v7225_v44 }
 0x21b   : > { %4346 = vmatprep.subr.bf16.mxu1 %v7228_v60  ;;  %v1142_v48 = vmax.f32 %v882_v9, %v942_v37 }
 0x21c   : > { %v9095_v14 = vpop.f32.mrf.mxu0  ;;  %v9097_v2 = vpop.f32.mrf.mxu1 }
 0x21d   : > { %4264 = vmatpush1.bf16.msra.mxu0 %v7223_v54  ;;  %vm1190_vm0 = vcmp.ge.f32.partialorder %v1142_v48, 0.0  ;;  %v1288_v54 = vsel %vm1192_vm1, %v1144_v12, %v1240_v58  ;;  %v7264_v12 = vld [vmem:[%s10162_s3 + $0x80c] ss:$16 sps:$4 sm:$0xff]   ;;  %v7267_v58 = vld [vmem:[%s10162_s3 + $0x9e4] ss:$16 sps:$4 sm:$0xff]  }
 0x21e   : > { %v9106_v61 = vpop.f32.mrf.mxu0  ;;  %v9108_v49 = vpop.f32.mrf.mxu1  ;;  %4347 = vmatpush1.bf16.msra.mxu1 %v7226_v0  ;;  %4265 = vmatprep.subr.bf16.mxu0 %v7231_v35  ;;  %v7247_v0 = vld [vmem:[%s10162_s3 + $0x840] ss:$16 sps:$4 sm:$0xff]  }
 0x21f   : > { %3683 = vmatmul.mubr.bf16.gmra.mxu0 %v8667_v51  ;;  %4348 = vmatprep.subr.bf16.mxu1 %v7234_v50  ;;  %v7258_v50 = vld [vmem:[%s10162_s3 + $0x82c] ss:$16 sps:$4 sm:$0xff]  }
 0x220   : > { %v9120_v20 = vpop.f32.mrf.mxu0  ;;  %v9122_v41 = vpop.f32.mrf.mxu1  ;;  %3766 = vmatmul.mubr.bf16.gmra.mxu1 %v8667_v51  ;;  %3692 = vmatprep.mubr.bf16.mxu0 %v8677_v34  ;;  %v7243_v51 = vld [vmem:[%s10162_s3 + $0x864] ss:$16 sps:$4 sm:$0xff]  }
 0x221   : > { %3775 = vmatprep.mubr.bf16.mxu1 %v8677_v34  ;;  %4266 = vmatpush1.bf16.msra.mxu0 %v7229_v22  ;;  %v1238_v34 = vmul.f32 0.01, %v1142_v48  ;;  %v7256_v22 = vld [vmem:[%s10162_s3 + $0x828] ss:$16 sps:$4 sm:$0xff]  }
 0x222   : > { %v9130_v29 = vpop.f32.mrf.mxu0  ;;  %v9132_v3 = vpop.f32.mrf.mxu1  ;;  %4349 = vmatpush1.bf16.msra.mxu1 %v7232_v27  ;;  %4267 = vmatprep.subr.bf16.mxu0 %v7237_v47 }
 0x223   : > { %4350 = vmatprep.subr.bf16.mxu1 %v7240_v15  ;;  %v1286_v60 = vsel %vm1190_vm0, %v1142_v48, %v1238_v34  ;;  %v7261_v48 = vld [vmem:[%s10162_s3 + $0x804] ss:$16 sps:$4 sm:$0xff]  }
 0x224   : > { %v9143_v8 = vpop.f32.mrf.mxu0  ;;  %v9145_v52 = vpop.f32.mrf.mxu1 }
 0x225   : > { %4268 = vmatpush1.bf16.msra.mxu0 %v7235_v59 }
 0x226   : > { %v9150_v16 = vpop.f32.mrf.mxu0  ;;  %v9152_v39 = vpop.f32.mrf.mxu1  ;;  %4351 = vmatpush1.bf16.msra.mxu1 %v7238_v31  ;;  %4269 = vmatprep.subr.bf16.mxu0 %v7243_v51  ;;  %v7259_v31 = vld [vmem:[%s10162_s3 + $0x800] ss:$16 sps:$4 sm:$0xff]  }
 0x227   : > { %3693 = vmatmul.mubr.bf16.gmra.mxu0 %v8703_v30  ;;  %4352 = vmatprep.subr.bf16.mxu1 %v7246_v46  ;;  %v7270_v46 = vld [vmem:[%s10162_s3 + $0x9ec] ss:$16 sps:$4 sm:$0xff]  }
 0x228   : > { %v9164_v32 = vpop.f32.mrf.mxu0  ;;  %v9166_v44 = vpop.f32.mrf.mxu1  ;;  %3776 = vmatmul.mubr.bf16.gmra.mxu1 %v8703_v30  ;;  %3702 = vmatprep.mubr.bf16.mxu0 %v8713_v43  ;;  %v7255_v30 = vld [vmem:[%s10162_s3 + $0x824] ss:$16 sps:$4 sm:$0xff]  }
 0x229   : > { %3785 = vmatprep.mubr.bf16.mxu1 %v8713_v43  ;;  %4270 = vmatpush1.bf16.msra.mxu0 %v7241_v7  ;;  %v9184_v43 = vmax.f32 %v1286_v60, %v1288_v54  ;;  %v10210_v7 = vld [vmem:[#allocation10_spill] sm:$0xff] }
 0x22a   : > { %v9174_v35 = vpop.f32.mrf.mxu0  ;;  %v9176_v37 = vpop.f32.mrf.mxu1  ;;  %4353 = vmatpush1.bf16.msra.mxu1 %v7244_v1  ;;  %4271 = vmatprep.subr.bf16.mxu0 %v7249_v24  ;;  %v10211_v1 = vsub.s32 0, %v10210_v7  ;;  %v7265_v54 = vld [vmem:[%s10162_s3 + $0x9e0] ss:$16 sps:$4 sm:$0xff]  }
 0x22b   : > { %4354 = vmatprep.subr.bf16.mxu1 %v7252_v42  ;;  %v3254_v27 = vpack.c.bf16 %v9184_v43, %v8503_v23  ;;  %v9220_v23 = vld [vmem:[%s10163_s4] sm:$0xf]  ;;  %v10212_v42 = vsub.s32 2, %v10210_v7 }
 0x22c   : > { %v9189_v18 = vpop.f32.mrf.mxu0  ;;  %v9241_v24 = vrot.slane %v9220_v23, %v10211_v1  ;;  %v7279_v1 = vld [vmem:[%s10162_s3 + $0x9a4] ss:$16 sps:$4 sm:$0xff]  }
 0x22d   : > { %v9191_v9 = vpop.f32.mrf.mxu1  ;;  %4272 = vmatpush1.bf16.msra.mxu0 %v7247_v0  ;;  %v9246_v60 = vrot.slane %v9220_v23, %v10212_v42  ;;  %v7282_v42 = vld [vmem:[%s10162_s3 + $0x9ac] ss:$16 sps:$4 sm:$0xff]  }
 0x22e   : > { %v9196_v6 = vpop.f32.mrf.mxu0  ;;  %4355 = vmatpush1.bf16.msra.mxu1 %v7250_v11  ;;  %4273 = vmatprep.subr.bf16.mxu0 %v7255_v30  ;;  %v7268_v11 = vld [vmem:[%s10162_s3 + $0x9e8] ss:$16 sps:$4 sm:$0xff]  }
 0x22f   : > { %v9203_v47 = vpop.f32.mrf.mxu1  ;;  %3703 = vmatmul.mubr.bf16.gmra.mxu0 %v8534_v19  ;;  %4356 = vmatprep.subr.bf16.mxu1 %v7258_v50 }
 0x230   : > { %v9212_v15 = vpop.f32.mrf.mxu0  ;;  %3786 = vmatmul.mubr.bf16.gmra.mxu1 %v8534_v19  ;;  %3712 = vmatprep.mubr.bf16.mxu0 %v3254_v27  ;;  %v7262_v19 = vld [vmem:[%s10162_s3 + $0x808] ss:$16 sps:$4 sm:$0xff]  }
 0x231   : > { %v9215_v59 = vpop.f32.mrf.mxu1  ;;  %3795 = vmatprep.mubr.bf16.mxu1 %v3254_v27  ;;  %4274 = vmatpush1.bf16.msra.mxu0 %v7253_v55  ;;  %v7273_v55 = vld [vmem:[%s10162_s3 + $0x9c4] ss:$16 sps:$4 sm:$0xff]  }
 0x232   : > { %v9225_v51 = vpop.f32.mrf.mxu0  ;;  %4357 = vmatpush1.bf16.msra.mxu1 %v7256_v22  ;;  %4275 = vmatprep.subr.bf16.mxu0 %v7261_v48  ;;  %v7276_v48 = vld [vmem:[%s10162_s3 + $0x9cc] ss:$16 sps:$4 sm:$0xff]  }
 0x233   : > { %v9230_v34 = vpop.f32.mrf.mxu1  ;;  %4358 = vmatprep.subr.bf16.mxu1 %v7264_v12 }
 0x235   : > { %4276 = vmatpush1.bf16.msra.mxu0 %v7259_v31  ;;  %v1830_v0 = vpop.f32.mrf.mxu0  ;;  %v7271_v31 = vld [vmem:[%s10162_s3 + $0x9c0] ss:$16 sps:$4 sm:$0xff]  }
 0x236   : > { %4359 = vmatpush1.bf16.msra.mxu1 %v7262_v19  ;;  %4277 = vmatprep.subr.bf16.mxu0 %v7267_v58  ;;  %v9255_v30 = vadd.f32 %v9241_v24, %v1830_v0  ;;  %v1913_v50 = vpop.f32.mrf.mxu1  ;;  %v7274_v58 = vld [vmem:[%s10162_s3 + $0x9c8] ss:$16 sps:$4 sm:$0xff]  }
 0x237   : > { %3713 = vmatmul.mubr.bf16.gmra.mxu0 %v8547_v10  ;;  %4360 = vmatprep.subr.bf16.mxu1 %v7270_v46  ;;  %v9262_v22 = vadd.f32 %v9246_v60, %v1913_v50  ;;  %v9264_v27 = vpop.f32.mrf.mxu0  ;;  %v7280_v0 = vld [vmem:[%s10162_s3 + $0x9a8] ss:$16 sps:$4 sm:$0xff]   ;;  %v7288_v50 = vld [vmem:[%s10162_s3 + $0x98c] ss:$16 sps:$4 sm:$0xff]  }
 0x238   : > { %3796 = vmatmul.mubr.bf16.gmra.mxu1 %v8547_v10  ;;  %4293 = vmatprep.mubr.bf16.mxu0 %v8273_v4  ;;  %v9271_v12 = vpop.f32.mrf.mxu1 }
 0x239   : > { %4278 = vmatpush2.bf16.msra.mxu0 %v7265_v54  ;;  %4376 = vmatprep.mubr.bf16.mxu1 %v8273_v4  ;;  %v1834_v19 = vpop.f32.mrf.mxu0  ;;  %v7277_v54 = vld [vmem:[%s10162_s3 + $0x9a0] ss:$16 sps:$4 sm:$0xff]  }
 0x23a   : > { %4361 = vmatpush2.bf16.msra.mxu1 %v7268_v11  ;;  %4279 = vmatprep.subr.bf16.mxu0 %v7273_v55  ;;  %v9281_v10 = vadd.f32 %v9241_v24, %v1834_v19  ;;  %v1917_v46 = vpop.f32.mrf.mxu1  ;;  %v7285_v11 = vld [vmem:[%s10162_s3 + $0x984] ss:$16 sps:$4 sm:$0xff]   ;;  %v7283_v55 = vld [vmem:[%s10162_s3 + $0x980] ss:$16 sps:$4 sm:$0xff]   ;;  %v7294_v19 = vld [vmem:[%s10162_s3 + $0x96c] ss:$16 sps:$4 sm:$0xff]  }
 0x23b   : > { %4362 = vmatprep.subr.bf16.mxu1 %v7276_v48  ;;  %v9287_v4 = vadd.f32 %v9246_v60, %v1917_v46  ;;  %v7286_v48 = vld [vmem:[%s10162_s3 + $0x988] ss:$16 sps:$4 sm:$0xff]  }
 0x23c   : > { %v7292_v46 = vld [vmem:[%s10162_s3 + $0x968] ss:$16 sps:$4 sm:$0xff]  }
 0x23d   : > { %10213 = vst [vmem:[#allocation14_spill] sm:$0xff] %v9287_v4  ;;  %4280 = vmatpush2.bf16.msra.mxu0 %v7271_v31  ;;  %v7291_v31 = vld [vmem:[%s10162_s3 + $0x964] ss:$16 sps:$4 sm:$0xff]   ;;  %v1947_v4 = vadd.f32 %v9241_v24, %v9070_v33 }
 0x23e   : > { %4363 = vmatpush2.bf16.msra.mxu1 %v7274_v58  ;;  %4281 = vmatprep.subr.bf16.mxu0 %v7279_v1  ;;  %v7289_v58 = vld [vmem:[%s10162_s3 + $0x960] ss:$16 sps:$4 sm:$0xff]   ;;  %v7297_v1 = vld [vmem:[%s10162_s3 + $0x944] ss:$16 sps:$4 sm:$0xff]  }
 0x23f   : > { %4364 = vmatprep.subr.bf16.mxu1 %v7282_v42  ;;  %v7300_v42 = vld [vmem:[%s10162_s3 + $0x94c] ss:$16 sps:$4 sm:$0xff]  }
 0x241   : > { %4282 = vmatpush2.bf16.msra.mxu0 %v7277_v54  ;;  %v7295_v54 = vld [vmem:[%s10162_s3 + $0x940] ss:$16 sps:$4 sm:$0xff]  }
 0x242   : > { %4365 = vmatpush2.bf16.msra.mxu1 %v7280_v0  ;;  %4283 = vmatprep.subr.bf16.mxu0 %v7285_v11  ;;  %v7298_v0 = vld [vmem:[%s10162_s3 + $0x948] ss:$16 sps:$4 sm:$0xff]   ;;  %v7303_v11 = vld [vmem:[%s10162_s3 + $0x924] ss:$16 sps:$4 sm:$0xff]  }
 0x243   : > { %4366 = vmatprep.subr.bf16.mxu1 %v7288_v50  ;;  %v7306_v50 = vld [vmem:[%s10162_s3 + $0x92c] ss:$16 sps:$4 sm:$0xff]  }
 0x245   : > { %4284 = vmatpush2.bf16.msra.mxu0 %v7283_v55  ;;  %v7301_v55 = vld [vmem:[%s10162_s3 + $0x920] ss:$16 sps:$4 sm:$0xff]  }
 0x246   : > { %4367 = vmatpush2.bf16.msra.mxu1 %v7286_v48  ;;  %4285 = vmatprep.subr.bf16.mxu0 %v7291_v31  ;;  %v7304_v48 = vld [vmem:[%s10162_s3 + $0x928] ss:$16 sps:$4 sm:$0xff]   ;;  %v7309_v31 = vld [vmem:[%s10162_s3 + $0x904] ss:$16 sps:$4 sm:$0xff]  }
 0x247   : > { %4368 = vmatprep.subr.bf16.mxu1 %v7294_v19  ;;  %v7312_v19 = vld [vmem:[%s10162_s3 + $0x90c] ss:$16 sps:$4 sm:$0xff]  }
 0x249   : > { %4286 = vmatpush2.bf16.msra.mxu0 %v7289_v58  ;;  %v7307_v58 = vld [vmem:[%s10162_s3 + $0x900] ss:$16 sps:$4 sm:$0xff]  }
 0x24a   : > { %4369 = vmatpush2.bf16.msra.mxu1 %v7292_v46  ;;  %4287 = vmatprep.subr.bf16.mxu0 %v7297_v1  ;;  %v10214_v46 = vsub.s32 1, %v10210_v7 }
 0x24b   : > { %4370 = vmatprep.subr.bf16.mxu1 %v7300_v42  ;;  %v7310_v42 = vld [vmem:[%s10162_s3 + $0x908] ss:$16 sps:$4 sm:$0xff]  }
 0x24c   : > { %v9358_v1 = vrot.slane %v9220_v23, %v10214_v46 }
 0x24d   : > { %4288 = vmatpush2.bf16.msra.mxu0 %v7295_v54  ;;  %v10215_v54 = vsub.s32 3, %v10210_v7 }
 0x24e   : > { %4371 = vmatpush2.bf16.msra.mxu1 %v7298_v0  ;;  %4289 = vmatprep.subr.bf16.mxu0 %v7303_v11  ;;  %v9368_v11 = vpop.f32.mrf.mxu0  ;;  %v1944_v46 = vadd.f32 %v9358_v1, %v9056_v57  ;;  %v1949_v57 = vadd.f32 %v9246_v60, %v9072_v36 }
 0x24f   : > { %4372 = vmatprep.subr.bf16.mxu1 %v7306_v50  ;;  %v9366_v0 = vrot.slane %v9220_v23, %v10215_v54  ;;  %v1943_v50 = vadd.f32 %v9241_v24, %v9049_v40 }
 0x251   : > { %4290 = vmatpush2.bf16.msra.mxu0 %v7301_v55  ;;  %v9372_v55 = vpop.f32.mrf.mxu1 }
 0x252   : > { %4373 = vmatpush2.bf16.msra.mxu1 %v7304_v48  ;;  %4291 = vmatprep.subr.bf16.mxu0 %v7309_v31  ;;  %v1945_v48 = vadd.f32 %v9246_v60, %v9051_v28 }
 0x253   : > { %4374 = vmatprep.subr.bf16.mxu1 %v7312_v19  ;;  %v1946_v19 = vadd.f32 %v9366_v0, %v9058_v17 }
 0x255   : > { %4292 = vmatpush2.bf16.msra.mxu0 %v7307_v58  ;;  %v2432_v31 = vpop.f32.mrf.mxu0 }
 0x256   : > { %4375 = vmatpush2.bf16.msra.mxu1 %v7310_v42  ;;  %v9378_v7 = vadd.f32 %v2432_v31, %v1943_v50  ;;  %v2515_v23 = vpop.f32.mrf.mxu1  ;;  %v1948_v50 = vadd.f32 %v9358_v1, %v9080_v56  ;;  %v1950_v31 = vadd.f32 %v9366_v0, %v9082_v45  ;;  %v1953_v56 = vadd.f32 %v9246_v60, %v9097_v2 }
 0x257   : > { %v9382_v54 = vadd.f32 %v2515_v23, %v1945_v48  ;;  %v2434_v40 = vpop.f32.mrf.mxu0 }
 0x258   : > { %4294 = vmatmul.mubr.bf16.vlgmr.msra.gmra.mxu0 %v8269_v63  ;;  %v9387_v28 = vadd.f32 %v2434_v40, %v1944_v46  ;;  %v2517_v58 = vpop.f32.mrf.mxu1 }
 0x259   : > { %4377 = vmatmul.mubr.bf16.vlgmr.msra.gmra.mxu1 %v8269_v63  ;;  %4303 = vmatprep.mubr.bf16.mxu0 %v8382_v53  ;;  %v9393_v42 = vadd.f32 %v2517_v58, %v1946_v19  ;;  %v2436_v17 = vpop.f32.mrf.mxu0  ;;  %v1951_v63 = vadd.f32 %v9241_v24, %v9095_v14 }
 0x25a   : > { %4386 = vmatprep.mubr.bf16.mxu1 %v8382_v53  ;;  %v9398_v33 = vadd.f32 %v2436_v17, %v1947_v4  ;;  %v2519_v48 = vpop.f32.mrf.mxu1  ;;  %v1952_v4 = vadd.f32 %v9358_v1, %v9106_v61  ;;  %v1957_v61 = vadd.f32 %v9246_v60, %v9122_v41 }
 0x25b   : > { %v9402_v46 = vadd.f32 %v2519_v48, %v1949_v57  ;;  %v2438_v36 = vpop.f32.mrf.mxu0  ;;  %v1954_v57 = vadd.f32 %v9366_v0, %v9108_v49 }
 0x25c   : > { %v9406_v23 = vadd.f32 %v2438_v36, %v1948_v50  ;;  %v2521_v19 = vpop.f32.mrf.mxu1  ;;  %v1955_v50 = vadd.f32 %v9241_v24, %v9120_v20  ;;  %v1956_v36 = vadd.f32 %v9358_v1, %v9130_v29  ;;  %v1961_v29 = vadd.f32 %v9246_v60, %v9145_v52 }
 0x25d   : > { %v9410_v40 = vadd.f32 %v2521_v19, %v1950_v31  ;;  %v2442_v53 = vpop.f32.mrf.mxu0  ;;  %v1958_v19 = vadd.f32 %v9366_v0, %v9132_v3 }
 0x25e   : > { %v9414_v58 = vadd.f32 %v2442_v53, %v1951_v63  ;;  %v2525_v45 = vpop.f32.mrf.mxu1 }
 0x25f   : > { %v9418_v17 = vadd.f32 %v2525_v45, %v1953_v56  ;;  %v2444_v14 = vpop.f32.mrf.mxu0 }
 0x260   : > { %4304 = vmatmul.mubr.bf16.gmra.mxu0 %v8393_v25  ;;  %v9423_v2 = vadd.f32 %v2444_v14, %v1952_v4  ;;  %v2527_v48 = vpop.f32.mrf.mxu1 }
 0x261   : > { %4387 = vmatmul.mubr.bf16.gmra.mxu1 %v8393_v25  ;;  %4313 = vmatprep.mubr.bf16.mxu0 %v8461_v13  ;;  %v9429_v31 = vadd.f32 %v2527_v48, %v1954_v57  ;;  %v2446_v49 = vpop.f32.mrf.mxu0  ;;  %v1959_v25 = vadd.f32 %v9241_v24, %v9143_v8  ;;  %v1960_v57 = vadd.f32 %v9358_v1, %v9150_v16 }
 0x262   : > { %4396 = vmatprep.mubr.bf16.mxu1 %v8461_v13  ;;  %v9434_v20 = vadd.f32 %v2446_v49, %v1955_v50  ;;  %v2529_v63 = vpop.f32.mrf.mxu1  ;;  %v1962_v50 = vadd.f32 %v9366_v0, %v9152_v39  ;;  %v1965_v16 = vadd.f32 %v9246_v60, %v9166_v44 }
 0x263   : > { %v9438_v56 = vadd.f32 %v2529_v63, %v1957_v61  ;;  %v2448_v41 = vpop.f32.mrf.mxu0  ;;  %v1963_v61 = vadd.f32 %v9241_v24, %v9164_v32  ;;  %v1964_v63 = vadd.f32 %v9358_v1, %v9174_v35  ;;  %v1969_v35 = vadd.f32 %v9246_v60, %v9191_v9 }
 0x264   : > { %v9442_v53 = vadd.f32 %v2448_v41, %v1956_v36  ;;  %v2531_v4 = vpop.f32.mrf.mxu1  ;;  %v1966_v41 = vadd.f32 %v9366_v0, %v9176_v37  ;;  %v1971_v9 = vadd.f32 %v9241_v24, %v9212_v15 }
 0x265   : > { %v9446_v45 = vadd.f32 %v2531_v4, %v1958_v19  ;;  %v2452_v13 = vpop.f32.mrf.mxu0 }
 0x266   : > { %v9450_v14 = vadd.f32 %v2452_v13, %v1959_v25  ;;  %v2535_v3 = vpop.f32.mrf.mxu1 }
 0x267   : > { %v9454_v48 = vadd.f32 %v2535_v3, %v1961_v29  ;;  %v2454_v8 = vpop.f32.mrf.mxu0 }
 0x268   : > { %4314 = vmatmul.mubr.bf16.gmra.mxu0 %v8455_v21  ;;  %v9459_v52 = vadd.f32 %v2454_v8, %v1960_v57  ;;  %v2537_v49 = vpop.f32.mrf.mxu1  ;;  %v1968_v57 = vadd.f32 %v9358_v1, %v9196_v6 }
 0x269   : > { %4397 = vmatmul.mubr.bf16.gmra.mxu1 %v8455_v21  ;;  %4323 = vmatprep.mubr.bf16.mxu0 %v8538_v62  ;;  %v9465_v36 = vadd.f32 %v2537_v49, %v1962_v50  ;;  %v2456_v39 = vpop.f32.mrf.mxu0  ;;  %v1967_v21 = vadd.f32 %v9241_v24, %v9189_v18  ;;  %v1970_v50 = vadd.f32 %v9366_v0, %v9203_v47 }
 0x26a   : > { %4406 = vmatprep.mubr.bf16.mxu1 %v8538_v62  ;;  %v9470_v32 = vadd.f32 %v2456_v39, %v1963_v61  ;;  %v2539_v19 = vpop.f32.mrf.mxu1  ;;  %v3875_v18 = vpack.c.bf16 %v10199_v26, %v9184_v43  ;;  %v1972_v43 = vadd.f32 %v9358_v1, %v9225_v51  ;;  %v1974_v24 = vadd.f32 %v9366_v0, %v9230_v34 }
 0x26b   : > { %v9474_v25 = vadd.f32 %v2539_v19, %v1965_v16  ;;  %v2458_v44 = vpop.f32.mrf.mxu0  ;;  %v1973_v16 = vadd.f32 %v9246_v60, %v9215_v59  ;;  %v1978_v34 = vadd.f32 %v9366_v0, %v9271_v12  ;;  %v10216_v12 = vld [vmem:[#allocation14_spill] sm:$0xff] }
 0x26c   : > { %v9478_v4 = vadd.f32 %v2458_v44, %v1964_v63  ;;  %v2541_v29 = vpop.f32.mrf.mxu1 }
 0x26d   : > { %v9482_v13 = vadd.f32 %v2541_v29, %v1966_v41  ;;  %v2462_v62 = vpop.f32.mrf.mxu0 }
 0x26e   : > { %v9486_v3 = vadd.f32 %v2462_v62, %v1967_v21  ;;  %v2545_v37 = vpop.f32.mrf.mxu1  ;;  %v1976_v21 = vadd.f32 %v9358_v1, %v9264_v27 }
 0x26f   : > { %v9490_v8 = vadd.f32 %v2545_v37, %v1969_v35  ;;  %v2464_v61 = vpop.f32.mrf.mxu0  ;;  %v3874_v35 = vpack.c.bf16 %v10199_v26, %v8521_v38 }
 0x270   : > { %4324 = vmatmul.mubr.bf16.gmra.mxu0 %v8544_v5  ;;  %v9497_v49 = vadd.f32 %v2464_v61, %v1968_v57  ;;  %v2547_v6 = vpop.f32.mrf.mxu1 }
 0x271   : > { %4407 = vmatmul.mubr.bf16.gmra.mxu1 %v8544_v5  ;;  %4333 = vmatprep.mubr.bf16.mxu0 %v3875_v18  ;;  %v9502_v47 = vadd.f32 %v2547_v6, %v1970_v50  ;;  %v2466_v39 = vpop.f32.mrf.mxu0 }
 0x272   : > { %4416 = vmatprep.mubr.bf16.mxu1 %v3875_v18  ;;  %v9506_v63 = vadd.f32 %v2466_v39, %v1971_v9  ;;  %v2549_v15 = vpop.f32.mrf.mxu1  ;;  %v1980_v18 = vadd.f32 %v9358_v1, %v9368_v11  ;;  %v7313_v1 = vld [vmem:[%s10164_s5 + $0x78] sm:$0xff]  }
 0x273   : > { %v9510_v19 = vadd.f32 %v2549_v15, %v1973_v16  ;;  %v2468_v41 = vpop.f32.mrf.mxu0  ;;  %6558 = vmatprep.subr.bf16.mxu0 %v7313_v1  ;;  %v7321_v11 = vld [vmem:[%s10164_s5 + $0xf8] sm:$0xff]  }
 0x274   : > { %v9512_v59 = vadd.f32 %v2468_v41, %v1972_v43  ;;  %v2551_v5 = vpop.f32.mrf.mxu1  ;;  %v7322_v15 = vld [vmem:[%s10164_s5 + $0xb8] sm:$0xff]   ;;  %v7317_v41 = vld [vmem:[%s10164_s5 + $0x68] sm:$0xff]   ;;  %6580 = vmatprep.subr.bf16.mxu1 %v7321_v11 }
 0x275   : > { %v9514_v60 = vadd.f32 %v2551_v5, %v1974_v24  ;;  %v2472_v44 = vpop.f32.mrf.mxu0  ;;  %v7324_v24 = vld [vmem:[%s10164_s5 + $0xf0] sm:$0xff]   ;;  %6581 = vmatpush3.bf16.msra.mxu1 %v7322_v15 }
 0x276   : > { %v9519_v51 = vadd.f32 %v2472_v44, %v9255_v30  ;;  %v2555_v29 = vpop.f32.mrf.mxu1  ;;  %v7326_v5 = vld [vmem:[%s10164_s5 + $0xb0] sm:$0xff]   ;;  %6582 = vmatprep.subr.bf16.mxu1 %v7324_v24  ;;  %v7318_v44 = vld [vmem:[%s10164_s5 + $0x28] sm:$0xff]  }
 0x277   : > { %v9526_v62 = vadd.f32 %v2555_v29, %v9262_v22  ;;  %v2474_v57 = vpop.f32.mrf.mxu0  ;;  %v1982_v22 = vadd.f32 %v9366_v0, %v9372_v55  ;;  %v7315_v0 = vld [vmem:[%s10164_s5 + $0x70] sm:$0xff]   ;;  %v7320_v29 = vld [vmem:[%s10164_s5 + $0x20] sm:$0xff]  }
 0x278   : > { %4334 = vmatmul.mubr.bf16.gmra.mxu0 %v3874_v35  ;;  %v9528_v37 = vadd.f32 %v2474_v57, %v1976_v21  ;;  %v2557_v50 = vpop.f32.mrf.mxu1  ;;  %v7316_v55 = vld [vmem:[%s10164_s5 + $0x30] sm:$0xff]   ;;  %v7319_v21 = vld [vmem:[%s10164_s5 + $0x60] sm:$0xff]  }
 0x279   : > { %4417 = vmatmul.mubr.bf16.gmra.mxu1 %v3874_v35  ;;  %v9530_v27 = vadd.f32 %v2557_v50, %v1978_v34  ;;  %v2476_v30 = vpop.f32.mrf.mxu0  ;;  %v7323_v35 = vld [vmem:[%s10164_s5 + $0x58] sm:$0xff]  }
 0x27a   : > { %v9535_v38 = vadd.f32 %v2476_v30, %v9281_v10  ;;  %v2559_v61 = vpop.f32.mrf.mxu1  ;;  %v7314_v10 = vld [vmem:[%s10164_s5 + $0x38] sm:$0xff]   ;;  %6583 = vmatpush3.bf16.msra.mxu1 %v7326_v5 }
 0x27b   : > { %v9540_v9 = vadd.f32 %v2559_v61, %v10216_v12  ;;  %v2478_v6 = vpop.f32.mrf.mxu0  ;;  %6559 = vmatpush3.bf16.msra.mxu0 %v7314_v10  ;;  %v7325_v34 = vld [vmem:[%s10164_s5 + $0x18] sm:$0xff]  }
 0x27c   : > { %v9542_v16 = vadd.f32 %v2478_v6, %v1980_v18  ;;  %v2561_v39 = vpop.f32.mrf.mxu1  ;;  %6560 = vmatprep.subr.bf16.mxu0 %v7315_v0 }
 0x27d   : > { %v9544_v43 = vadd.f32 %v2561_v39, %v1982_v22 }
 0x27f   : > { %6561 = vmatpush3.bf16.msra.mxu0 %v7316_v55 }
 0x280   : > { %6562 = vmatprep.subr.bf16.mxu0 %v7317_v41 }
 0x283   : > { %6563 = vmatpush3.bf16.msra.mxu0 %v7318_v44 }
 0x284   : > { %6564 = vmatprep.subr.bf16.mxu0 %v7319_v21 }
 0x287   : > { %6565 = vmatpush3.bf16.msra.mxu0 %v7320_v29 }
 0x288   : > { %6566 = vmatprep.subr.bf16.mxu0 %v7323_v35 }
 0x28b   : > { %6567 = vmatpush3.bf16.msra.mxu0 %v7325_v34 }
 0x296   : > { %v3053_v57 = vpop.f32.mrf.mxu0 }
 0x297   : > { %v9589_v50 = vadd.f32 %v3053_v57, %v9378_v7  ;;  %v3136_v30 = vpop.f32.mrf.mxu1 }
 0x298   : > { %v9592_v18 = vadd.f32 %v3136_v30, %v9382_v54  ;;  %v3055_v61 = vpop.f32.mrf.mxu0  ;;  %v7327_v54 = vld [vmem:[%s10164_s5 + $0xe8] sm:$0xff]  }
 0x299   : > { %v9595_v22 = vadd.f32 %v3055_v61, %v9387_v28  ;;  %v3138_v12 = vpop.f32.mrf.mxu1  ;;  %v7328_v28 = vld [vmem:[%s10164_s5 + $0x50] sm:$0xff]   ;;  %6584 = vmatprep.subr.bf16.mxu1 %v7327_v54 }
 0x29a   : > { %v9598_v6 = vadd.f32 %v3138_v12, %v9393_v42  ;;  %v3057_v39 = vpop.f32.mrf.mxu0  ;;  %v7329_v42 = vld [vmem:[%s10164_s5 + $0xa8] sm:$0xff]   ;;  %6568 = vmatprep.subr.bf16.mxu0 %v7328_v28 }
 0x29b   : > { %v9601_v1 = vadd.f32 %v3057_v39, %v9398_v33  ;;  %v3140_v10 = vpop.f32.mrf.mxu1  ;;  %6585 = vmatpush3.bf16.msra.mxu1 %v7329_v42  ;;  %v7335_v39 = vld [vmem:[%s10164_s5 + $0xd8] sm:$0xff]  }
 0x29c   : > { %v9604_v7 = vadd.f32 %v3140_v10, %v9402_v46  ;;  %v3059_v0 = vpop.f32.mrf.mxu0  ;;  %v7336_v42 = vld [vmem:[%s10164_s5 + $0x98] sm:$0xff]  }
 0x29d   : > { %v9616_v33 = vadd.f32 %v3059_v0, %v9406_v23  ;;  %v3142_v11 = vpop.f32.mrf.mxu1 }
 0x29e   : > { %v9619_v46 = vadd.f32 %v3142_v11, %v9410_v40  ;;  %v3063_v55 = vpop.f32.mrf.mxu0 }
 0x29f   : > { %v9622_v15 = vadd.f32 %v3063_v55, %v9414_v58  ;;  %v3146_v24 = vpop.f32.mrf.mxu1 }
 0x2a0   : > { %v9625_v41 = vadd.f32 %v3146_v24, %v9418_v17  ;;  %v3065_v5 = vpop.f32.mrf.mxu0 }
 0x2a1   : > { %v9628_v44 = vadd.f32 %v3065_v5, %v9423_v2  ;;  %v3148_v23 = vpop.f32.mrf.mxu1 }
 0x2a2   : > { %v9631_v21 = vadd.f32 %v3148_v23, %v9429_v31  ;;  %v3067_v40 = vpop.f32.mrf.mxu0 }
 0x2a3   : > { %v9634_v29 = vadd.f32 %v3067_v40, %v9434_v20  ;;  %v3150_v35 = vpop.f32.mrf.mxu1  ;;  %v7330_v20 = vld [vmem:[%s10164_s5 + $0x10] sm:$0xff]  }
 0x2a4   : > { %v9637_v58 = vadd.f32 %v3150_v35, %v9438_v56  ;;  %v3069_v34 = vpop.f32.mrf.mxu0  ;;  %v7331_v56 = vld [vmem:[%s10164_s5 + $0xe0] sm:$0xff]   ;;  %6569 = vmatpush3.bf16.msra.mxu0 %v7330_v20 }
 0x2a5   : > { %v9640_v17 = vadd.f32 %v3069_v34, %v9442_v53  ;;  %v3152_v57 = vpop.f32.mrf.mxu1  ;;  %v7332_v53 = vld [vmem:[%s10164_s5 + $0xa0] sm:$0xff]   ;;  %6586 = vmatprep.subr.bf16.mxu1 %v7331_v56  ;;  %v7339_v34 = vld [vmem:[%s10164_s5 + $0xd0] sm:$0xff]  }
 0x2a6   : > { %v9643_v2 = vadd.f32 %v3152_v57, %v9446_v45  ;;  %v3073_v30 = vpop.f32.mrf.mxu0  ;;  %6587 = vmatpush3.bf16.msra.mxu1 %v7332_v53 }
 0x2a7   : > { %v9646_v31 = vadd.f32 %v3073_v30, %v9450_v14  ;;  %v3156_v61 = vpop.f32.mrf.mxu1  ;;  %v7333_v14 = vld [vmem:[%s10164_s5 + $0x48] sm:$0xff]   ;;  %6588 = vmatprep.subr.bf16.mxu1 %v7335_v39 }
 0x2a8   : > { %v9658_v45 = vadd.f32 %v3156_v61, %v9454_v48  ;;  %v3075_v12 = vpop.f32.mrf.mxu0  ;;  %v7334_v48 = vld [vmem:[%s10164_s5 + $0x8] sm:$0xff]   ;;  %6570 = vmatprep.subr.bf16.mxu0 %v7333_v14  ;;  %v7342_v61 = vld [vmem:[%s10164_s5 + $0x178] sm:$0xff]  }
 0x2a9   : > { %v9667_v10 = vadd.f32 %v3075_v12, %v9459_v52  ;;  %v3158_v0 = vpop.f32.mrf.mxu1  ;;  %6571 = vmatpush3.bf16.msra.mxu0 %v7334_v48  ;;  %v7341_v30 = vld [vmem:[%s10164_s5 + $0xc8] sm:$0xff]  }
 0x2aa   : > { %v9673_v54 = vadd.f32 %v3158_v0, %v9465_v36  ;;  %v3077_v28 = vpop.f32.mrf.mxu0  ;;  %6589 = vmatpush3.bf16.msra.mxu1 %v7336_v42  ;;  %v7343_v12 = vld [vmem:[%s10164_s5 + $0x88] sm:$0xff]  }
 0x2ab   : > { %v9679_v52 = vadd.f32 %v3077_v28, %v9470_v32  ;;  %v3160_v11 = vpop.f32.mrf.mxu1  ;;  %6590 = vmatprep.subr.bf16.mxu1 %v7339_v34 }
 0x2ac   : > { %v9682_v55 = vadd.f32 %v3160_v11, %v9474_v25  ;;  %v3079_v24 = vpop.f32.mrf.mxu0  ;;  %v7337_v25 = vld [vmem:[%s10164_s5 + $0x40] sm:$0xff]  }
 0x2ad   : > { %v9685_v5 = vadd.f32 %v3079_v24, %v9478_v4  ;;  %v3162_v36 = vpop.f32.mrf.mxu1  ;;  %v7338_v4 = vld [vmem:[%s10164_s5] sm:$0xff]   ;;  %6572 = vmatprep.subr.bf16.mxu0 %v7337_v25 }
 0x2ae   : > { %v9688_v23 = vadd.f32 %v3162_v36, %v9482_v13  ;;  %v3083_v40 = vpop.f32.mrf.mxu0  ;;  %6573 = vmatpush3.bf16.msra.mxu0 %v7338_v4  ;;  %v7345_v24 = vld [vmem:[%s10164_s5 + $0xc0] sm:$0xff]  }
 0x2af   : > { %v9691_v35 = vadd.f32 %v3083_v40, %v9486_v3  ;;  %v3166_v32 = vpop.f32.mrf.mxu1  ;;  %v7340_v3 = vld [vmem:[%s10164_s5 + $0x90] sm:$0xff]   ;;  %6602 = vmatprep.subr.bf16.mxu0 %v7342_v61 }
 0x2b0   : > { %v9703_v13 = vadd.f32 %v3166_v32, %v9490_v8  ;;  %v3085_v57 = vpop.f32.mrf.mxu0  ;;  %6591 = vmatpush3.bf16.msra.mxu1 %v7340_v3 }
 0x2b1   : > { %v9715_v20 = vadd.f32 %v3085_v57, %v9497_v49  ;;  %v3168_v56 = vpop.f32.mrf.mxu1  ;;  %6592 = vmatprep.subr.bf16.mxu1 %v7341_v30 }
 0x2b2   : > { %v9718_v8 = vadd.f32 %v3168_v56, %v9502_v47  ;;  %v3087_v53 = vpop.f32.mrf.mxu0 }
 0x2b3   : > { %v9724_v14 = vadd.f32 %v3087_v53, %v9506_v63  ;;  %v3170_v39 = vpop.f32.mrf.mxu1 }
 0x2b4   : > { %v9727_v49 = vadd.f32 %v3170_v39, %v9510_v19  ;;  %v3089_v0 = vpop.f32.mrf.mxu0  ;;  %6593 = vmatpush3.bf16.msra.mxu1 %v7343_v12  ;;  %v7347_v19 = vld [vmem:[%s10164_s5 + $0x80] sm:$0xff]  }
 0x2b5   : > { %10217 = vst [vmem:[#allocation15_spill] sm:$0xff] %v9724_v14  ;;  %v9730_v47 = vadd.f32 %v3089_v0, %v9512_v59  ;;  %v3172_v48 = vpop.f32.mrf.mxu1  ;;  %6594 = vmatprep.subr.bf16.mxu1 %v7345_v24 }
 0x2b6   : > { %10218 = vst [vmem:[#allocation11_spill] sm:$0xff] %v9727_v49  ;;  %v9733_v28 = vadd.f32 %v3172_v48, %v9514_v60  ;;  %v3093_v42 = vpop.f32.mrf.mxu0  ;;  %v7350_v60 = vld [vmem:[%s10164_s5 + $0x1f8] sm:$0xff]  }
 0x2b7   : > { %10219 = vst [vmem:[#allocation16_spill] sm:$0xff] %v9730_v47  ;;  %v3217_v11 = vadd.f32 %v3093_v42, %v9519_v51  ;;  %v3176_v63 = vpop.f32.mrf.mxu1 }
 0x2b8   : > { %10220 = vst [vmem:[#allocation17_spill] sm:$0xff] %v9733_v28  ;;  %v3219_v59 = vadd.f32 %v3176_v63, %v9526_v62  ;;  %v3095_v36 = vpop.f32.mrf.mxu0  ;;  %6595 = vmatpush3.bf16.msra.mxu1 %v7347_v19 }
 0x2b9   : > { %v9747_v40 = vadd.f32 %v3095_v36, %v9528_v37  ;;  %v3178_v51 = vpop.f32.mrf.mxu1  ;;  %6624 = vmatprep.subr.bf16.mxu1 %v7350_v60 }
 0x2ba   : > { %v9750_v32 = vadd.f32 %v3178_v51, %v9530_v27  ;;  %v3097_v25 = vpop.f32.mrf.mxu0 }
 0x2bb   : > { %10221 = vst [vmem:[#allocation18_spill] sm:$0xff] %v9747_v40  ;;  %v3221_v4 = vadd.f32 %v3097_v25, %v9535_v38  ;;  %v3180_v34 = vpop.f32.mrf.mxu1 }
 0x2bc   : > { %10222 = vst [vmem:[#allocation19_spill] sm:$0xff] %v9750_v32  ;;  %v3223_v62 = vadd.f32 %v3180_v34, %v9540_v9  ;;  %v3099_v57 = vpop.f32.mrf.mxu0 }
 0x2bd   : > { %v9755_v3 = vadd.f32 %v3099_v57, %v9542_v16  ;;  %v3182_v30 = vpop.f32.mrf.mxu1 }
 0x2be   : > { %v9758_v37 = vadd.f32 %v3182_v30, %v9544_v43 }
 0x2bf   : > { %10223 = vst [vmem:[#allocation20_spill] sm:$0xff] %v9755_v3 }
 0x2c0   : > { %10224 = vst [vmem:[#allocation12_spill] sm:$0xff] %v9758_v37 }
 0x2d7   : > { %v3674_v61 = vpop.f32.mrf.mxu0 }
 0x2d8   : > { %v3757_v56 = vpop.f32.mrf.mxu1 }
 0x2d9   : > { %v3676_v27 = vpop.f32.mrf.mxu0 }
 0x2da   : > { %v3759_v53 = vpop.f32.mrf.mxu1 }
 0x2db   : > { %v3678_v12 = vpop.f32.mrf.mxu0 }
 0x2dc   : > { %v3761_v39 = vpop.f32.mrf.mxu1 }
 0x2dd   : > { %v3680_v0 = vpop.f32.mrf.mxu0 }
 0x2de   : > { %v3763_v38 = vpop.f32.mrf.mxu1 }
 0x2df   : > { %v3684_v48 = vpop.f32.mrf.mxu0 }
 0x2e0   : > { %v3767_v42 = vpop.f32.mrf.mxu1 }
 0x2e1   : > { %v3686_v63 = vpop.f32.mrf.mxu0 }
 0x2e2   : > { %v3769_v9 = vpop.f32.mrf.mxu1 }
 0x2e3   : > { %v3688_v24 = vpop.f32.mrf.mxu0 }
 0x2e4   : > { %v3771_v19 = vpop.f32.mrf.mxu1 }
 0x2e5   : > { %v3690_v16 = vpop.f32.mrf.mxu0 }
 0x2e6   : > { %v9760_v36 = vpop.f32.mrf.mxu1 }
 0x2e7   : > { %v3694_v60 = vpop.f32.mrf.mxu0 }
 0x2e8   : > { %v9763_v43 = vadd.f32 %v3694_v60, %v9646_v31  ;;  %v3777_v51 = vpop.f32.mrf.mxu1 }
 0x2e9   : > { %v9766_v25 = vadd.f32 %v3777_v51, %v9658_v45  ;;  %v9768_v34 = vpop.f32.mrf.mxu0 }
 0x2ea   : > { %10225 = vst [vmem:[#allocation13_spill] sm:$0xff] %v9763_v43  ;;  %v9770_v57 = vpop.f32.mrf.mxu1 }
 0x2eb   : > { %10226 = vst [vmem:[#allocation10_spill] sm:$0xff] %v9766_v25  ;;  %v9772_v30 = vpop.f32.mrf.mxu0 }
 0x2ec   : > { %v9774_v26 = vpop.f32.mrf.mxu1 }
 0x2ed   : > { %v9776_v37 = vpop.f32.mrf.mxu0 }
 0x2ee   : > { %v9778_v3 = vpop.f32.mrf.mxu1 }
 0x2ef   : > { %v3704_v32 = vpop.f32.mrf.mxu0 }
 0x2f0   : > { %v9781_v31 = vadd.f32 %v3704_v32, %v9691_v35  ;;  %v3787_v60 = vpop.f32.mrf.mxu1 }
 0x2f1   : > { %v9784_v45 = vadd.f32 %v3787_v60, %v9703_v13  ;;  %v9786_v51 = vpop.f32.mrf.mxu0 }
 0x2f2   : > { %10227 = vst [vmem:[#allocation14_spill] sm:$0xff] %v9781_v31  ;;  %v9788_v40 = vpop.f32.mrf.mxu1 }
 0x2f3   : > { %10228 = vst [vmem:[#allocation21_spill] sm:$0xff] %v9784_v45  ;;  %10229 = vst [vmem:[#allocation22_spill] sm:$0xff] %v9788_v40  ;;  %v9790_v28 = vpop.f32.mrf.mxu0 }
 0x2f4   : > { %10230 = vst [vmem:[#allocation23_spill] sm:$0xff] %v9790_v28  ;;  %v9792_v47 = vpop.f32.mrf.mxu1 }
 0x2f5   : > { %10231 = vst [vmem:[#allocation24_spill] sm:$0xff] %v9792_v47  ;;  %v9794_v49 = vpop.f32.mrf.mxu0 }
 0x2f6   : > { %10232 = vst [vmem:[#allocation25_spill] sm:$0xff] %v9794_v49  ;;  %v9796_v25 = vpop.f32.mrf.mxu1 }
 0x2f7   : > { %10233 = vst [vmem:[#allocation26_spill] sm:$0xff] %v9796_v25  ;;  %v3714_v43 = vpop.f32.mrf.mxu0 }
 0x2f8   : > { %v9798_v14 = vadd.f32 %v3714_v43, %v3217_v11  ;;  %v3797_v35 = vpop.f32.mrf.mxu1  ;;  %v3806_v43 = vadd.f32 %v3674_v61, %v9589_v50  ;;  %v3816_v50 = vadd.f32 %v3767_v42, %v9625_v41 }
 0x2f9   : > { %v9800_v32 = vadd.f32 %v3797_v35, %v3219_v59  ;;  %v9802_v13 = vpop.f32.mrf.mxu0  ;;  %v3808_v59 = vadd.f32 %v3757_v56, %v9592_v18  ;;  %v3815_v18 = vadd.f32 %v3686_v63, %v9628_v44  ;;  %v3821_v44 = vadd.f32 %v9760_v36, %v9643_v2 }
 0x2fa   : > { %10234 = vst [vmem:[#allocation27_spill] sm:$0xff] %v9798_v14  ;;  %v9804_v60 = vpop.f32.mrf.mxu1  ;;  %v3809_v14 = vadd.f32 %v3759_v53, %v9598_v6  ;;  %v3828_v36 = vadd.f32 %v9774_v26, %v9682_v55 }
 0x2fb   : > { %10235 = vst [vmem:[#allocation28_spill] sm:$0xff] %v9800_v32  ;;  %v3718_v45 = vpop.f32.mrf.mxu0  ;;  %v3807_v32 = vadd.f32 %v3676_v27, %v9595_v22  ;;  %v3817_v22 = vadd.f32 %v3769_v9, %v9631_v21 }
 0x2fc   : > { %v9806_v31 = vadd.f32 %v3718_v45, %v3221_v4  ;;  %v3801_v28 = vpop.f32.mrf.mxu1  ;;  %v3810_v4 = vadd.f32 %v3678_v12, %v9601_v1  ;;  %v3811_v45 = vadd.f32 %v3680_v0, %v9616_v33  ;;  %v3818_v1 = vadd.f32 %v3688_v24, %v9634_v29 }
 0x2fd   : > { %v9808_v40 = vadd.f32 %v3801_v28, %v3223_v62  ;;  %v9810_v47 = vpop.f32.mrf.mxu0  ;;  %v3812_v28 = vadd.f32 %v3761_v39, %v9604_v7  ;;  %v3820_v7 = vadd.f32 %v3771_v19, %v9637_v58  ;;  %v9833_v29 = vadd.f32 %v9768_v34, %v9667_v10 }
 0x2fe   : > { %10236 = vst [vmem:[#allocation29_spill] sm:$0xff] %v9806_v31  ;;  %v9812_v49 = vpop.f32.mrf.mxu1  ;;  %v3814_v31 = vadd.f32 %v3684_v48, %v9622_v15 }
 0x2ff   : > { %10237 = vst [vmem:[#allocation30_spill] sm:$0xff] %v9808_v40  ;;  %v3813_v40 = vadd.f32 %v3763_v38, %v9619_v46  ;;  %v3819_v46 = vadd.f32 %v3690_v16, %v9640_v17  ;;  %v9837_v17 = vadd.f32 %v9770_v57, %v9673_v54 }
 0x318   : > { %v4295_v25 = vpop.f32.mrf.mxu0 }
 0x319   : > { %v4378_v11 = vpop.f32.mrf.mxu1  ;;  %v4427_v56 = vadd.f32 %v4295_v25, %v3806_v43 }
 0x31a   : > { %v4297_v35 = vpop.f32.mrf.mxu0  ;;  %v4429_v53 = vadd.f32 %v4378_v11, %v3808_v59 }
 0x31b   : > { %v4380_v62 = vpop.f32.mrf.mxu1  ;;  %v4428_v15 = vadd.f32 %v4297_v35, %v3807_v32  ;;  %v3827_v35 = vadd.f32 %v9776_v37, %v9685_v5 }
 0x31c   : > { %v4299_v61 = vpop.f32.mrf.mxu0  ;;  %v4430_v21 = vadd.f32 %v4380_v62, %v3809_v14  ;;  %v3826_v14 = vadd.f32 %v9772_v30, %v9679_v52 }
 0x31d   : > { %v4431_v6 = vadd.f32 %v4299_v61, %v3810_v4  ;;  %v4382_v27 = vpop.f32.mrf.mxu1 }
 0x31e   : > { %v4433_v33 = vadd.f32 %v4382_v27, %v3812_v28  ;;  %v4301_v12 = vpop.f32.mrf.mxu0 }
 0x31f   : > { %v4468_v39 = vmax.f32 %v4427_v56, %v4431_v6  ;;  %v4432_v41 = vadd.f32 %v4301_v12, %v3811_v45  ;;  %v4384_v0 = vpop.f32.mrf.mxu1  ;;  %v3829_v56 = vadd.f32 %v9778_v3, %v9688_v23  ;;  %v10239_v3 = vld [vmem:[#allocation15_spill] sm:$0xff] }
 0x320   : > { %v4470_v38 = vmax.f32 %v4429_v53, %v4433_v33  ;;  %v4434_v48 = vadd.f32 %v4384_v0, %v3813_v40  ;;  %v4305_v42 = vpop.f32.mrf.mxu0  ;;  %v9849_v53 = vadd.f32 %v9786_v51, %v9715_v20  ;;  %v10241_v0 = vld [vmem:[#allocation13_spill] sm:$0xff] }
 0x321   : > { %vm4472_vm2 = vcmp.ge.f32.partialorder %v4468_v39, 0.0  ;;  %v4476_v58 = vmul.f32 0.01, %v4468_v39  ;;  %v4469_v63 = vmax.f32 %v4428_v15, %v4432_v41  ;;  %v4388_v9 = vpop.f32.mrf.mxu1  ;;  %v4435_v57 = vadd.f32 %v4305_v42, %v3814_v31 }
 0x322   : > { %vm4474_vm3 = vcmp.ge.f32.partialorder %v4470_v38, 0.0  ;;  %v4478_v24 = vmul.f32 0.01, %v4470_v38  ;;  %v4471_v19 = vmax.f32 %v4430_v21, %v4434_v48  ;;  %v4307_v2 = vpop.f32.mrf.mxu0  ;;  %v4437_v52 = vadd.f32 %v4388_v9, %v3816_v50  ;;  %v7344_v48 = vld [vmem:[%s10164_s5 + $0x138] sm:$0xff]  }
 0x323   : > { %v4480_v40 = vsel %vm4472_vm2, %v4468_v39, %v4476_v58  ;;  %vm4473_vm4 = vcmp.ge.f32.partialorder %v4469_v63, 0.0  ;;  %v4477_v16 = vmul.f32 0.01, %v4469_v63  ;;  %v4390_v10 = vpop.f32.mrf.mxu1  ;;  %v4436_v62 = vadd.f32 %v4307_v2, %v3815_v18  ;;  %v10238_v18 = vld [vmem:[#allocation22_spill] sm:$0xff] }
 0x324   : > { %v4482_v25 = vsel %vm4474_vm3, %v4470_v38, %v4478_v24  ;;  %vm4475_vm5 = vcmp.ge.f32.partialorder %v4471_v19, 0.0  ;;  %v4479_v34 = vmul.f32 0.01, %v4471_v19  ;;  %v4309_v32 = vpop.f32.mrf.mxu0  ;;  %v4438_v6 = vadd.f32 %v4390_v10, %v3817_v22  ;;  %v10240_v22 = vld [vmem:[#allocation23_spill] sm:$0xff]  ;;  %v10242_v24 = vld [vmem:[#allocation10_spill] sm:$0xff] }
 0x325   : > { %v4484_v54 = vmax.f32 %v4480_v40, %v4482_v25  ;;  %v4439_v11 = vadd.f32 %v4309_v32, %v3818_v1  ;;  %v4392_v43 = vpop.f32.mrf.mxu1  ;;  %v4481_v59 = vsel %vm4473_vm4, %v4469_v63, %v4477_v16  ;;  %v7346_v16 = vld [vmem:[%s10164_s5 + $0x170] sm:$0xff]  }
 0x326   : > { %v4441_v30 = vadd.f32 %v4392_v43, %v3820_v7  ;;  %v4311_v4 = vpop.f32.mrf.mxu0  ;;  %v4483_v28 = vsel %vm4475_vm5, %v4471_v19, %v4479_v34  ;;  %v9853_v7 = vadd.f32 %v10238_v18, %v9718_v8  ;;  %v10244_v43 = vld [vmem:[#allocation24_spill] sm:$0xff] }
 0x327   : > { %v4663_v45 = vmax.f32 %v4435_v57, %v4439_v11  ;;  %v4440_v61 = vadd.f32 %v4311_v4, %v3819_v46  ;;  %v4394_v26 = vpop.f32.mrf.mxu1  ;;  %v4485_v55 = vmax.f32 %v4481_v59, %v4483_v28  ;;  %v9857_v46 = vadd.f32 %v10240_v22, %v10239_v3  ;;  %v10245_v4 = vld [vmem:[#allocation16_spill] sm:$0xff]  ;;  %v10246_v28 = vld [vmem:[#allocation25_spill] sm:$0xff] }
 0x328   : > { %v4665_v31 = vmax.f32 %v4437_v52, %v4441_v30  ;;  %v4442_v27 = vadd.f32 %v4394_v26, %v3821_v44  ;;  %v4315_v1 = vpop.f32.mrf.mxu0  ;;  %v4486_v9 = vpack.c.bf16 %v4484_v54, %v4484_v54  ;;  %v10247_v26 = vld [vmem:[#allocation17_spill] sm:$0xff] }
 0x329   : > { %vm4667_vm6 = vcmp.ge.f32.partialorder %v4663_v45, 0.0  ;;  %v4671_v5 = vmul.f32 0.01, %v4663_v45  ;;  %v4664_v37 = vmax.f32 %v4436_v62, %v4440_v61  ;;  %v4398_v50 = vpop.f32.mrf.mxu1  ;;  %v4443_v44 = vadd.f32 %v4315_v1, %v10241_v0  ;;  %v10249_v1 = vld [vmem:[#allocation18_spill] sm:$0xff] }
 0x32a   : > { %vm4669_vm7 = vcmp.ge.f32.partialorder %v4665_v31, 0.0  ;;  %v4673_v33 = vmul.f32 0.01, %v4665_v31  ;;  %v4666_v12 = vmax.f32 %v4438_v6, %v4442_v27  ;;  %v4317_v23 = vpop.f32.mrf.mxu0  ;;  %v4487_v38 = vpack.c.bf16 %v4485_v55, %v4485_v55  ;;  %v10248_v55 = vld [vmem:[#allocation26_spill] sm:$0xff]  ;;  %v7349_v27 = vld [vmem:[%s10164_s5 + $0x168] sm:$0xff]  }
 0x32b   : > { %v4675_v15 = vsel %vm4667_vm6, %v4663_v45, %v4671_v5  ;;  %vm4668_vm8 = vcmp.ge.f32.partialorder %v4664_v37, 0.0  ;;  %v4672_v20 = vmul.f32 0.01, %v4664_v37  ;;  %v4400_v51 = vpop.f32.mrf.mxu1  ;;  %v4445_v19 = vadd.f32 %v4398_v50, %v10242_v24 }
 0x32c   : > { %v4677_v39 = vsel %vm4669_vm7, %v4665_v31, %v4673_v33  ;;  %vm4670_vm9 = vcmp.ge.f32.partialorder %v4666_v12, 0.0  ;;  %v4674_v41 = vmul.f32 0.01, %v4666_v12  ;;  %v4319_v21 = vpop.f32.mrf.mxu0  ;;  %v4444_v25 = vadd.f32 %v4317_v23, %v9833_v29  ;;  %4648 = vmatprep.mubr.bf16.mxu0 %v4487_v38  ;;  %v10250_v23 = vld [vmem:[#allocation14_spill] sm:$0xff] }
 0x32d   : > { %v9860_v8 = vmax.f32 %v4675_v15, %v4677_v39  ;;  %v4447_v42 = vadd.f32 %v4319_v21, %v3826_v14  ;;  %v4402_v58 = vpop.f32.mrf.mxu1  ;;  %v4676_v63 = vsel %vm4668_vm8, %v4664_v37, %v4672_v20  ;;  %v10243_v14 = vld [vmem:[#allocation11_spill] sm:$0xff]  ;;  %v4446_v54 = vadd.f32 %v4400_v51, %v9837_v17  ;;  %4649 = vmatmul.mubr.bf16.vlgmr.msra.gmra.mxu0 %v4486_v9  ;;  %v10251_v21 = vld [vmem:[#allocation21_spill] sm:$0xff] }
 0x32e   : > { %v4449_v2 = vadd.f32 %v4402_v58, %v3828_v36  ;;  %v4321_v40 = vpop.f32.mrf.mxu0  ;;  %v4678_v10 = vsel %vm4670_vm9, %v4666_v12, %v4674_v41  ;;  %v3836_v59 = vadd.f32 %v10244_v43, %v10243_v14  ;;  %v3835_v62 = vadd.f32 %v10246_v28, %v10245_v4  ;;  %6603 = vmatpush3.bf16.msra.mxu0 %v7344_v48  ;;  %v7351_v51 = vld [vmem:[%s10164_s5 + $0x128] sm:$0xff]   ;;  %v7353_v58 = vld [vmem:[%s10164_s5 + $0x160] sm:$0xff]  }
 0x32f   : > { %v4853_v34 = vmax.f32 %v4443_v44, %v4447_v42  ;;  %v4448_v32 = vadd.f32 %v4321_v40, %v3827_v35  ;;  %v4404_v57 = vpop.f32.mrf.mxu1  ;;  %v4680_v11 = vmax.f32 %v4676_v63, %v4678_v10  ;;  %v7348_v35 = vld [vmem:[%s10164_s5 + $0x130] sm:$0xff]   ;;  %v3837_v6 = vadd.f32 %v10248_v55, %v10247_v26  ;;  %6604 = vmatprep.subr.bf16.mxu0 %v7346_v16  ;;  %v10252_v40 = vld [vmem:[#allocation19_spill] sm:$0xff]  ;;  %v7355_v43 = vld [vmem:[%s10164_s5 + $0x120] sm:$0xff]  }
 0x330   : > { %v4855_v36 = vmax.f32 %v4445_v19, %v4449_v2  ;;  %v4450_v52 = vadd.f32 %v4404_v57, %v3829_v56  ;;  %v4325_v30 = vpop.f32.mrf.mxu0  ;;  %v9885_v5 = vadd.f32 %v9802_v13, %v10249_v1  ;;  %v7352_v13 = vld [vmem:[%s10164_s5 + $0x1b8] sm:$0xff]   ;;  %v4681_v44 = vpack.c.bf16 %v9860_v8, %v9860_v8  ;;  %v7354_v63 = vld [vmem:[%s10164_s5 + $0x1f0] sm:$0xff]   ;;  %v7358_v4 = vld [vmem:[%s10164_s5 + $0x1e8] sm:$0xff]  }
 0x331   : > { %vm4857_vm10 = vcmp.ge.f32.partialorder %v4853_v34, 0.0  ;;  %v4861_v29 = vmul.f32 0.01, %v4853_v34  ;;  %v4854_v45 = vmax.f32 %v4444_v25, %v4448_v32  ;;  %v4408_v61 = vpop.f32.mrf.mxu1  ;;  %v4451_v3 = vadd.f32 %v4325_v30, %v10250_v23  ;;  %v10253_v57 = vld [vmem:[#allocation20_spill] sm:$0xff]  ;;  %v7357_v30 = vld [vmem:[%s10164_s5 + $0x158] sm:$0xff]  }
 0x332   : > { %vm4859_vm11 = vcmp.ge.f32.partialorder %v4855_v36, 0.0  ;;  %v4863_v17 = vmul.f32 0.01, %v4855_v36  ;;  %v4856_v31 = vmax.f32 %v4446_v54, %v4450_v52  ;;  %v4327_v56 = vpop.f32.mrf.mxu0  ;;  %6605 = vmatpush3.bf16.msra.mxu0 %v7348_v35  ;;  %v4682_v20 = vpack.c.bf16 %v4680_v11, %v4680_v11  ;;  %v10256_v26 = vld [vmem:[#allocation28_spill] sm:$0xff]  ;;  %v10257_v1 = vld [vmem:[#allocation29_spill] sm:$0xff] }
 0x333   : > { %v4865_v37 = vsel %vm4857_vm10, %v4853_v34, %v4861_v29  ;;  %vm4858_vm12 = vcmp.ge.f32.partialorder %v4854_v45, 0.0  ;;  %v4862_v50 = vmul.f32 0.01, %v4854_v45  ;;  %v4410_v18 = vpop.f32.mrf.mxu1  ;;  %v4453_v38 = vadd.f32 %v4408_v61, %v10251_v21  ;;  %6606 = vmatprep.subr.bf16.mxu0 %v7349_v27  ;;  %v10255_v29 = vld [vmem:[#allocation27_spill] sm:$0xff]  ;;  %v7361_v23 = vld [vmem:[%s10164_s5 + $0x150] sm:$0xff]  }
 0x334   : > { %v4867_v33 = vsel %vm4859_vm11, %v4855_v36, %v4863_v17  ;;  %vm4860_vm13 = vcmp.ge.f32.partialorder %v4856_v31, 0.0  ;;  %v4864_v12 = vmul.f32 0.01, %v4856_v31  ;;  %v4329_v22 = vpop.f32.mrf.mxu0  ;;  %v4452_v9 = vadd.f32 %v4327_v56, %v9849_v53  ;;  %4844 = vmatprep.mubr.bf16.mxu1 %v4682_v20  ;;  %v7359_v56 = vld [vmem:[%s10164_s5 + $0x118] sm:$0xff]   ;;  %v7360_v27 = vld [vmem:[%s10164_s5 + $0x1a8] sm:$0xff]  }
 0x335   : > { %v9888_v15 = vmax.f32 %v4865_v37, %v4867_v33  ;;  %v4455_v39 = vadd.f32 %v4329_v22, %v9857_v46  ;;  %v4412_v41 = vpop.f32.mrf.mxu1  ;;  %v4866_v0 = vsel %vm4858_vm12, %v4854_v45, %v4862_v50  ;;  %v3841_v16 = vadd.f32 %v9804_v60, %v10252_v40  ;;  %4845 = vmatmul.mubr.bf16.vlgmr.msra.gmra.mxu1 %v4681_v44  ;;  %v7356_v60 = vld [vmem:[%s10164_s5 + $0x1b0] sm:$0xff]  }
 0x336   : > { %v4457_v48 = vadd.f32 %v4412_v41, %v3836_v59  ;;  %v4331_v42 = vpop.f32.mrf.mxu0  ;;  %v4868_v46 = vsel %vm4860_vm13, %v4856_v31, %v4864_v12  ;;  %v4454_v10 = vadd.f32 %v4410_v18, %v9853_v7  ;;  %v3843_v11 = vadd.f32 %v9810_v47, %v10253_v57  ;;  %6607 = vmatpush3.bf16.msra.mxu0 %v7351_v51  ;;  %v10254_v59 = vld [vmem:[#allocation12_spill] sm:$0xff]  ;;  %v10258_v18 = vld [vmem:[#allocation30_spill] sm:$0xff] }
 0x337   : > { %v5043_v24 = vmax.f32 %v4451_v3, %v4455_v39  ;;  %v4456_v8 = vadd.f32 %v4331_v42, %v3835_v62  ;;  %v4414_v19 = vpop.f32.mrf.mxu1  ;;  %v4870_v2 = vmax.f32 %v4866_v0, %v4868_v46  ;;  %6625 = vmatpush3.bf16.msra.mxu1 %v7352_v13  ;;  %v3845_v54 = vadd.f32 %v9812_v49, %v10254_v59  ;;  %v7362_v3 = vld [vmem:[%s10164_s5 + $0x1e0] sm:$0xff]   ;;  %v7374_v59 = vld [vmem:[%s10164_s5 + $0x278] sm:$0xff]  }
 0x338   : > { %v5045_v25 = vmax.f32 %v4453_v38, %v4457_v48  ;;  %v4458_v34 = vadd.f32 %v4414_v19, %v3837_v6  ;;  %v4335_v32 = vpop.f32.mrf.mxu0  ;;  %6608 = vmatprep.subr.bf16.mxu0 %v7353_v58  ;;  %6626 = vmatprep.subr.bf16.mxu1 %v7354_v63  ;;  %v7363_v58 = vld [vmem:[%s10164_s5 + $0x110] sm:$0xff]   ;;  %v7369_v57 = vld [vmem:[%s10164_s5 + $0x140] sm:$0xff]   ;;  %vm7494_vm6 = vmmov 0  }
 0x339   : > { %vm5047_vm14 = vcmp.ge.f32.partialorder %v5043_v24, 0.0  ;;  %v5051_v53 = vmul.f32 0.01, %v5043_v24  ;;  %v5044_v14 = vmax.f32 %v4452_v9, %v4456_v8  ;;  %v4418_v7 = vpop.f32.mrf.mxu1  ;;  %v4459_v45 = vadd.f32 %v4335_v32, %v10255_v29  ;;  %v7366_v8 = vld [vmem:[%s10164_s5 + $0x1d8] sm:$0xff]   ;;  %v7382_v29 = vld [vmem:[%s10164_s5 + $0x228] sm:$0xff]  }
 0x33a   : > { %vm5049_vm15 = vcmp.ge.f32.partialorder %v5045_v25, 0.0  ;;  %v5053_v36 = vmul.f32 0.01, %v5045_v25  ;;  %v5046_v47 = vmax.f32 %v4454_v10, %v4458_v34  ;;  %v4337_v52 = vpop.f32.mrf.mxu0  ;;  %v4461_v55 = vadd.f32 %v4418_v7, %v10256_v26  ;;  %6609 = vmatpush3.bf16.msra.mxu0 %v7355_v43  ;;  %v7368_v34 = vld [vmem:[%s10164_s5 + $0x198] sm:$0xff]   ;;  %v7371_v43 = vld [vmem:[%s10164_s5 + $0x100] sm:$0xff]   ;;  %v7373_v7 = vld [vmem:[%s10164_s5 + $0x1c8] sm:$0xff]  }
 0x33b   : > { %v5055_v28 = vsel %vm5047_vm14, %v5043_v24, %v5051_v53  ;;  %vm5048_vm0 = vcmp.ge.f32.partialorder %v5044_v14, 0.0  ;;  %v5052_v62 = vmul.f32 0.01, %v5044_v14  ;;  %v4420_v49 = vpop.f32.mrf.mxu1  ;;  %6627 = vmatpush3.bf16.msra.mxu1 %v7356_v60  ;;  %v4872_v31 = vpack.c.bf16 %v4870_v2, %v4870_v2  ;;  %6610 = vmatprep.subr.bf16.mxu0 %v7357_v30  ;;  %v7365_v24 = vld [vmem:[%s10164_s5 + $0x148] sm:$0xff]   ;;  %v7372_v60 = vld [vmem:[%s10164_s5 + $0x190] sm:$0xff]   ;;  %v7377_v30 = vld [vmem:[%s10164_s5 + $0x1c0] sm:$0xff]  }
 0x33c   : > { %v5057_v35 = vsel %vm5049_vm15, %v5045_v25, %v5053_v36  ;;  %vm5050_vm1 = vcmp.ge.f32.partialorder %v5046_v47, 0.0  ;;  %v5054_v61 = vmul.f32 0.01, %v5046_v47  ;;  %v4339_v6 = vpop.f32.mrf.mxu0  ;;  %6628 = vmatprep.subr.bf16.mxu1 %v7358_v4  ;;  %v4460_v51 = vadd.f32 %v4337_v52, %v9885_v5  ;;  %v7364_v5 = vld [vmem:[%s10164_s5 + $0x1a0] sm:$0xff]   ;;  %v7367_v25 = vld [vmem:[%s10164_s5 + $0x108] sm:$0xff]   ;;  %v7376_v36 = vld [vmem:[%s10164_s5 + $0x238] sm:$0xff]  }
 0x33d   : > { %v9929_v17 = vmax.f32 %v5055_v28, %v5057_v35  ;;  %v4463_v37 = vadd.f32 %v4339_v6, %v10257_v1  ;;  %v4422_v50 = vpop.f32.mrf.mxu1  ;;  %v5056_v22 = vsel %vm5048_vm0, %v5044_v14, %v5052_v62  ;;  %5034 = vmatprep.mubr.bf16.mxu0 %v4872_v31  ;;  %v4462_v44 = vadd.f32 %v4420_v49, %v3841_v16  ;;  %v7378_v4 = vld [vmem:[%s10164_s5 + $0x270] sm:$0xff]   ;;  %v7379_v28 = vld [vmem:[%s10164_s5 + $0x180] sm:$0xff]   ;;  %v7381_v62 = vld [vmem:[%s10164_s5 + $0x268] sm:$0xff]  }
 0x33e   : > { %v4465_v33 = vadd.f32 %v4422_v50, %v10258_v18  ;;  %v4341_v12 = vpop.f32.mrf.mxu0  ;;  %v5058_v20 = vsel %vm5050_vm1, %v5046_v47, %v5054_v61  ;;  %6611 = vmatpush3.bf16.msra.mxu0 %v7359_v56  ;;  %v4871_v47 = vpack.c.bf16 %v9888_v15, %v9888_v15  ;;  %v7380_v15 = vld [vmem:[%s10164_s5 + $0x230] sm:$0xff]   ;;  %v7383_v49 = vld [vmem:[%s10164_s5 + $0x260] sm:$0xff]   ;;  %v10259_v35 = vmov 0.0   ;;  %v7385_v26 = vld [vmem:[%s10164_s5 + $0x258] sm:$0xff]  }
 0x33f   : > { %v5233_v13 = vmax.f32 %v4459_v45, %v4463_v37  ;;  %v4464_v39 = vadd.f32 %v4341_v12, %v3843_v11  ;;  %v4424_v41 = vpop.f32.mrf.mxu1  ;;  %v5060_v0 = vmax.f32 %v5056_v22, %v5058_v20  ;;  %6629 = vmatpush3.bf16.msra.mxu1 %v7360_v27  ;;  %6612 = vmatprep.subr.bf16.mxu0 %v7361_v23  ;;  %v7370_v11 = vld [vmem:[%s10164_s5 + $0x1d0] sm:$0xff]   ;;  %v7384_v61 = vld [vmem:[%s10164_s5 + $0x220] sm:$0xff]   ;;  %v7389_v31 = vld [vmem:[%s10164_s5 + $0x248] sm:$0xff]  }
 0x340   : > { %v5235_v21 = vmax.f32 %v4461_v55, %v4465_v33  ;;  %v4466_v38 = vadd.f32 %v4424_v41, %v3845_v54  ;;  %6630 = vmatprep.subr.bf16.mxu1 %v7362_v3  ;;  %v7375_v54 = vld [vmem:[%s10164_s5 + $0x188] sm:$0xff]   ;;  %v5061_v45 = vpack.c.bf16 %v9929_v17, %v9929_v17  ;;  %v7386_v55 = vld [vmem:[%s10164_s5 + $0x218] sm:$0xff]   ;;  %v7387_v6 = vld [vmem:[%s10164_s5 + $0x250] sm:$0xff]  }
 0x341   : > { %vm5237_vm2 = vcmp.ge.f32.partialorder %v5233_v13, 0.0  ;;  %v5241_v48 = vmul.f32 0.01, %v5233_v13  ;;  %v5234_v42 = vmax.f32 %v4460_v51, %v4464_v39  ;;  %v5062_v63 = vpack.c.bf16 %v5060_v0, %v5060_v0  ;;  %v7388_v17 = vld [vmem:[%s10164_s5 + $0x210] sm:$0xff]   ;;  %v7390_v56 = vld [vmem:[%s10164_s5 + $0x208] sm:$0xff]   ;;  %v7391_v27 = vld [vmem:[%s10164_s5 + $0x240] sm:$0xff]  }
 0x342   : > { %vm5239_vm3 = vcmp.ge.f32.partialorder %v5235_v21, 0.0  ;;  %v5243_v46 = vmul.f32 0.01, %v5235_v21  ;;  %v5236_v9 = vmax.f32 %v4462_v44, %v4466_v38  ;;  %6613 = vmatpush3.bf16.msra.mxu0 %v7363_v58  ;;  %v7392_v1 = vld [vmem:[%s10164_s5 + $0x200] sm:$0xff]   ;;  %v7393_v50 = vld [vmem:[%s10166_s7 + $0x38] sm:$0xff]   ;;  %v7394_v18 = vld [vmem:[%s10166_s7 + $0x30] sm:$0xff]  }
 0x343   : > { %v5245_v19 = vsel %vm5237_vm2, %v5233_v13, %v5241_v48  ;;  %vm5238_vm4 = vcmp.ge.f32.partialorder %v5234_v42, 0.0  ;;  %v5242_v2 = vmul.f32 0.01, %v5234_v42  ;;  %5224 = vmatprep.mubr.bf16.mxu1 %v5062_v63  ;;  %6631 = vmatpush3.bf16.msra.mxu1 %v7364_v5  ;;  %v7395_v33 = vld [vmem:[%s10166_s7 + $0x28] sm:$0xff]   ;;  %v7396_v12 = vld [vmem:[%s10166_s7 + $0x20] sm:$0xff]   ;;  %v7397_v23 = vld [vmem:[%s10166_s7 + $0x18] sm:$0xff]  }
 0x344   : > { %v5247_v40 = vsel %vm5239_vm3, %v5235_v21, %v5243_v46  ;;  %vm5240_vm5 = vcmp.ge.f32.partialorder %v5236_v9, 0.0  ;;  %v5244_v16 = vmul.f32 0.01, %v5236_v9  ;;  %6614 = vmatprep.subr.bf16.mxu0 %v7365_v24  ;;  %6632 = vmatprep.subr.bf16.mxu1 %v7366_v8  ;;  %v7398_v3 = vld [vmem:[%s10166_s7 + $0x10] sm:$0xff]   ;;  %v7399_v22 = vld [vmem:[%s10166_s7 + $0x8] sm:$0xff]   ;;  %v7400_v20 = vld [vmem:[%s10166_s7] sm:$0xff]  }
 0x345   : > { %v9960_v10 = vmax.f32 %v5245_v19, %v5247_v40  ;;  %v5246_v32 = vsel %vm5238_vm4, %v5234_v42, %v5242_v2  ;;  %v6349_v19 = vld [vmem:[%s10165_s6] ss:$0 sm:$0xff] }
 0x346   : > { %v5248_v53 = vsel %vm5240_vm5, %v5236_v9, %v5244_v16  ;;  %6615 = vmatpush3.bf16.msra.mxu0 %v7367_v25 }
 0x347   : > { %v5250_v14 = vmax.f32 %v5246_v32, %v5248_v53  ;;  %6633 = vmatpush3.bf16.msra.mxu1 %v7368_v34  ;;  %6616 = vmatprep.subr.bf16.mxu0 %v7369_v57  ;;  %v5251_v37 = vpack.c.bf16 %v9960_v10, %v9960_v10 }
 0x348   : > { %6634 = vmatprep.subr.bf16.mxu1 %v7370_v11 }
 0x349   : > { %v5252_v52 = vpack.c.bf16 %v5250_v14, %v5250_v14 }
 0x34a   : > { %6617 = vmatpush3.bf16.msra.mxu0 %v7371_v43 }
 0x34b   : > { %6635 = vmatpush3.bf16.msra.mxu1 %v7372_v60  ;;  %6646 = vmatprep.subr.bf16.mxu0 %v7374_v59 }
 0x34c   : > { %6636 = vmatprep.subr.bf16.mxu1 %v7373_v7 }
 0x34d   : > { %5035 = vmatmul.mubr.bf16.vlgmr.msra.gmra.mxu0 %v4871_v47 }
 0x34e   : > { %6647 = vmatpush3.bf16.msra.mxu0 %v7376_v36  ;;  %5414 = vmatprep.mubr.bf16.mxu0 %v5252_v52 }
 0x34f   : > { %6637 = vmatpush3.bf16.msra.mxu1 %v7375_v54  ;;  %6648 = vmatprep.subr.bf16.mxu0 %v7378_v4 }
 0x350   : > { %6638 = vmatprep.subr.bf16.mxu1 %v7377_v30 }
 0x352   : > { %6649 = vmatpush3.bf16.msra.mxu0 %v7380_v15 }
 0x353   : > { %6639 = vmatpush3.bf16.msra.mxu1 %v7379_v28  ;;  %6650 = vmatprep.subr.bf16.mxu0 %v7381_v62 }
 0x354   : > { %6677 = vmatprep.subr.bf16.mxu1 %v10259_v35 }
 0x356   : > { %5225 = vmatmul.mubr.bf16.vlgmr.msra.gmra.mxu1 %v5061_v45  ;;  %6651 = vmatpush3.bf16.msra.mxu0 %v7382_v29 }
 0x357   : > { %6652 = vmatprep.subr.bf16.mxu0 %v7383_v49  ;;  %6678 = vmatpush3.bf16.msra.mxu1 %v7393_v50 }
 0x358   : > { %6679 = vmatprep.subr.bf16.mxu1 %v10259_v35  ;;  %6693 = vmatprep.mubr.msk.bf16.mxu1 %vm7494_vm6, %v10259_v35 }
 0x35a   : > { %6653 = vmatpush3.bf16.msra.mxu0 %v7384_v61 }
 0x35b   : > { %6654 = vmatprep.subr.bf16.mxu0 %v7385_v26  ;;  %6680 = vmatpush3.bf16.msra.mxu1 %v7394_v18 }
 0x35c   : > { %6681 = vmatprep.subr.bf16.mxu1 %v10259_v35 }
 0x35e   : > { %6655 = vmatpush3.bf16.msra.mxu0 %v7386_v55 }
 0x35f   : > { %6656 = vmatprep.subr.bf16.mxu0 %v7387_v6  ;;  %6682 = vmatpush3.bf16.msra.mxu1 %v7395_v33 }
 0x360   : > { %6683 = vmatprep.subr.bf16.mxu1 %v10259_v35 }
 0x362   : > { %6657 = vmatpush3.bf16.msra.mxu0 %v7388_v17 }
 0x363   : > { %6658 = vmatprep.subr.bf16.mxu0 %v7389_v31  ;;  %6684 = vmatpush3.bf16.msra.mxu1 %v7396_v12 }
 0x364   : > { %6685 = vmatprep.subr.bf16.mxu1 %v10259_v35 }
 0x366   : > { %6659 = vmatpush3.bf16.msra.mxu0 %v7390_v56 }
 0x367   : > { %6660 = vmatprep.subr.bf16.mxu0 %v7391_v27  ;;  %6686 = vmatpush3.bf16.msra.mxu1 %v7397_v23 }
 0x368   : > { %6687 = vmatprep.subr.bf16.mxu1 %v10259_v35 }
 0x36a   : > { %6661 = vmatpush3.bf16.msra.mxu0 %v7392_v1 }
 0x36b   : > { %6688 = vmatpush3.bf16.msra.mxu1 %v7398_v3 }
 0x36c   : > { %6689 = vmatprep.subr.bf16.mxu1 %v10259_v35 }
 0x36d   : > { %5415 = vmatmul.mubr.bf16.vlgmr.msra.gmra.mxu0 %v5251_v37 }
 0x36f   : > { %6690 = vmatpush3.bf16.msra.mxu1 %v7399_v22 }
 0x370   : > { %6691 = vmatprep.subr.bf16.mxu1 %v10259_v35 }
 0x373   : > { %6692 = vmatpush3.bf16.msra.mxu1 %v7400_v20 }
 0x3ed   : > { %v6574_v51 = vpop.f32.mrf.mxu0 }
 0x3ef   : > { %v6575_v13 = vpop.f32.mrf.mxu0 }
 0x3f0   : > { %v6576_v8 = vadd.f32 %v6575_v13, %v6574_v51 }
 0x3f1   : > { %v6577_v39 = vpop.f32.mrf.mxu0 }
 0x3f2   : > { %v4662_v40 = vadd.f32 %v6576_v8, %v6349_v19 }
 0x3f3   : > { %v6578_v41 = vpop.f32.mrf.mxu0 }
 0x3f5   : > { %v6596_v0 = vpop.f32.mrf.mxu1 }
 0x3f7   : > { %v6597_v44 = vpop.f32.mrf.mxu1 }
 0x3f8   : > { %v6598_v2 = vadd.f32 %v6597_v44, %v6596_v0 }
 0x3f9   : > { %v6599_v21 = vpop.f32.mrf.mxu1 }
 0x3fa   : > { %v4852_v10 = vadd.f32 %v6598_v2, %v4662_v40 }
 0x3fb   : > { %v6600_v38 = vpop.f32.mrf.mxu1 }
 0x40d   : > { %v6618_v48 = vpop.f32.mrf.mxu0 }
 0x40f   : > { %v6619_v42 = vpop.f32.mrf.mxu0 }
 0x410   : > { %v6620_v16 = vadd.f32 %v6619_v42, %v6618_v48 }
 0x411   : > { %v6621_v58 = vpop.f32.mrf.mxu0 }
 0x412   : > { %v5042_v32 = vadd.f32 %v6620_v16, %v4852_v10 }
 0x413   : > { %v6622_v5 = vpop.f32.mrf.mxu0 }
 0x416   : > { %v6640_v63 = vpop.f32.mrf.mxu1 }
 0x418   : > { %v6641_v46 = vpop.f32.mrf.mxu1 }
 0x419   : > { %v6642_v25 = vadd.f32 %v6641_v46, %v6640_v63 }
 0x41a   : > { %v6643_v9 = vpop.f32.mrf.mxu1 }
 0x41b   : > { %v5232_v11 = vadd.f32 %v6642_v25, %v5042_v32 }
 0x41c   : > { %v6644_v24 = vpop.f32.mrf.mxu1 }
 0x42d   : > { %v6662_v34 = vpop.f32.mrf.mxu0 }
 0x42f   : > { %v6663_v57 = vpop.f32.mrf.mxu0 }
 0x430   : > { %v6664_v53 = vadd.f32 %v6663_v57, %v6662_v34 }
 0x431   : > { %v6665_v14 = vpop.f32.mrf.mxu0 }
 0x432   : > { %v5422_v43 = vadd.f32 %v6664_v53, %v5232_v11 }
 0x433   : > { %v6666_v60 = vpop.f32.mrf.mxu0 }
 0x434   : > { %vm5423_vm7 = vcmp.ge.f32.partialorder %v5422_v43, 0.0  ;;  %v5424_v7 = vmul.f32 0.01, %v5422_v43 }
 0x436   : > { %v5425_v59 = vsel %vm5423_vm7, %v5422_v43, %v5424_v7 }
 0x437   : > { %v5427_v54 = vpack.c.bf16 %v5425_v59, %v5425_v59  ;;  %5426 = vst [vmem:[%s366_s12] sm:$0xff] %v5425_v59 }
 0x439   : > { %6694 = vmatmul.mubr.bf16.vlgmr.msra.gmra.mxu1 %v5427_v54 }
 0x43a   : > { %7414 = shalt.err (!%p7411_p3)
}
 0x43b   : > { %s7415_s0 = scalar_lea.hbm %s5570_s20, 128  ;;  %s7419_s18 = scalar_lea.hbm %s10169_s10, 256 }
 0x43c   : > { %p7416_p4 = scmp.ne.s32.totalorder %s5570_s20, %s7415_s0  ;;  %p7420_p9 = scmp.lt.s32.totalorder %s5570_s20, %s10169_s10 }
 0x43d   : > { %p7421_p10 = scmp.lt.s32.totalorder %s7419_s18, %s7415_s0 }
 0x43e   : > { %p7417_p7 = pnand %p7416_p4, %p7590_p5 }
 0x43f   : > { %p7422_p11 = por %p7421_p10, %p7420_p9 }
 0x440   : > { %p7418_p8 = pneg %p7417_p7 }
 0x442   : > { %p7423_p12 = pnand %p7422_p11, %p7418_p8 }
 0x444   : > { %7426 = shalt.err (!%p7423_p12)
}
 0x445   : > { %6698 = dma.vmem_to_hbm [thread:$0]  (%p7590_p5), %s5573_s21, 128, %s5570_s20, %s5546_s30   ;;  %v6542_v36 = vld [vmem:[%s10167_s8] ss:$0 sm:$0xff] }
 0x446   : > { %s10260_s22 = sshll.u32 %s10083_s27, 3  ;;  %s10261_s0 = sshll.u32 %s7573_s17, 7 }
 0x447   : > { %s359_s26 = scalar_lea.vmem [#allocation3], %s10260_s22  ;;  %s10117_s11 = scalar_lea.hbm %s10168_s9, %s10261_s0 }
 0x448   : > { %s5559_s12 = sshll.u32 %s359_s26, 4  ;;  %s5541_s20 = scalar_lea.sflag [#allocation4], %s10083_s27  ;;  %s10119_s12 = int_to_ptr.vmem [resolvable:$true] %s5559_s12 }
 0x449   : > { %s7427_s21 = scalar_lea.vmem %s10119_s12, 128  ;;  %s7496_s17 = smov [#allocation3]  }
 0x44a   : > { %p7428_p13 = scmp.ne.s32.totalorder %s10119_s12, %s7427_s21  ;;  %s7431_s30 = sshll.u32 %s7496_s17, 4  ;;  %s7432_s30 = int_to_ptr.vmem [resolvable:$false] %s7431_s30 }
 0x44b   : > { %s7433_s18 = scalar_lea.vmem %s7432_s30, 256  ;;  %p7434_p2 = scmp.lt.s32.totalorder %s10119_s12, %s7432_s30 }
 0x44c   : > { %p7429_p0 = pnand %p7428_p13, %p7590_p5  ;;  %p7435_p3 = scmp.lt.s32.totalorder %s7433_s18, %s7427_s21 }
 0x44e   : > { %p7430_p1 = pneg %p7429_p0  ;;  %p7436_p4 = por %p7435_p3, %p7434_p2 }
 0x450   : > { %p7437_p7 = pnand %p7436_p4, %p7430_p1 }
 0x4f9   : > { %v5533_v47 = vpop.f32.mrf.mxu1 }
 0x4fa   : > { %v5534_v52 = vadd.f32 %v6542_v36, %v5533_v47 }
 0x4fb   : > { %v6695_v30 = vpop.f32.mrf.mxu1 }
 0x4fc   : > { %5539 = vst [vmem:[%s359_s26] sm:$0xff] %v5534_v52 }
 0x4fd   : > { %v5536_v4 = vpop.f32.mrf.mxu1 }
 0x4fe   : > { %7440 = shalt.err (!%p7437_p7)
}
 0x4ff   : > { %s7441_s28 = scalar_lea.hbm %s10117_s11, 128  ;;  %s7445_s22 = scalar_lea.hbm %s10168_s9, 256 }
 0x500   : > { %p7442_p8 = scmp.ne.s32.totalorder %s10117_s11, %s7441_s28  ;;  %p7446_p11 = scmp.lt.s32.totalorder %s10117_s11, %s10168_s9 }
 0x501   : > { %p7447_p12 = scmp.lt.s32.totalorder %s7445_s22, %s7441_s28 }
 0x502   : > { %p7443_p9 = pnand %p7442_p8, %p7590_p5 }
 0x503   : > { %p7448_p13 = por %p7447_p12, %p7446_p11 }
 0x504   : > { %p7444_p10 = pneg %p7443_p9 }
 0x506   : > { %p7449_p0 = pnand %p7448_p13, %p7444_p10 }
 0x508   : > { %7452 = shalt.err (!%p7449_p0)
}
 0x509   : > { %6697 = dma.vmem_to_hbm [thread:$0]  (%p7590_p5), %s10119_s12, 128, %s10117_s11, %s5541_s20   ;;  %v6696_v28 = vpop.f32.mrf.mxu1 }
 0x50a PF: > { %p6708_p1 = scmp.ge.s32.totalorder %s7491_s16, 2  ;;  %s5584_s1 = sand.u32 1, %s7479_s13  }
 0x50b   : > { %s5585_s29 = scalar_lea.sflag [#allocation4], %s5584_s1 }
 0x50c   : > { %p6702_p2 = pnand %p6708_p1, %p7594_p6 }
 0x50e   : > { %p6703_p3 = pneg %p6702_p2 }
 0x510   : > { %7470 = dma.done.wait (%p6703_p3), %s5585_s29, 128  }
 0x511   : > { %7472 = vsyncadd (%p6703_p3), %s5585_s29, 4294967168  ;;  %s5594_s21 = scalar_lea.sflag [#allocation6], %s5584_s1 }
 0x512   : > { %7474 = dma.done.wait (%p6703_p3), %s5594_s21, 128  }
 0x513   : > { %7476 = vsyncadd (%p6703_p3), %s5594_s21, 4294967168  ;;  %s10262_s23 = sld [smem:[#allocation9_spill]]  ;;  %p24_p5 = scmp.ge.s32.totalorder %s7577_s19, 4  }
 0x514   : > { %s10263_s13 = smov %s7483_s14  ;;  %s10264_s14 = smov %s7487_s15 }
 0x515   : > { %s10266_s16 = smov %s7577_s19  ;;  %26 = sbr.rel (!%p24_p5) target bundleno = 8 (0x8), region = 116 }
 0x519   : > { %s10265_s15 = smov %s10262_s23 }
 0x51a   :  { %5599 = vsyncpa [#allocation4], 1 }
 0x51b   :  { %5601 = vsyncpa [#allocation4 + $0x1], 1 }
 0x51c   :  { %5602 = vsyncpa [#allocation6], 1 }
 0x51d   :  { %5604 = vsyncpa [#allocation6 + $0x1], 1 }

</bundles_post_ra>
